<compile_context>
chip_gen: v7x
topology: tpu7x:2x2x1
jax: 0.10.0
libtpu: 0.0.40
codegen_flags: <defaults>
</compile_context>

<pallas_src>
import functools

import jax
import jax.numpy as jnp
from jax.experimental import pallas as pl
from jax.experimental.pallas import tpu as pltpu

GAMMA = 0.1       # matches SCRM(gamma=0.1) default
EPS = 1e-12       # F.normalize eps
NEG_BIG = -1e30   # "minus infinity" for masked softmax keys


def _vmem_budget_bytes():
    """Generation-aware VMEM budget (~3/4 of physical): ~96 MiB on v5e/v6e
    (128 MiB physical), ~48 MiB on v7x (64 MiB physical)."""
    cap = None
    try:
        info = pltpu.get_tpu_info()
        for name in ("vmem_capacity_bytes", "vmem_size_bytes", "vmem_bytes"):
            val = getattr(info, name, None)
            if val:
                cap = int(val)
                break
    except Exception:
        cap = None
    if cap is None:
        cap = 64 * 1024 * 1024          # conservative fallback (v7x physical)
    return max(16 * 1024 * 1024, (cap * 3) // 4)


def _choose_spatial_tile(n, c, budget_bytes):
    """Pick (tile_n, num_tiles) for the query-row tiling of the N x N spatial
    attention so that the resident bf16 inputs/caches plus the per-row f32
    softmax slabs fit the VMEM budget.  tile_n is a multiple of 8 unless a
    single tile covers all of N."""
    # Resident bytes: 4 bf16 input blocks (double-buffered by the pipeline)
    # = 16*C*N  +  4 bf16 normalized caches in scratch = 8*C*N.
    fixed = 24 * c * n
    # Conservative per-query-row f32 cost of the softmax path (energy/exp/attn
    # slabs plus the (row, C) output/residual slabs, student + teacher).
    per_row = 16 * n + 16 * c
    avail = budget_bytes - fixed
    if avail <= 0:
        max_tile = 8                     # over budget anyway; keep slabs minimal
    else:
        max_tile = max(8, (int(avail // per_row) // 8) * 8)
    if max_tile >= n:
        return n, 1                      # single tile: no padding / masking
    num_tiles = -(-n // max_tile)                      # cdiv
    tile = ((-(-n // num_tiles)) + 7) // 8 * 8         # balanced + 8-aligned
    num_tiles = -(-n // tile)
    return tile, num_tiles


def _channel_chunks(c, num_tiles):
    """Number of chunks the CxC channel attention is spread over (must divide C
    and be <= num_tiles); prefer chunks whose row count is a multiple of 8."""
    best = 1
    for d in range(1, min(c, num_tiles) + 1):
        if c % d == 0 and (c // d) % 8 == 0:
            best = d
    if best == 1:
        for d in range(1, min(c, num_tiles) + 1):
            if c % d == 0:
                best = d
    return best


def _scrm_pair_kernel(xs_ref, xsT_ref, xt_ref, xtT_ref,     # inputs (bf16)
                      sa_ref, ca_ref,                        # outputs (f32)
                      xs_cn, xs_nc, xt_cn, xt_nc,            # VMEM caches (bf16)
                      *, n, n_pad, tile_n, tile_c, c_chunks, gamma):
    """Grid = (B, num_tiles).  Per step (b, t):
       - t == 0: L2-normalize (over channels) both networks in f32 and cache
         bf16 copies in both (C, Np) and (Np, C) layouts; zero the accumulators.
       - every t: one (tile_n, Np) query-row tile of the spatial attention for
         student & teacher, L1 partial accumulated into sa_ref.
       - t < c_chunks: a (tile_c, C) row-slice of the channel attention,
         L1 partial accumulated into ca_ref.
    """
    t = pl.program_id(1)
    padded = (n_pad != n)                       # trace-time constant

    # ---- once per batch element: normalize (f32 math) + cache bf16 operands ----
    @pl.when(t == 0)
    def _():
        def norm_cols(x):                       # (C, Np): normalize each column
            x = x.astype(jnp.float32)
            ss = jnp.sum(x * x, axis=0, keepdims=True)
            return x * jax.lax.rsqrt(jnp.maximum(ss, EPS * EPS))

        def norm_rows(xT):                      # (Np, C): normalize each row
            xT = xT.astype(jnp.float32)
            ss = jnp.sum(xT * xT, axis=1, keepdims=True)
            return xT * jax.lax.rsqrt(jnp.maximum(ss, EPS * EPS))

        xs_cn[...] = norm_cols(xs_ref[0]).astype(jnp.bfloat16)
        xt_cn[...] = norm_cols(xt_ref[0]).astype(jnp.bfloat16)
        xs_nc[...] = norm_rows(xsT_ref[0]).astype(jnp.bfloat16)
        xt_nc[...] = norm_rows(xtT_ref[0]).astype(jnp.bfloat16)
        sa_ref[...] = jnp.zeros_like(sa_ref)
        ca_ref[...] = jnp.zeros_like(ca_ref)

    # ---- spatial attention: one query-row tile per grid step ----
    start = pl.multiple_of(t * tile_n, tile_n)
    if padded:
        key_ok = jax.lax.broadcasted_iota(jnp.int32, (1, n_pad), 1) < n

    def spatial_tile(x_cn, x_nc):
        qT = x_nc[pl.ds(start, tile_n), :]                       # (tile, C) bf16
        energy = jnp.dot(qT, x_cn[...],
                         preferred_element_type=jnp.float32)     # (tile, Np) f32
        if padded:
            energy = jnp.where(key_ok, energy, NEG_BIG)
        m = jnp.max(energy, axis=-1, keepdims=True)
        e = jnp.exp(energy - m)
        attn = e * pl.reciprocal(jnp.sum(e, axis=-1, keepdims=True), approx=True)
        outT = jnp.dot(attn.astype(jnp.bfloat16), x_nc[...],
                       preferred_element_type=jnp.float32)       # (tile, C) f32
        return gamma * outT + qT.astype(jnp.float32)

    sp_s = spatial_tile(xs_cn, xs_nc)
    sp_t = spatial_tile(xt_cn, xt_nc)
    d = jnp.abs(sp_s - sp_t)
    if padded:
        row_ok = (start + jax.lax.broadcasted_iota(jnp.int32, (tile_n, 1), 0)) < n
        d = jnp.where(row_ok, d, 0.0)
    sa_ref[...] += jnp.sum(d, keepdims=True).reshape(1, 1, 1)

    # ---- channel attention: spread over the first c_chunks steps ----
    @pl.when(t < c_chunks)
    def _():
        c0 = pl.multiple_of(t * tile_c, tile_c)

        def channel_chunk(x_cn, x_nc):
            q = x_cn[pl.ds(c0, tile_c), :]                        # (tc, Np) bf16
            energy = jnp.dot(q, x_nc[...],
                             preferred_element_type=jnp.float32)  # (tc, C) f32
            en = jnp.max(energy, axis=-1, keepdims=True) - energy
            m = jnp.max(en, axis=-1, keepdims=True)
            e = jnp.exp(en - m)
            attn = e * pl.reciprocal(jnp.sum(e, axis=-1, keepdims=True),
                                     approx=True)
            out = jnp.dot(attn.astype(jnp.bfloat16), x_cn[...],
                          preferred_element_type=jnp.float32)     # (tc, Np) f32
            return gamma * out + q.astype(jnp.float32)

        ch_s = channel_chunk(xs_cn, xs_nc)
        ch_t = channel_chunk(xt_cn, xt_nc)
        ca_ref[...] += jnp.sum(jnp.abs(ch_s - ch_t),
                               keepdims=True).reshape(1, 1, 1)


def scrm_pair_loss(f_s, f_t, gamma=GAMMA):
    """cal_loss(f_s, f_t) for a single NCHW feature-map pair."""
    B, C, H, W = f_s.shape
    N = H * W

    budget = _vmem_budget_bytes()
    tile_n, num_tiles = _choose_spatial_tile(N, C, budget)
    n_pad = tile_n * num_tiles
    c_chunks = _channel_chunks(C, num_tiles)
    tile_c = C // c_chunks

    # bf16 inputs: halve HBM traffic and VMEM residency.  Pre-transposed copies
    # keep every in-kernel matmul in native (M,K)@(K,N) form (no relayouts).
    xs = f_s.reshape(B, C, N).astype(jnp.bfloat16)
    xt = f_t.reshape(B, C, N).astype(jnp.bfloat16)
    if n_pad != N:
        pad = n_pad - N
        xs = jnp.pad(xs, ((0, 0), (0, 0), (0, pad)))
        xt = jnp.pad(xt, ((0, 0), (0, 0), (0, pad)))
    xsT = jnp.swapaxes(xs, 1, 2)            # (B, Np, C)
    xtT = jnp.swapaxes(xt, 1, 2)

    cn_spec = pl.BlockSpec((1, C, n_pad), lambda b, t: (b, 0, 0))   # resident over t
    nc_spec = pl.BlockSpec((1, n_pad, C), lambda b, t: (b, 0, 0))
    out_spec = pl.BlockSpec((1, 1, 1), lambda b, t: (b, 0, 0))      # accumulator

    kernel = functools.partial(_scrm_pair_kernel, n=N, n_pad=n_pad,
                               tile_n=tile_n, tile_c=tile_c,
                               c_chunks=c_chunks, gamma=gamma)

    # TODO(synk): for B == 1 on v7x, add an outer size-2 parallel split of the
    # spatial tiles so both TensorCores get work.
    sa, ca = pl.pallas_call(
        kernel,
        out_shape=(jax.ShapeDtypeStruct((B, 1, 1), jnp.float32),
                   jax.ShapeDtypeStruct((B, 1, 1), jnp.float32)),
        grid_spec=pltpu.PrefetchScalarGridSpec(
            num_scalar_prefetch=0,
            grid=(B, num_tiles),
            in_specs=[cn_spec, nc_spec, cn_spec, nc_spec],
            out_specs=[out_spec, out_spec],
            scratch_shapes=[pltpu.VMEM((C, n_pad), jnp.bfloat16),   # student (C, Np)
                            pltpu.VMEM((n_pad, C), jnp.bfloat16),   # student (Np, C)
                            pltpu.VMEM((C, n_pad), jnp.bfloat16),   # teacher (C, Np)
                            pltpu.VMEM((n_pad, C), jnp.bfloat16)],  # teacher (Np, C)
        ),
        compiler_params=pltpu.CompilerParams(
            # b parallel (megacore splits batches), t arbitrary (scratch caches
            # and output accumulators carry across spatial tiles).
            dimension_semantics=("parallel", "arbitrary"),
            vmem_limit_bytes=int(budget)),
    )(xs, xsT, xt, xtT)

    denom = float(B * C * N)                 # F.l1_loss mean reduction
    return (jnp.sum(ca) + jnp.sum(sa)) / denom


def scrm_forward(g_s, g_t):
    """SCRM.forward: sum of cal_loss over the list of feature-map pairs."""
    return sum(scrm_pair_loss(fs, ft) for fs, ft in zip(g_s, g_t))


# ----------------------- pure-JAX reference (for sanity) -----------------------
def _ref_pair_loss(f_s, f_t, gamma=GAMMA):
    def norm(x):
        n = jnp.sqrt(jnp.sum(x * x, axis=1, keepdims=True))
        return x / jnp.maximum(n, EPS)

    def spatial(x):
        B, C, H, W = x.shape
        X = x.reshape(B, C, H * W)
        energy = jnp.einsum('bcn,bcm->bnm', X, X)
        attn = jax.nn.softmax(energy, axis=-1)
        out = jnp.einsum('bcn,bmn->bcm', X, attn)
        return gamma * out + X

    def channel(x):
        B, C, H, W = x.shape
        X = x.reshape(B, C, H * W)
        energy = jnp.einsum('bcn,bdn->bcd', X, X)
        en = jnp.max(energy, axis=-1, keepdims=True) - energy
        attn = jax.nn.softmax(en, axis=-1)
        out = jnp.einsum('bcd,bdn->bcn', attn, X)
        return gamma * out + X

    fs, ft = norm(f_s), norm(f_t)
    sa = jnp.mean(jnp.abs(spatial(fs) - spatial(ft)))
    ca = jnp.mean(jnp.abs(channel(fs) - channel(ft)))
    return ca + sa


if __name__ == "__main__":
    key = jax.random.PRNGKey(0)
    k1, k2, k3, k4 = jax.random.split(key, 4)
    B, C, H, W = 2, 4, 16, 16

    # SCRM.forward takes lists of student/teacher feature maps.
    g_s = [jax.random.normal(k1, (B, C, H, W), jnp.float32),
           jax.random.normal(k2, (B, C, H, W), jnp.float32)]
    g_t = [jax.random.normal(k3, (B, C, H, W), jnp.float32),
           jax.random.normal(k4, (B, C, H, W), jnp.float32)]

    loss = scrm_forward(g_s, g_t)
    loss = jax.block_until_ready(loss)

    ref = sum(_ref_pair_loss(fs, ft) for fs, ft in zip(g_s, g_t))
    ref = jax.block_until_ready(ref)

    # bf16 inputs + bf16 MXU operands + approx EUP reciprocals vs. a pure-f32
    # reference => a couple-of-permille relative error; keep tolerance at 2e-2.
    rel_err = abs(float(loss) - float(ref)) / max(1.0, abs(float(ref)))
    assert rel_err < 2e-2, (float(loss), float(ref), rel_err)

    print("KERNEL_OK")
</pallas_src>

<mosaic_0001>
module attributes {stable_mosaic.version = 11 : i64} {
  func.func @_scrm_pair_kernel(%arg0: i32, %arg1: i32, %arg2: memref<1x4x256xbf16, #tpu.memory_space<vmem>>, %arg3: memref<1x256x4xbf16, #tpu.memory_space<vmem>>, %arg4: memref<1x4x256xbf16, #tpu.memory_space<vmem>>, %arg5: memref<1x256x4xbf16, #tpu.memory_space<vmem>>, %arg6: memref<1x1x1xf32, #tpu.memory_space<vmem>>, %arg7: memref<1x1x1xf32, #tpu.memory_space<vmem>>, %arg8: memref<4x256xbf16, #tpu.memory_space<vmem>>, %arg9: memref<256x4xbf16, #tpu.memory_space<vmem>>, %arg10: memref<4x256xbf16, #tpu.memory_space<vmem>>, %arg11: memref<256x4xbf16, #tpu.memory_space<vmem>>) attributes {dimension_semantics = [#tpu.dimension_semantics<parallel>, #tpu.dimension_semantics<arbitrary>], iteration_bounds = array<i64: 2, 1>, scalar_prefetch = 0 : i64, scratch_operands = 4 : i64, tpu.core_type = #tpu.core_type<tc>, window_params = [{transform_indices = @transform_0, window_bounds = array<i64: 1, 4, 256>}, {transform_indices = @transform_1, window_bounds = array<i64: 1, 256, 4>}, {transform_indices = @transform_2, window_bounds = array<i64: 1, 4, 256>}, {transform_indices = @transform_3, window_bounds = array<i64: 1, 256, 4>}, {transform_indices = @transform_4, window_bounds = array<i64: 1, 1, 1>}, {transform_indices = @transform_5, window_bounds = array<i64: 1, 1, 1>}]} {
    %c0_i32 = arith.constant 0 : i32
    %0 = arith.cmpi eq, %arg1, %c0_i32 : i32
    %1 = arith.extui %0 : i1 to i32
    %c0_i32_0 = arith.constant 0 : i32
    %2 = arith.cmpi ne, %1, %c0_i32_0 : i32
    scf.if %2 {
      %c0_27 = arith.constant 0 : index
      %c0_28 = arith.constant 0 : index
      %c0_29 = arith.constant 0 : index
      %61 = vector.load %arg2[%c0_27, %c0_28, %c0_29] : memref<1x4x256xbf16, #tpu.memory_space<vmem>>, vector<1x4x256xbf16>
      %62 = vector.shape_cast %61 : vector<1x4x256xbf16> to vector<4x256xbf16>
      %63 = arith.extf %62 : vector<4x256xbf16> to vector<4x256xf32>
      %64 = arith.mulf %63, %63 : vector<4x256xf32>
      %cst_30 = arith.constant dense<0.000000e+00> : vector<256xf32>
      %65 = vector.multi_reduction <add>, %64, %cst_30 [0] : vector<4x256xf32> to vector<256xf32>
      %66 = vector.shape_cast %65 : vector<256xf32> to vector<1x256xf32>
      %cst_31 = arith.constant 1.000000e-24 : f32
      %67 = vector.broadcast %cst_31 : f32 to vector<1x256xf32>
      %68 = arith.maximumf %66, %67 : vector<1x256xf32>
      %69 = math.rsqrt %68 : vector<1x256xf32>
      %70 = vector.broadcast %69 : vector<1x256xf32> to vector<4x256xf32>
      %71 = arith.mulf %63, %70 : vector<4x256xf32>
      %72 = arith.truncf %71 : vector<4x256xf32> to vector<4x256xbf16>
      %c0_32 = arith.constant 0 : index
      %c0_33 = arith.constant 0 : index
      %73 = vector.load %arg8[%c0_32, %c0_33] : memref<4x256xbf16, #tpu.memory_space<vmem>>, vector<4x256xbf16>
      tpu.vector_store %arg8[%c0_32, %c0_33], %72 {strides = array<i32>} : memref<4x256xbf16, #tpu.memory_space<vmem>>, vector<4x256xbf16>,
      %c0_34 = arith.constant 0 : index
      %c0_35 = arith.constant 0 : index
      %c0_36 = arith.constant 0 : index
      %74 = vector.load %arg4[%c0_34, %c0_35, %c0_36] : memref<1x4x256xbf16, #tpu.memory_space<vmem>>, vector<1x4x256xbf16>
      %75 = vector.shape_cast %74 : vector<1x4x256xbf16> to vector<4x256xbf16>
      %76 = arith.extf %75 : vector<4x256xbf16> to vector<4x256xf32>
      %77 = arith.mulf %76, %76 : vector<4x256xf32>
      %cst_37 = arith.constant dense<0.000000e+00> : vector<256xf32>
      %78 = vector.multi_reduction <add>, %77, %cst_37 [0] : vector<4x256xf32> to vector<256xf32>
      %79 = vector.shape_cast %78 : vector<256xf32> to vector<1x256xf32>
      %cst_38 = arith.constant 1.000000e-24 : f32
      %80 = vector.broadcast %cst_38 : f32 to vector<1x256xf32>
      %81 = arith.maximumf %79, %80 : vector<1x256xf32>
      %82 = math.rsqrt %81 : vector<1x256xf32>
      %83 = vector.broadcast %82 : vector<1x256xf32> to vector<4x256xf32>
      %84 = arith.mulf %76, %83 : vector<4x256xf32>
      %85 = arith.truncf %84 : vector<4x256xf32> to vector<4x256xbf16>
      %c0_39 = arith.constant 0 : index
      %c0_40 = arith.constant 0 : index
      %86 = vector.load %arg10[%c0_39, %c0_40] : memref<4x256xbf16, #tpu.memory_space<vmem>>, vector<4x256xbf16>
      tpu.vector_store %arg10[%c0_39, %c0_40], %85 {strides = array<i32>} : memref<4x256xbf16, #tpu.memory_space<vmem>>, vector<4x256xbf16>,
      %c0_41 = arith.constant 0 : index
      %c0_42 = arith.constant 0 : index
      %c0_43 = arith.constant 0 : index
      %87 = vector.load %arg3[%c0_41, %c0_42, %c0_43] : memref<1x256x4xbf16, #tpu.memory_space<vmem>>, vector<1x256x4xbf16>
      %88 = vector.shape_cast %87 : vector<1x256x4xbf16> to vector<256x4xbf16>
      %89 = arith.extf %88 : vector<256x4xbf16> to vector<256x4xf32>
      %90 = arith.mulf %89, %89 : vector<256x4xf32>
      %cst_44 = arith.constant dense<0.000000e+00> : vector<256xf32>
      %91 = vector.multi_reduction <add>, %90, %cst_44 [1] : vector<256x4xf32> to vector<256xf32>
      %92 = vector.shape_cast %91 : vector<256xf32> to vector<256x1xf32>
      %cst_45 = arith.constant 1.000000e-24 : f32
      %93 = vector.broadcast %cst_45 : f32 to vector<256x1xf32>
      %94 = arith.maximumf %92, %93 : vector<256x1xf32>
      %95 = math.rsqrt %94 : vector<256x1xf32>
      %96 = vector.broadcast %95 : vector<256x1xf32> to vector<256x4xf32>
      %97 = arith.mulf %89, %96 : vector<256x4xf32>
      %98 = arith.truncf %97 : vector<256x4xf32> to vector<256x4xbf16>
      %c0_46 = arith.constant 0 : index
      %c0_47 = arith.constant 0 : index
      %99 = vector.load %arg9[%c0_46, %c0_47] : memref<256x4xbf16, #tpu.memory_space<vmem>>, vector<256x4xbf16>
      tpu.vector_store %arg9[%c0_46, %c0_47], %98 {strides = array<i32>} : memref<256x4xbf16, #tpu.memory_space<vmem>>, vector<256x4xbf16>,
      %c0_48 = arith.constant 0 : index
      %c0_49 = arith.constant 0 : index
      %c0_50 = arith.constant 0 : index
      %100 = vector.load %arg5[%c0_48, %c0_49, %c0_50] : memref<1x256x4xbf16, #tpu.memory_space<vmem>>, vector<1x256x4xbf16>
      %101 = vector.shape_cast %100 : vector<1x256x4xbf16> to vector<256x4xbf16>
      %102 = arith.extf %101 : vector<256x4xbf16> to vector<256x4xf32>
      %103 = arith.mulf %102, %102 : vector<256x4xf32>
      %cst_51 = arith.constant dense<0.000000e+00> : vector<256xf32>
      %104 = vector.multi_reduction <add>, %103, %cst_51 [1] : vector<256x4xf32> to vector<256xf32>
      %105 = vector.shape_cast %104 : vector<256xf32> to vector<256x1xf32>
      %cst_52 = arith.constant 1.000000e-24 : f32
      %106 = vector.broadcast %cst_52 : f32 to vector<256x1xf32>
      %107 = arith.maximumf %105, %106 : vector<256x1xf32>
      %108 = math.rsqrt %107 : vector<256x1xf32>
      %109 = vector.broadcast %108 : vector<256x1xf32> to vector<256x4xf32>
      %110 = arith.mulf %102, %109 : vector<256x4xf32>
      %111 = arith.truncf %110 : vector<256x4xf32> to vector<256x4xbf16>
      %c0_53 = arith.constant 0 : index
      %c0_54 = arith.constant 0 : index
      %112 = vector.load %arg11[%c0_53, %c0_54] : memref<256x4xbf16, #tpu.memory_space<vmem>>, vector<256x4xbf16>
      tpu.vector_store %arg11[%c0_53, %c0_54], %111 {strides = array<i32>} : memref<256x4xbf16, #tpu.memory_space<vmem>>, vector<256x4xbf16>,
      %cst_55 = arith.constant 0.000000e+00 : f32
      %113 = vector.broadcast %cst_55 : f32 to vector<1x1x1xf32>
      %c0_56 = arith.constant 0 : index
      %c0_57 = arith.constant 0 : index
      %c0_58 = arith.constant 0 : index
      %114 = vector.load %arg6[%c0_56, %c0_57, %c0_58] : memref<1x1x1xf32, #tpu.memory_space<vmem>>, vector<1x1x1xf32>
      tpu.vector_store %arg6[%c0_56, %c0_57, %c0_58], %113 {strides = array<i32>} : memref<1x1x1xf32, #tpu.memory_space<vmem>>, vector<1x1x1xf32>,
      %cst_59 = arith.constant 0.000000e+00 : f32
      %115 = vector.broadcast %cst_59 : f32 to vector<1x1x1xf32>
      %c0_60 = arith.constant 0 : index
      %c0_61 = arith.constant 0 : index
      %c0_62 = arith.constant 0 : index
      %116 = vector.load %arg7[%c0_60, %c0_61, %c0_62] : memref<1x1x1xf32, #tpu.memory_space<vmem>>, vector<1x1x1xf32>
      tpu.vector_store %arg7[%c0_60, %c0_61, %c0_62], %115 {strides = array<i32>} : memref<1x1x1xf32, #tpu.memory_space<vmem>>, vector<1x1x1xf32>,
    } else {
    }
    %c256_i32 = arith.constant 256 : i32
    %3 = arith.muli %arg1, %c256_i32 : i32
    %4 = tpu.assume_multiple %3, 256 : i32
    %5 = arith.index_cast %4 : i32 to index
    %c0 = arith.constant 0 : index
    %6 = vector.load %arg9[%5, %c0] : memref<256x4xbf16, #tpu.memory_space<vmem>>, vector<256x4xbf16>
    %c0_1 = arith.constant 0 : index
    %c0_2 = arith.constant 0 : index
    %7 = vector.load %arg8[%c0_1, %c0_2] : memref<4x256xbf16, #tpu.memory_space<vmem>>, vector<4x256xbf16>
    %cst = arith.constant dense<0.000000e+00> : vector<256x256xf32>
    %8 = tpu.matmul %6, %7, %cst {dimension_numbers = #tpu.dot_dimension_numbers<[1], [0], [0], [1], [0, 0, 1, 1], [], []>} : vector<256x4xbf16>, vector<4x256xbf16>, vector<256x256xf32> -> vector<256x256xf32>
    %cst_3 = arith.constant dense<0xFF800000> : vector<256xf32>
    %9 = vector.multi_reduction <maximumf>, %8, %cst_3 [1] : vector<256x256xf32> to vector<256xf32>
    %10 = vector.shape_cast %9 : vector<256xf32> to vector<256x1xf32>
    %11 = vector.broadcast %10 : vector<256x1xf32> to vector<256x256xf32>
    %12 = arith.subf %8, %11 : vector<256x256xf32>
    %13 = math.exp %12 : vector<256x256xf32>
    %cst_4 = arith.constant dense<0.000000e+00> : vector<256xf32>
    %14 = vector.multi_reduction <add>, %13, %cst_4 [1] : vector<256x256xf32> to vector<256xf32>
    %15 = vector.shape_cast %14 : vector<256xf32> to vector<256x1xf32>
    %16 = tpu.reciprocal %15 {approx = true} : vector<256x1xf32> -> vector<256x1xf32>
    %17 = vector.broadcast %16 : vector<256x1xf32> to vector<256x256xf32>
    %18 = arith.mulf %13, %17 : vector<256x256xf32>
    %19 = arith.truncf %18 : vector<256x256xf32> to vector<256x256xbf16>
    %c0_5 = arith.constant 0 : index
    %c0_6 = arith.constant 0 : index
    %20 = vector.load %arg9[%c0_5, %c0_6] : memref<256x4xbf16, #tpu.memory_space<vmem>>, vector<256x4xbf16>
    %cst_7 = arith.constant dense<0.000000e+00> : vector<256x4xf32>
    %21 = tpu.matmul %19, %20, %cst_7 {dimension_numbers = #tpu.dot_dimension_numbers<[1], [0], [0], [1], [0, 0, 1, 1], [], []>} : vector<256x256xbf16>, vector<256x4xbf16>, vector<256x4xf32> -> vector<256x4xf32>
    %cst_8 = arith.constant 1.000000e-01 : f32
    %22 = vector.broadcast %cst_8 : f32 to vector<256x4xf32>
    %23 = arith.mulf %22, %21 : vector<256x4xf32>
    %24 = arith.extf %6 : vector<256x4xbf16> to vector<256x4xf32>
    %25 = arith.addf %23, %24 : vector<256x4xf32>
    %26 = arith.index_cast %4 : i32 to index
    %c0_9 = arith.constant 0 : index
    %27 = vector.load %arg11[%26, %c0_9] : memref<256x4xbf16, #tpu.memory_space<vmem>>, vector<256x4xbf16>
    %c0_10 = arith.constant 0 : index
    %c0_11 = arith.constant 0 : index
    %28 = vector.load %arg10[%c0_10, %c0_11] : memref<4x256xbf16, #tpu.memory_space<vmem>>, vector<4x256xbf16>
    %cst_12 = arith.constant dense<0.000000e+00> : vector<256x256xf32>
    %29 = tpu.matmul %27, %28, %cst_12 {dimension_numbers = #tpu.dot_dimension_numbers<[1], [0], [0], [1], [0, 0, 1, 1], [], []>} : vector<256x4xbf16>, vector<4x256xbf16>, vector<256x256xf32> -> vector<256x256xf32>
    %cst_13 = arith.constant dense<0xFF800000> : vector<256xf32>
    %30 = vector.multi_reduction <maximumf>, %29, %cst_13 [1] : vector<256x256xf32> to vector<256xf32>
    %31 = vector.shape_cast %30 : vector<256xf32> to vector<256x1xf32>
    %32 = vector.broadcast %31 : vector<256x1xf32> to vector<256x256xf32>
    %33 = arith.subf %29, %32 : vector<256x256xf32>
    %34 = math.exp %33 : vector<256x256xf32>
    %cst_14 = arith.constant dense<0.000000e+00> : vector<256xf32>
    %35 = vector.multi_reduction <add>, %34, %cst_14 [1] : vector<256x256xf32> to vector<256xf32>
    %36 = vector.shape_cast %35 : vector<256xf32> to vector<256x1xf32>
    %37 = tpu.reciprocal %36 {approx = true} : vector<256x1xf32> -> vector<256x1xf32>
    %38 = vector.broadcast %37 : vector<256x1xf32> to vector<256x256xf32>
    %39 = arith.mulf %34, %38 : vector<256x256xf32>
    %40 = arith.truncf %39 : vector<256x256xf32> to vector<256x256xbf16>
    %c0_15 = arith.constant 0 : index
    %c0_16 = arith.constant 0 : index
    %41 = vector.load %arg11[%c0_15, %c0_16] : memref<256x4xbf16, #tpu.memory_space<vmem>>, vector<256x4xbf16>
    %cst_17 = arith.constant dense<0.000000e+00> : vector<256x4xf32>
    %42 = tpu.matmul %40, %41, %cst_17 {dimension_numbers = #tpu.dot_dimension_numbers<[1], [0], [0], [1], [0, 0, 1, 1], [], []>} : vector<256x256xbf16>, vector<256x4xbf16>, vector<256x4xf32> -> vector<256x4xf32>
    %cst_18 = arith.constant 1.000000e-01 : f32
    %43 = vector.broadcast %cst_18 : f32 to vector<256x4xf32>
    %44 = arith.mulf %43, %42 : vector<256x4xf32>
    %45 = arith.extf %27 : vector<256x4xbf16> to vector<256x4xf32>
    %46 = arith.addf %44, %45 : vector<256x4xf32>
    %47 = arith.subf %25, %46 : vector<256x4xf32>
    %48 = math.absf %47 : vector<256x4xf32>
    %c0_19 = arith.constant 0 : index
    %c0_20 = arith.constant 0 : index
    %c0_21 = arith.constant 0 : index
    %49 = vector.load %arg6[%c0_19, %c0_20, %c0_21] : memref<1x1x1xf32, #tpu.memory_space<vmem>>, vector<1x1x1xf32>
    %50 = vector.shape_cast %48 : vector<256x4xf32> to vector<1x256x4xf32>
    %cst_22 = arith.constant dense<0.000000e+00> : vector<1xf32>
    %51 = vector.multi_reduction <add>, %50, %cst_22 [1, 2] : vector<1x256x4xf32> to vector<1xf32>
    %52 = vector.shape_cast %51 : vector<1xf32> to vector<1x1x1xf32>
    %53 = vector.extract %52[0, 0, 0] : f32 from vector<1x1x1xf32>
    %54 = vector.broadcast %53 : f32 to vector<1x1xf32>
    %55 = vector.shape_cast %54 : vector<1x1xf32> to vector<1x1x1xf32>
    %56 = arith.addf %49, %55 : vector<1x1x1xf32>
    %c0_23 = arith.constant 0 : index
    %c0_24 = arith.constant 0 : index
    %c0_25 = arith.constant 0 : index
    %57 = vector.load %arg6[%c0_23, %c0_24, %c0_25] : memref<1x1x1xf32, #tpu.memory_space<vmem>>, vector<1x1x1xf32>
    tpu.vector_store %arg6[%c0_23, %c0_24, %c0_25], %56 {strides = array<i32>} : memref<1x1x1xf32, #tpu.memory_space<vmem>>, vector<1x1x1xf32>,
    %c1_i32 = arith.constant 1 : i32
    %58 = arith.cmpi slt, %arg1, %c1_i32 : i32
    %59 = arith.extui %58 : i1 to i32
    %c0_i32_26 = arith.constant 0 : i32
    %60 = arith.cmpi ne, %59, %c0_i32_26 : i32
    scf.if %60 {
      %c4_i32 = arith.constant 4 : i32
      %61 = arith.muli %arg1, %c4_i32 : i32
      %62 = tpu.assume_multiple %61, 4 : i32
      %63 = arith.index_cast %62 : i32 to index
      %c0_27 = arith.constant 0 : index
      %64 = vector.load %arg8[%63, %c0_27] : memref<4x256xbf16, #tpu.memory_space<vmem>>, vector<4x256xbf16>
      %c0_28 = arith.constant 0 : index
      %c0_29 = arith.constant 0 : index
      %65 = vector.load %arg9[%c0_28, %c0_29] : memref<256x4xbf16, #tpu.memory_space<vmem>>, vector<256x4xbf16>
      %cst_30 = arith.constant dense<0.000000e+00> : vector<4x4xf32>
      %66 = tpu.matmul %64, %65, %cst_30 {dimension_numbers = #tpu.dot_dimension_numbers<[1], [0], [0], [1], [0, 0, 1, 1], [], []>} : vector<4x256xbf16>, vector<256x4xbf16>, vector<4x4xf32> -> vector<4x4xf32>
      %cst_31 = arith.constant dense<0xFF800000> : vector<4xf32>
      %67 = vector.multi_reduction <maximumf>, %66, %cst_31 [1] : vector<4x4xf32> to vector<4xf32>
      %68 = vector.shape_cast %67 : vector<4xf32> to vector<4x1xf32>
      %69 = vector.broadcast %68 : vector<4x1xf32> to vector<4x4xf32>
      %70 = arith.subf %69, %66 : vector<4x4xf32>
      %cst_32 = arith.constant dense<0xFF800000> : vector<4xf32>
      %71 = vector.multi_reduction <maximumf>, %70, %cst_32 [1] : vector<4x4xf32> to vector<4xf32>
      %72 = vector.shape_cast %71 : vector<4xf32> to vector<4x1xf32>
      %73 = vector.broadcast %72 : vector<4x1xf32> to vector<4x4xf32>
      %74 = arith.subf %70, %73 : vector<4x4xf32>
      %75 = math.exp %74 : vector<4x4xf32>
      %cst_33 = arith.constant dense<0.000000e+00> : vector<4xf32>
      %76 = vector.multi_reduction <add>, %75, %cst_33 [1] : vector<4x4xf32> to vector<4xf32>
      %77 = vector.shape_cast %76 : vector<4xf32> to vector<4x1xf32>
      %78 = tpu.reciprocal %77 {approx = true} : vector<4x1xf32> -> vector<4x1xf32>
      %79 = vector.broadcast %78 : vector<4x1xf32> to vector<4x4xf32>
      %80 = arith.mulf %75, %79 : vector<4x4xf32>
      %81 = arith.truncf %80 : vector<4x4xf32> to vector<4x4xbf16>
      %c0_34 = arith.constant 0 : index
      %c0_35 = arith.constant 0 : index
      %82 = vector.load %arg8[%c0_34, %c0_35] : memref<4x256xbf16, #tpu.memory_space<vmem>>, vector<4x256xbf16>
      %cst_36 = arith.constant dense<0.000000e+00> : vector<4x256xf32>
      %83 = tpu.matmul %81, %82, %cst_36 {dimension_numbers = #tpu.dot_dimension_numbers<[1], [0], [0], [1], [0, 0, 1, 1], [], []>} : vector<4x4xbf16>, vector<4x256xbf16>, vector<4x256xf32> -> vector<4x256xf32>
      %cst_37 = arith.constant 1.000000e-01 : f32
      %84 = vector.broadcast %cst_37 : f32 to vector<4x256xf32>
      %85 = arith.mulf %84, %83 : vector<4x256xf32>
      %86 = arith.extf %64 : vector<4x256xbf16> to vector<4x256xf32>
      %87 = arith.addf %85, %86 : vector<4x256xf32>
      %88 = arith.index_cast %62 : i32 to index
      %c0_38 = arith.constant 0 : index
      %89 = vector.load %arg10[%88, %c0_38] : memref<4x256xbf16, #tpu.memory_space<vmem>>, vector<4x256xbf16>
      %c0_39 = arith.constant 0 : index
      %c0_40 = arith.constant 0 : index
      %90 = vector.load %arg11[%c0_39, %c0_40] : memref<256x4xbf16, #tpu.memory_space<vmem>>, vector<256x4xbf16>
      %cst_41 = arith.constant dense<0.000000e+00> : vector<4x4xf32>
      %91 = tpu.matmul %89, %90, %cst_41 {dimension_numbers = #tpu.dot_dimension_numbers<[1], [0], [0], [1], [0, 0, 1, 1], [], []>} : vector<4x256xbf16>, vector<256x4xbf16>, vector<4x4xf32> -> vector<4x4xf32>
      %cst_42 = arith.constant dense<0xFF800000> : vector<4xf32>
      %92 = vector.multi_reduction <maximumf>, %91, %cst_42 [1] : vector<4x4xf32> to vector<4xf32>
      %93 = vector.shape_cast %92 : vector<4xf32> to vector<4x1xf32>
      %94 = vector.broadcast %93 : vector<4x1xf32> to vector<4x4xf32>
      %95 = arith.subf %94, %91 : vector<4x4xf32>
      %cst_43 = arith.constant dense<0xFF800000> : vector<4xf32>
      %96 = vector.multi_reduction <maximumf>, %95, %cst_43 [1] : vector<4x4xf32> to vector<4xf32>
      %97 = vector.shape_cast %96 : vector<4xf32> to vector<4x1xf32>
      %98 = vector.broadcast %97 : vector<4x1xf32> to vector<4x4xf32>
      %99 = arith.subf %95, %98 : vector<4x4xf32>
      %100 = math.exp %99 : vector<4x4xf32>
      %cst_44 = arith.constant dense<0.000000e+00> : vector<4xf32>
      %101 = vector.multi_reduction <add>, %100, %cst_44 [1] : vector<4x4xf32> to vector<4xf32>
      %102 = vector.shape_cast %101 : vector<4xf32> to vector<4x1xf32>
      %103 = tpu.reciprocal %102 {approx = true} : vector<4x1xf32> -> vector<4x1xf32>
      %104 = vector.broadcast %103 : vector<4x1xf32> to vector<4x4xf32>
      %105 = arith.mulf %100, %104 : vector<4x4xf32>
      %106 = arith.truncf %105 : vector<4x4xf32> to vector<4x4xbf16>
      %c0_45 = arith.constant 0 : index
      %c0_46 = arith.constant 0 : index
      %107 = vector.load %arg10[%c0_45, %c0_46] : memref<4x256xbf16, #tpu.memory_space<vmem>>, vector<4x256xbf16>
      %cst_47 = arith.constant dense<0.000000e+00> : vector<4x256xf32>
      %108 = tpu.matmul %106, %107, %cst_47 {dimension_numbers = #tpu.dot_dimension_numbers<[1], [0], [0], [1], [0, 0, 1, 1], [], []>} : vector<4x4xbf16>, vector<4x256xbf16>, vector<4x256xf32> -> vector<4x256xf32>
      %cst_48 = arith.constant 1.000000e-01 : f32
      %109 = vector.broadcast %cst_48 : f32 to vector<4x256xf32>
      %110 = arith.mulf %109, %108 : vector<4x256xf32>
      %111 = arith.extf %89 : vector<4x256xbf16> to vector<4x256xf32>
      %112 = arith.addf %110, %111 : vector<4x256xf32>
      %c0_49 = arith.constant 0 : index
      %c0_50 = arith.constant 0 : index
      %c0_51 = arith.constant 0 : index
      %113 = vector.load %arg7[%c0_49, %c0_50, %c0_51] : memref<1x1x1xf32, #tpu.memory_space<vmem>>, vector<1x1x1xf32>
      %114 = arith.subf %87, %112 : vector<4x256xf32>
      %115 = math.absf %114 : vector<4x256xf32>
      %116 = vector.shape_cast %115 : vector<4x256xf32> to vector<1x4x256xf32>
      %cst_52 = arith.constant dense<0.000000e+00> : vector<1xf32>
      %117 = vector.multi_reduction <add>, %116, %cst_52 [1, 2] : vector<1x4x256xf32> to vector<1xf32>
      %118 = vector.shape_cast %117 : vector<1xf32> to vector<1x1x1xf32>
      %119 = vector.extract %118[0, 0, 0] : f32 from vector<1x1x1xf32>
      %120 = vector.broadcast %119 : f32 to vector<1x1xf32>
      %121 = vector.shape_cast %120 : vector<1x1xf32> to vector<1x1x1xf32>
      %122 = arith.addf %113, %121 : vector<1x1x1xf32>
      %c0_53 = arith.constant 0 : index
      %c0_54 = arith.constant 0 : index
      %c0_55 = arith.constant 0 : index
      %123 = vector.load %arg7[%c0_53, %c0_54, %c0_55] : memref<1x1x1xf32, #tpu.memory_space<vmem>>, vector<1x1x1xf32>
      tpu.vector_store %arg7[%c0_53, %c0_54, %c0_55], %122 {strides = array<i32>} : memref<1x1x1xf32, #tpu.memory_space<vmem>>, vector<1x1x1xf32>,
    } else {
    }
    return
  }
  func.func @transform_0(%arg0: i32, %arg1: i32) -> (i32, i32, i32) {
    %c0_i32 = arith.constant 0 : i32
    %c0_i32_0 = arith.constant 0 : i32
    %c0_i32_1 = arith.constant 0 : i32
    return %arg0, %c0_i32, %c0_i32_0 : i32, i32, i32
  }
  func.func @transform_1(%arg0: i32, %arg1: i32) -> (i32, i32, i32) {
    %c0_i32 = arith.constant 0 : i32
    %c0_i32_0 = arith.constant 0 : i32
    %c0_i32_1 = arith.constant 0 : i32
    return %arg0, %c0_i32, %c0_i32_0 : i32, i32, i32
  }
  func.func @transform_2(%arg0: i32, %arg1: i32) -> (i32, i32, i32) {
    %c0_i32 = arith.constant 0 : i32
    %c0_i32_0 = arith.constant 0 : i32
    %c0_i32_1 = arith.constant 0 : i32
    return %arg0, %c0_i32, %c0_i32_0 : i32, i32, i32
  }
  func.func @transform_3(%arg0: i32, %arg1: i32) -> (i32, i32, i32) {
    %c0_i32 = arith.constant 0 : i32
    %c0_i32_0 = arith.constant 0 : i32
    %c0_i32_1 = arith.constant 0 : i32
    return %arg0, %c0_i32, %c0_i32_0 : i32, i32, i32
  }
  func.func @transform_4(%arg0: i32, %arg1: i32) -> (i32, i32, i32) {
    %c0_i32 = arith.constant 0 : i32
    %c0_i32_0 = arith.constant 0 : i32
    %c0_i32_1 = arith.constant 0 : i32
    return %arg0, %c0_i32, %c0_i32_0 : i32, i32, i32
  }
  func.func @transform_5(%arg0: i32, %arg1: i32) -> (i32, i32, i32) {
    %c0_i32 = arith.constant 0 : i32
    %c0_i32_0 = arith.constant 0 : i32
    %c0_i32_1 = arith.constant 0 : i32
    return %arg0, %c0_i32, %c0_i32_0 : i32, i32, i32
  }
}

</mosaic_0001>

<bundles_post_ra>
// kernel: tpu_custom_call.1
= control target key start
LH: loop header
LB: loop body
LE: loop exit
PB: predicated region body
PF: predicated region fallthrough
CT: control target
= control target key end

     0   :  { %s4921_s18 = smov 0   ;;  %s4923_s19 = smov 0   ;;  %s6905_s0 = inlined_call_operand.vmem [shape: bf16[2,4,256], index: 0, kind: input, shape index: {}]   ;;  %s6906_s1 = inlined_call_operand.vmem [shape: bf16[2,256,4], index: 1, kind: input, shape index: {}]   ;;  %s6907_s2 = inlined_call_operand.vmem [shape: bf16[2,4,256], index: 2, kind: input, shape index: {}]   ;;  %s6908_s3 = inlined_call_operand.vmem [shape: bf16[2,256,4], index: 3, kind: input, shape index: {}]   ;;  %s6909_s4 = inlined_call_operand.vmem [shape: f32[2,1,1], index: 4, kind: output, shape index: {0}]   ;;  %s6910_s5 = inlined_call_operand.vmem [shape: f32[2,1,1], index: 5, kind: output, shape index: {1}]  }
   0x1   :  { %s4925_s20 = smov 0  }
   0x2 LB: > { %s28_s21 = sadd.s32 1, %s4883_s19  ;;  %p3776_p0 = scmp.ge.s32.totalorder %s4887_s20, 1  ;;  %s4887_s20 = sphi %s4925_s20, %s16_s20   ;;  %s4883_s19 = sphi %s4923_s19, %s7387_s19   ;;  %s4879_s18 = sphi %s4921_s18, %s7386_s18  }
   0x3   : > { %p30_p1 = scmp.ge.s32.totalorder %s28_s21, 2  ;;  %p232_p2 = scmp.lt.s32.totalorder %s4887_s20, 3 }
   0x5   : > { %s7389_s21 = smov (%p30_p1, %s28_s21), 0  ;;  %p233_p3 = pnand %p3776_p0, %p232_p2 }
   0x7   : > { %236 = sbr.rel (%p233_p3) target bundleno = 2236 (0x8bc), region = 36 }
   0xe   : > { %p276_p4 = scmp.lt.s32.totalorder %s4879_s18, 1  ;;  %vm496_vm0 = vcmask 31744   ;;  %vm313_vm1 = vcmask 1043456   ;;  %vm1124_vm2 = vcmask 1041408   ;;  %vm3388_vm3 = vcmask 27648  }
   0xf   : > { %vm1041_vm4 = vcmask 0  }
  0x10   : > { %s7391_s18 = smov (!%p276_p4, %s4879_s18), 1 }
  0x11   : > { %s3834_s22 = sshll.u32 %s7391_s18, 7  ;;  %s3833_s26 = sshll.u32 %s7391_s18, 2 }
  0x12   : > { %s4947_s25 = scalar_lea.vmem %s6906_s1, %s3834_s22  ;;  %s280_s29 = scalar_lea.vmem %s6905_s0, %s3833_s26 }
  0x13   : > { %v3965_v0 = vld [vmem:[%s4947_s25 + $0x8] sm:$0xff]   ;;  %v3838_v1 = vld [vmem:[%s4947_s25] sm:$0xff]   ;;  %v3966_v2 = vld [vmem:[%s4947_s25 + $0x10] sm:$0xff]   ;;  %s5125_s7 = scalar_lea.vmem %s6908_s3, %s3834_s22  ;;  %s290_s10 = scalar_lea.vmem %s6907_s2, %s3833_s26 }
  0x14   : > { %v4952_v3 = vunpack.c.l.bf16 %v3965_v0  ;;  %v4954_v4 = vunpack.c.l.bf16 %v3838_v1  ;;  %v4956_v5 = vunpack.c.h.bf16 %v3965_v0  ;;  %v4958_v6 = vunpack.c.h.bf16 %v3838_v1  ;;  %v3967_v13 = vld [vmem:[%s4947_s25 + $0x18] sm:$0xff]   ;;  %v3968_v22 = vld [vmem:[%s4947_s25 + $0x20] sm:$0xff]   ;;  %v3969_v29 = vld [vmem:[%s4947_s25 + $0x28] sm:$0xff]   ;;  %s298_s13 = scalar_lea.vmem %s6909_s4, %s7391_s18  ;;  %s301_s17 = scalar_lea.vmem %s6910_s5, %s7391_s18 }
  0x15   : > { %v4960_v7 = vunpack.c.h.bf16 %v3966_v2  ;;  %v4962_v8 = vunpack.c.l.bf16 %v3966_v2  ;;  %v4975_v16 = vunpack.c.h.bf16 %v3967_v13  ;;  %v4977_v17 = vunpack.c.l.bf16 %v3967_v13  ;;  %v3970_v36 = vld [vmem:[%s4947_s25 + $0x30] sm:$0xff]   ;;  %v3971_v43 = vld [vmem:[%s4947_s25 + $0x38] sm:$0xff]   ;;  %v307_v46 = vld [vmem:[%s280_s29] sm:$0xf] }
  0x16   : > { %v466_v9 = vmul.f32 %v4952_v3, %v4952_v3  ;;  %v464_v10 = vmul.f32 %v4954_v4, %v4954_v4  ;;  %v467_v11 = vmul.f32 %v4956_v5, %v4956_v5  ;;  %v465_v12 = vmul.f32 %v4958_v6, %v4958_v6  ;;  %v3972_v51 = vld [vmem:[%s4947_s25 + $0x40] sm:$0xff]   ;;  %v3973_v59 = vld [vmem:[%s4947_s25 + $0x48] sm:$0xff]  }
  0x17   : > { %v469_v20 = vmul.f32 %v4960_v7, %v4960_v7  ;;  %v468_v21 = vmul.f32 %v4962_v8, %v4962_v8  ;;  %v471_v23 = vmul.f32 %v4975_v16, %v4975_v16  ;;  %v470_v24 = vmul.f32 %v4977_v17, %v4977_v17 }
  0x18   : > { %v503_v14 = vsel %vm496_vm0, %v466_v9, 0.0  ;;  %v497_v15 = vsel %vm496_vm0, %v464_v10, 0.0  ;;  %v506_v18 = vsel %vm496_vm0, %v467_v11, 0.0  ;;  %v500_v19 = vsel %vm496_vm0, %v465_v12, 0.0  ;;  %v3974_v12 = vld [vmem:[%s4947_s25 + $0x50] sm:$0xff]  }
  0x19   : > { %504 = vadd.xlane.f32.xlu1 %v503_v14  ;;  %498 = vadd.xlane.f32.xlu0 %v497_v15  ;;  %v512_v25 = vsel %vm496_vm0, %v469_v20, 0.0  ;;  %v509_v26 = vsel %vm496_vm0, %v468_v21, 0.0  ;;  %v4992_v27 = vunpack.c.h.bf16 %v3968_v22  ;;  %v4994_v28 = vunpack.c.l.bf16 %v3968_v22 }
  0x1a   : > { %v518_v30 = vsel %vm496_vm0, %v471_v23, 0.0  ;;  %v515_v31 = vsel %vm496_vm0, %v470_v24, 0.0  ;;  %v5003_v34 = vunpack.c.h.bf16 %v3969_v29  ;;  %v5005_v35 = vunpack.c.l.bf16 %v3969_v29 }
  0x1b   : > { %v473_v32 = vmul.f32 %v4992_v27, %v4992_v27  ;;  %v472_v33 = vmul.f32 %v4994_v28, %v4994_v28  ;;  %v5009_v37 = vunpack.c.h.bf16 %v3970_v36  ;;  %v5011_v38 = vunpack.c.l.bf16 %v3970_v36 }
  0x1c   : > { %v475_v41 = vmul.f32 %v5003_v34, %v5003_v34  ;;  %v474_v42 = vmul.f32 %v5005_v35, %v5005_v35  ;;  %v5027_v45 = vunpack.c.h.bf16 %v3971_v43  ;;  %v5033_v50 = vunpack.c.l.bf16 %v3971_v43  ;;  %v3976_v43 = vld [vmem:[%s4947_s25 + $0x60] sm:$0xff]  }
  0x1d   : > { %507 = vadd.xlane.f32.xlu1 %v506_v18  ;;  %501 = vadd.xlane.f32.xlu0 %v500_v19  ;;  %v524_v39 = vsel %vm496_vm0, %v473_v32, 0.0  ;;  %v521_v40 = vsel %vm496_vm0, %v472_v33, 0.0  ;;  %v477_v44 = vmul.f32 %v5009_v37, %v5009_v37  ;;  %v476_v49 = vmul.f32 %v5011_v38, %v5011_v38 }
  0x1e   : > { %v530_v47 = vsel %vm496_vm0, %v475_v41, 0.0  ;;  %v527_v48 = vsel %vm496_vm0, %v474_v42, 0.0  ;;  %v5036_v52 = vunpack.c.l.bf16 %v307_v46  ;;  %v479_v54 = vmul.f32 %v5027_v45, %v5027_v45 }
  0x1f   : > { %v536_v53 = vsel %vm496_vm0, %v477_v44, 0.0  ;;  %v5041_v55 = vunpack.c.h.bf16 %v3972_v51  ;;  %v533_v56 = vsel %vm496_vm0, %v476_v49, 0.0  ;;  %v478_v57 = vmul.f32 %v5033_v50, %v5033_v50 }
  0x20   : > { %v5046_v58 = vunpack.c.l.bf16 %v3972_v51  ;;  %v309_v60 = vmul.f32 %v5036_v52, %v5036_v52  ;;  %v542_v63 = vsel %vm496_vm0, %v479_v54, 0.0  ;;  %v5055_v1 = vunpack.c.h.bf16 %v3973_v59 }
  0x21   : > { %513 = vadd.xlane.f32.xlu1 %v512_v25  ;;  %510 = vadd.xlane.f32.xlu0 %v509_v26  ;;  %v481_v0 = vmul.f32 %v5041_v55, %v5041_v55  ;;  %v539_v9 = vsel %vm496_vm0, %v478_v57, 0.0  ;;  %v5060_v11 = vunpack.c.l.bf16 %v3973_v59  ;;  %v5064_v18 = vunpack.c.h.bf16 %v3974_v12  ;;  %v3975_v26 = vld [vmem:[%s4947_s25 + $0x58] sm:$0xff]   ;;  %v3977_v59 = vld [vmem:[%s4947_s25 + $0x68] sm:$0xff]  }
  0x22   : > { %v311_v61 = vcombine.high %v309_v60, %v309_v60  ;;  %v314_v62 = vsel %vm313_vm1, %v309_v60, 0.0  ;;  %v480_v10 = vmul.f32 %v5046_v58, %v5046_v58  ;;  %v5066_v19 = vunpack.c.l.bf16 %v3974_v12 }
  0x23   : > { %v315_v2 = vrot.slane %v314_v62, 4  ;;  %v548_v22 = vsel %vm496_vm0, %v481_v0, 0.0  ;;  %v483_v24 = vmul.f32 %v5055_v1, %v5055_v1  ;;  %v482_v25 = vmul.f32 %v5060_v11, %v5060_v11 }
  0x24   : > { %v321_v13 = vsel %vm313_vm1, %v311_v61, 0.0  ;;  %v545_v23 = vsel %vm496_vm0, %v480_v10, 0.0  ;;  %v5077_v32 = vunpack.c.h.bf16 %v3975_v26  ;;  %v484_v41 = vmul.f32 %v5066_v19, %v5066_v19  ;;  %v3978_v10 = vld [vmem:[%s4947_s25 + $0x70] sm:$0xff]  }
  0x25   : > { %519 = vadd.xlane.f32.xlu1 %v518_v30  ;;  %516 = vadd.xlane.f32.xlu0 %v515_v31  ;;  %v316_v14 = vadd.f32 %v315_v2, %v314_v62  ;;  %v322_v15 = vrot.slane %v321_v13, 4  ;;  %v485_v31 = vmul.f32 %v5064_v18, %v5064_v18  ;;  %v5083_v42 = vunpack.c.l.bf16 %v3975_v26 }
  0x26   : > { %v557_v54 = vsel %vm496_vm0, %v484_v41, 0.0  ;;  %v5094_v57 = vunpack.c.l.bf16 %v3976_v43  ;;  %v5103_v2 = vunpack.c.h.bf16 %v3977_v59  ;;  %v6911_v12 = vmov 0  }
  0x27   : > { %v317_v20 = vrot.slane %v316_v14, 2  ;;  %v323_v21 = vadd.f32 %v322_v15, %v321_v13  ;;  %1163 = vmatprep.mubr.bf16.mxu0 %v6911_v12  ;;  %v5109_v13 = vunpack.c.h.bf16 %v3978_v10 }
  0x28   : > { %v488_v0 = vmul.f32 %v5094_v57, %v5094_v57 }
  0x29   : > { %525 = vadd.xlane.f32.xlu1 %v524_v39  ;;  %522 = vadd.xlane.f32.xlu0 %v521_v40  ;;  %v318_v29 = vadd.f32 %v317_v20, %v316_v14  ;;  %v324_v30 = vrot.slane %v323_v21, 2  ;;  %v554_v39 = vsel %vm496_vm0, %v483_v24, 0.0  ;;  %v551_v40 = vsel %vm496_vm0, %v482_v25, 0.0 }
  0x2a   : > { %v5111_v14 = vunpack.c.l.bf16 %v3978_v10  ;;  %v569_v20 = vsel %vm496_vm0, %v488_v0, 0.0  ;;  %v493_v25 = vmul.f32 %v5109_v13, %v5109_v13 }
  0x2b   : > { %v319_v33 = vrot.slane %v318_v29, 1  ;;  %v325_v36 = vadd.f32 %v324_v30, %v323_v21  ;;  %v491_v21 = vmul.f32 %v5103_v2, %v5103_v2 }
  0x2c   : > { %v584_v41 = vsel %vm496_vm0, %v493_v25, 0.0 }
  0x2d   : > { %531 = vadd.xlane.f32.xlu1 %v530_v47  ;;  %528 = vadd.xlane.f32.xlu0 %v527_v48  ;;  %v320_v44 = vadd.f32 %v319_v33, %v318_v29  ;;  %v326_v46 = vrot.slane %v325_v36, 1  ;;  %v487_v47 = vmul.f32 %v5077_v32, %v5077_v32  ;;  %v5088_v48 = vunpack.c.h.bf16 %v3976_v43 }
  0x2e   : > { %v578_v29 = vsel %vm496_vm0, %v491_v21, 0.0 }
  0x2f   : > { %v327_v49 = vadd.f32 %v326_v46, %v325_v36  ;;  %v328_v51 = vmax.f32 %v320_v44, 1e-24  ;;  %v566_v61 = vsel %vm496_vm0, %v487_v47, 0.0  ;;  %v489_v62 = vmul.f32 %v5088_v48, %v5088_v48  ;;  %v3902_v36 = vld [vmem:[%s5125_s7] sm:$0xff]  }
  0x30   : > { %v5141_v44 = vunpack.c.h.bf16 %v3902_v36 }
  0x31   : > { %537 = vadd.xlane.f32.xlu1 %v536_v53  ;;  %534 = vadd.xlane.f32.xlu0 %v533_v56  ;;  %v560_v53 = vsel %vm496_vm0, %v485_v31, 0.0  ;;  %v486_v56 = vmul.f32 %v5083_v42, %v5083_v42  ;;  %v329_v60 = vmax.f32 %v327_v49, 1e-24  ;;  %4294 = vrsqrt.f32 %v328_v51 }
  0x32   : > { %v572_v15 = vsel %vm496_vm0, %v489_v62, 0.0  ;;  %v492_v31 = vmul.f32 %v5111_v14, %v5111_v14  ;;  %v5146_v49 = vunpack.c.l.bf16 %v3902_v36  ;;  %v3980_v36 = vld [vmem:[%s5125_s7 + $0x8] sm:$0xff]  }
  0x33   : > { %4296 = vrsqrt.f32 %v329_v60 }
  0x34   : > { %v581_v46 = vsel %vm496_vm0, %v492_v31, 0.0  ;;  %v785_v60 = vmul.f32 %v5146_v49, %v5146_v49 }
  0x35   : > { %543 = vadd.xlane.f32.xlu1 %v542_v63  ;;  %540 = vadd.xlane.f32.xlu0 %v539_v9  ;;  %v563_v63 = vsel %vm496_vm0, %v486_v56, 0.0  ;;  %v5105_v9 = vunpack.c.l.bf16 %v3977_v59  ;;  %v786_v59 = vmul.f32 %v5141_v44, %v5141_v44 }
  0x36   : > { %v817_v10 = vsel %vm496_vm0, %v785_v60, 0.0 }
  0x37   : > { %v820_v0 = vsel %vm496_vm0, %v786_v59, 0.0  ;;  %v3981_v59 = vld [vmem:[%s5125_s7 + $0x10] sm:$0xff]  }
  0x38   : > { %v5182_v60 = vunpack.c.h.bf16 %v3981_v59 }
  0x39   : > { %549 = vadd.xlane.f32.xlu1 %v548_v22  ;;  %546 = vadd.xlane.f32.xlu0 %v545_v23  ;;  %v490_v22 = vmul.f32 %v5105_v9, %v5105_v9  ;;  %v3979_v23 = vld [vmem:[%s4947_s25 + $0x78] sm:$0xff]  }
  0x3a   : > { %v5129_v26 = vunpack.c.h.bf16 %v3979_v23  ;;  %v5135_v33 = vunpack.c.l.bf16 %v3979_v23 }
  0x3b   : > { %v4295_v24 = vpop.eup %4294  ;;  %v575_v30 = vsel %vm496_vm0, %v490_v22, 0.0 }
  0x3c   : > { %v495_v43 = vmul.f32 %v5129_v26, %v5129_v26  ;;  %v494_v47 = vmul.f32 %v5135_v33, %v5135_v33 }
  0x3d   : > { %555 = vadd.xlane.f32.xlu1 %v554_v39  ;;  %552 = vadd.xlane.f32.xlu0 %v551_v40  ;;  %v4297_v39 = vpop.eup %4296 }
  0x3e   : > { %v334_v40 = vcombine.low %v4295_v24, %v4297_v39  ;;  %v587_v56 = vsel %vm496_vm0, %v494_v47, 0.0  ;;  %v5171_v39 = vunpack.c.h.bf16 %v3980_v36 }
  0x40   : > { %v336_v51 = vmul.f32 %v334_v40, %v5036_v52  ;;  %v354_v52 = vld [vmem:[%s290_s10] sm:$0xf]  ;;  %v5173_v40 = vunpack.c.l.bf16 %v3980_v36 }
  0x41   : > { %561 = vadd.xlane.f32.xlu1 %v560_v53  ;;  %558 = vadd.xlane.f32.xlu0 %v557_v54  ;;  %v590_v54 = vsel %vm496_vm0, %v495_v43, 0.0  ;;  %v5160_v62 = vunpack.c.l.bf16 %v354_v52  ;;  %v788_v43 = vmul.f32 %v5171_v39, %v5171_v39 }
  0x42   : > { %v338_v53 = vcombine.high %v336_v51, %v336_v51 }
  0x45   : > { %567 = vadd.xlane.f32.xlu1 %v566_v61  ;;  %564 = vadd.xlane.f32.xlu0 %v563_v63  ;;  %v3785_v61 = vpack.c.bf16 %v338_v53, %v336_v51  ;;  %v356_v63 = vmul.f32 %v5160_v62, %v5160_v62  ;;  %v826_v51 = vsel %vm496_vm0, %v788_v43, 0.0 }
  0x47   : > { %3786 = vst.sshfl [vmem:[#allocation2] sm:$0x33 pattern:$0x76325410] %v3785_v61  ;;  %v5184_v61 = vunpack.c.l.bf16 %v3981_v59 }
  0x49   : > { %573 = vadd.xlane.f32.xlu1 %v572_v15  ;;  %570 = vadd.xlane.f32.xlu0 %v569_v20  ;;  %v358_v15 = vcombine.high %v356_v63, %v356_v63  ;;  %v360_v20 = vsel %vm313_vm1, %v356_v63, 0.0  ;;  %v790_v63 = vmul.f32 %v5182_v60, %v5182_v60 }
  0x4a   : > { %v361_v22 = vrot.slane %v360_v20, 4 }
  0x4b   : > { %v367_v21 = vsel %vm313_vm1, %v358_v15, 0.0  ;;  %v832_v15 = vsel %vm496_vm0, %v790_v63, 0.0 }
  0x4c   : > { %v368_v24 = vrot.slane %v367_v21, 4 }
  0x4d   : > { %579 = vadd.xlane.f32.xlu1 %v578_v29  ;;  %576 = vadd.xlane.f32.xlu0 %v575_v30  ;;  %v362_v30 = vadd.f32 %v361_v22, %v360_v20 }
  0x4e   : > { %v3789_v23 = vld.sshfl [vmem:[#allocation2] sm:$0x33 pattern:$0x76325410]  ;;  %v369_v31 = vadd.f32 %v368_v24, %v367_v21 }
  0x4f   : > { %v1074_v25 = vcombine.high %v3789_v23, %v3789_v23  ;;  %v1126_v29 = vsel %vm1124_vm2, %v3789_v23, 0  ;;  %v3982_v23 = vld [vmem:[%s5125_s7 + $0x18] sm:$0xff]  }
  0x50   : > { %v370_v47 = vrot.slane %v369_v31, 2  ;;  %v5193_v24 = vunpack.c.h.bf16 %v3982_v23 }
  0x51   : > { %585 = vadd.xlane.f32.xlu1 %v584_v41  ;;  %582 = vadd.xlane.f32.xlu0 %v581_v46  ;;  %v363_v41 = vrot.slane %v362_v30, 2  ;;  %v787_v46 = vmul.f32 %v5173_v40, %v5173_v40 }
  0x52   : > { %3790 = vmatprep.subr.msk.bf16.mxu0 %vm1124_vm2, %v1074_v25  ;;  %v5195_v25 = vunpack.c.l.bf16 %v3982_v23 }
  0x53   : > { %1132 = vmatpush1.bf16.msra.mxu0 %v1126_v29  ;;  %v823_v53 = vsel %vm496_vm0, %v787_v46, 0.0  ;;  %v3983_v46 = vld [vmem:[%s5125_s7 + $0x20] sm:$0xff]  }
  0x55   : > { %591 = vadd.xlane.f32.xlu1 %v590_v54  ;;  %588 = vadd.xlane.f32.xlu0 %v587_v56  ;;  %v364_v54 = vadd.f32 %v363_v41, %v362_v30  ;;  %v371_v56 = vadd.f32 %v370_v47, %v369_v31  ;;  %v792_v30 = vmul.f32 %v5193_v24, %v5193_v24  ;;  %v5204_v47 = vunpack.c.h.bf16 %v3983_v46 }
  0x56   : > { %v791_v31 = vmul.f32 %v5195_v25, %v5195_v25 }
  0x57   : > { %v365_v52 = vrot.slane %v364_v54, 1  ;;  %v838_v41 = vsel %vm496_vm0, %v792_v30, 0.0 }
  0x58   : > { %v835_v43 = vsel %vm496_vm0, %v791_v31, 0.0 }
  0x59   : > { %821 = vadd.xlane.f32.xlu1 %v820_v0  ;;  %818 = vadd.xlane.f32.xlu0 %v817_v10  ;;  %v789_v0 = vmul.f32 %v5184_v61, %v5184_v61  ;;  %v372_v10 = vrot.slane %v371_v56, 1  ;;  %v366_v21 = vadd.f32 %v365_v52, %v364_v54 }
  0x5b   : > { %v829_v20 = vsel %vm496_vm0, %v789_v0, 0.0  ;;  %v373_v22 = vadd.f32 %v372_v10, %v371_v56  ;;  %v374_v29 = vmax.f32 %v366_v21, 1e-24  ;;  %v3984_v0 = vld [vmem:[%s5125_s7 + $0x28] sm:$0xff]  }
  0x5c   : > { %v5215_v10 = vunpack.c.h.bf16 %v3984_v0 }
  0x5d   : > { %827 = vadd.xlane.f32.xlu1 %v826_v51  ;;  %824 = vadd.xlane.f32.xlu0 %v823_v53  ;;  %v375_v36 = vmax.f32 %v373_v22, 1e-24  ;;  %4298 = vrsqrt.f32 %v374_v29  ;;  %v5206_v51 = vunpack.c.l.bf16 %v3983_v46  ;;  %v794_v53 = vmul.f32 %v5204_v47, %v5204_v47 }
  0x5e   : > { %v796_v21 = vmul.f32 %v5215_v10, %v5215_v10 }
  0x5f   : > { %4300 = vrsqrt.f32 %v375_v36  ;;  %v793_v54 = vmul.f32 %v5206_v51, %v5206_v51  ;;  %v844_v56 = vsel %vm496_vm0, %v794_v53, 0.0 }
  0x60   : > { %v850_v29 = vsel %vm496_vm0, %v796_v21, 0.0 }
  0x61   : > { %833 = vadd.xlane.f32.xlu1 %v832_v15  ;;  %830 = vadd.xlane.f32.xlu0 %v829_v20  ;;  %v841_v59 = vsel %vm496_vm0, %v793_v54, 0.0  ;;  %v5217_v15 = vunpack.c.l.bf16 %v3984_v0 }
  0x63   : > { %v795_v22 = vmul.f32 %v5217_v15, %v5217_v15 }
  0x65   : > { %839 = vadd.xlane.f32.xlu1 %v838_v41  ;;  %836 = vadd.xlane.f32.xlu0 %v835_v43  ;;  %v847_v30 = vsel %vm496_vm0, %v795_v22, 0.0  ;;  %v3985_v41 = vld [vmem:[%s5125_s7 + $0x30] sm:$0xff]  }
  0x66   : > { %v5227_v43 = vunpack.c.h.bf16 %v3985_v41  ;;  %v5229_v46 = vunpack.c.l.bf16 %v3985_v41 }
  0x67   : > { %v4299_v52 = vpop.eup %4298 }
  0x68   : > { %7058 = vst [vmem:[#allocation6_spill] sm:$0xff] %v5229_v46  ;;  %v798_v53 = vmul.f32 %v5227_v43, %v5227_v43 }
  0x69   : > { %845 = vadd.xlane.f32.xlu1 %v844_v56  ;;  %842 = vadd.xlane.f32.xlu0 %v841_v59  ;;  %v4301_v63 = vpop.eup %4300  ;;  %v3986_v59 = vld [vmem:[%s5125_s7 + $0x38] sm:$0xff]  }
  0x6a   : > { %v380_v20 = vcombine.low %v4299_v52, %v4301_v63  ;;  %v856_v54 = vsel %vm496_vm0, %v798_v53, 0.0  ;;  %v5240_v63 = vunpack.c.h.bf16 %v3986_v59  ;;  %v5242_v0 = vunpack.c.l.bf16 %v3986_v59 }
  0x6c   : > { %v382_v23 = vmul.f32 %v380_v20, %v5160_v62  ;;  %v797_v62 = vmul.f32 %v5229_v46, %v5229_v46  ;;  %7059 = vst [vmem:[#allocation7_spill] sm:$0xff] %v5240_v63  ;;  %7060 = vst [vmem:[#allocation8_spill] sm:$0xff] %v5242_v0  ;;  %v800_v21 = vmul.f32 %v5240_v63, %v5240_v63 }
  0x6d   : > { %851 = vadd.xlane.f32.xlu1 %v850_v29  ;;  %848 = vadd.xlane.f32.xlu0 %v847_v30  ;;  %v799_v22 = vmul.f32 %v5242_v0, %v5242_v0 }
  0x6e   : > { %v384_v31 = vcombine.high %v382_v23, %v382_v23  ;;  %v853_v56 = vsel %vm496_vm0, %v797_v62, 0.0 }
  0x6f   : > { %v859_v29 = vsel %vm496_vm0, %v799_v22, 0.0 }
  0x70   : > { %v3787_v36 = vpack.c.bf16 %v384_v31, %v382_v23  ;;  %v862_v23 = vsel %vm496_vm0, %v800_v21, 0.0 }
  0x71   : > { %857 = vadd.xlane.f32.xlu1 %v856_v54  ;;  %854 = vadd.xlane.f32.xlu0 %v853_v56 }
  0x72   : > { %3788 = vst.sshfl [vmem:[#allocation4] sm:$0x33 pattern:$0x76325410] %v3787_v36 }
  0x75   : > { %863 = vadd.xlane.f32.xlu1 %v862_v23  ;;  %860 = vadd.xlane.f32.xlu0 %v859_v29 }
  0x79   : > { %v5238_v52 = vld.sshfl [vmem:[#allocation4] sm:$0x33 pattern:$0x76325410] }
  0x7a   : > { %v2136_v20 = vcombine.high %v5238_v52, %v5238_v52 }
  0x7c   : > { %3808 = vmatprep.subr.msk.bf16.mxu0 %vm1124_vm2, %v2136_v20 }
  0xa6   : > { %v505_v30 = vpop.xlane.xlu1 %504  ;;  %v499_v31 = vpop.xlane.xlu0 %498 }
  0xa7   : > { %v595_v36 = vmax.f32 %v505_v30, 1e-24  ;;  %v593_v41 = vmax.f32 %v499_v31, 1e-24 }
  0xa9   : > { %4302 = vrsqrt.f32 %v595_v36 }
  0xaa   : > { %v508_v53 = vpop.xlane.xlu1 %507  ;;  %v502_v62 = vpop.xlane.xlu0 %501  ;;  %4304 = vrsqrt.f32 %v593_v41 }
  0xab   : > { %v596_v54 = vmax.f32 %v508_v53, 1e-24  ;;  %v594_v56 = vmax.f32 %v502_v62, 1e-24 }
  0xad   : > { %4306 = vrsqrt.f32 %v596_v54 }
  0xae   : > { %4308 = vrsqrt.f32 %v594_v56  ;;  %v514_v59 = vpop.xlane.xlu1 %513  ;;  %v511_v20 = vpop.xlane.xlu0 %510 }
  0xaf   : > { %v598_v12 = vmax.f32 %v514_v59, 1e-24  ;;  %v597_v21 = vmax.f32 %v511_v20, 1e-24 }
  0xb1   : > { %4310 = vrsqrt.f32 %v598_v12 }
  0xb2   : > { %4312 = vrsqrt.f32 %v597_v21  ;;  %v520_v22 = vpop.xlane.xlu1 %519  ;;  %v517_v23 = vpop.xlane.xlu0 %516 }
  0xb3   : > { %v4303_v29 = vpop.eup %4302  ;;  %v600_v0 = vmax.f32 %v520_v22, 1e-24  ;;  %v599_v30 = vmax.f32 %v517_v23, 1e-24 }
  0xb4   : > { %v4305_v31 = vpop.eup %4304  ;;  %v659_v36 = vmul.f32 %v4303_v29, %v4952_v3 }
  0xb5   : > { %4314 = vrsqrt.f32 %v600_v0  ;;  %v657_v12 = vmul.f32 %v4305_v31, %v4954_v4 }
  0xb6   : > { %4316 = vrsqrt.f32 %v599_v30  ;;  %v526_v53 = vpop.xlane.xlu1 %525  ;;  %v523_v41 = vpop.xlane.xlu0 %522 }
  0xb7   : > { %v4307_v62 = vpop.eup %4306  ;;  %v602_v54 = vmax.f32 %v526_v53, 1e-24  ;;  %v601_v56 = vmax.f32 %v523_v41, 1e-24 }
  0xb8   : > { %v4309_v63 = vpop.eup %4308  ;;  %v660_v59 = vmul.f32 %v4307_v62, %v4956_v5 }
  0xb9   : > { %v658_v20 = vmul.f32 %v4309_v63, %v4958_v6  ;;  %4318 = vrsqrt.f32 %v602_v54 }
  0xba   : > { %v690_v21 = vpack.c.bf16 %v660_v59, %v659_v36  ;;  %4320 = vrsqrt.f32 %v601_v56  ;;  %v532_v0 = vpop.xlane.xlu1 %531  ;;  %v529_v22 = vpop.xlane.xlu0 %528 }
  0xbb   : > { %v4311_v23 = vpop.eup %4310  ;;  %v689_v3 = vpack.c.bf16 %v658_v20, %v657_v12  ;;  %v604_v29 = vmax.f32 %v532_v0, 1e-24  ;;  %v603_v30 = vmax.f32 %v529_v22, 1e-24 }
  0xbc   : > { %v4313_v46 = vpop.eup %4312  ;;  %706 = vst.msk [vmem:[#allocation3 + $0x8] sm:$0xff] %vm496_vm0, %v690_v21  ;;  %v662_v53 = vmul.f32 %v4311_v23, %v4960_v7  ;;  %v2186_v21 = vsel %vm1124_vm2, %v5238_v52, 0 }
  0xbd   : > { %705 = vst.msk [vmem:[#allocation3] sm:$0xff] %vm496_vm0, %v689_v3  ;;  %v661_v4 = vmul.f32 %v4313_v46, %v4962_v8  ;;  %4322 = vrsqrt.f32 %v604_v29  ;;  %v7061_v29 = vmov 0  }
  0xbe   : > { %4324 = vrsqrt.f32 %v603_v30  ;;  %v538_v5 = vpop.xlane.xlu1 %537  ;;  %v535_v6 = vpop.xlane.xlu0 %534 }
  0xbf   : > { %v4315_v63 = vpop.eup %4314  ;;  %v691_v31 = vpack.c.bf16 %v662_v53, %v661_v4  ;;  %v606_v36 = vmax.f32 %v538_v5, 1e-24  ;;  %v605_v41 = vmax.f32 %v535_v6, 1e-24 }
  0xc0   : > { %v4317_v62 = vpop.eup %4316  ;;  %v664_v54 = vmul.f32 %v4315_v63, %v4975_v16 }
  0xc1   : > { %707 = vst.msk [vmem:[#allocation3 + $0x10] sm:$0xff] %vm496_vm0, %v691_v31  ;;  %v663_v56 = vmul.f32 %v4317_v62, %v4977_v17  ;;  %4326 = vrsqrt.f32 %v606_v36 }
  0xc2   : > { %4328 = vrsqrt.f32 %v605_v41  ;;  %v544_v7 = vpop.xlane.xlu1 %543  ;;  %v541_v59 = vpop.xlane.xlu0 %540 }
  0xc3   : > { %v4319_v8 = vpop.eup %4318  ;;  %v692_v46 = vpack.c.bf16 %v664_v54, %v663_v56  ;;  %v608_v12 = vmax.f32 %v544_v7, 1e-24  ;;  %v607_v20 = vmax.f32 %v541_v59, 1e-24  ;;  %v5278_v7 = vld [vmem:[#allocation3 + $0x8] sm:$0xff] }
  0xc4   : > { %v4321_v0 = vpop.eup %4320  ;;  %v666_v22 = vmul.f32 %v4319_v8, %v4992_v27  ;;  %v5267_v23 = vld [vmem:[#allocation3] sm:$0xff] }
  0xc5   : > { %708 = vst.msk [vmem:[#allocation3 + $0x18] sm:$0xff] %vm496_vm0, %v692_v46  ;;  %v665_v16 = vmul.f32 %v4321_v0, %v4994_v28  ;;  %4330 = vrsqrt.f32 %v608_v12  ;;  %3791 = vmatmul.mubr.msk.bf16.vlgmr.msra.gmra.mrb[0].mxu0 %vm496_vm0, %v5267_v23 }
  0xc6   : > { %4332 = vrsqrt.f32 %v607_v20  ;;  %v550_v17 = vpop.xlane.xlu1 %549  ;;  %v547_v3 = vpop.xlane.xlu0 %546  ;;  %1173 = vmatprep.mubr.bf16.mxu0 %v7061_v29  ;;  %2192 = vmatpush1.bf16.msra.mxu0 %v2186_v21 }
  0xc7   : > { %v4323_v52 = vpop.eup %4322  ;;  %v693_v30 = vpack.c.bf16 %v666_v22, %v665_v16  ;;  %v610_v53 = vmax.f32 %v550_v17, 1e-24  ;;  %v609_v27 = vmax.f32 %v547_v3, 1e-24 }
  0xc8   : > { %v4325_v4 = vpop.eup %4324  ;;  %v668_v5 = vmul.f32 %v4323_v52, %v5003_v34  ;;  %v5288_v16 = vld [vmem:[#allocation3 + $0x10] sm:$0xff] }
  0xc9   : > { %709 = vst.msk [vmem:[#allocation3 + $0x20] sm:$0xff] %vm496_vm0, %v693_v30  ;;  %v667_v28 = vmul.f32 %v4325_v4, %v5005_v35  ;;  %4334 = vrsqrt.f32 %v610_v53 }
  0xca   : > { %4336 = vrsqrt.f32 %v609_v27  ;;  %v556_v6 = vpop.xlane.xlu1 %555  ;;  %v553_v63 = vpop.xlane.xlu0 %552 }
  0xcb   : > { %v4327_v31 = vpop.eup %4326  ;;  %v694_v36 = vpack.c.bf16 %v668_v5, %v667_v28  ;;  %v612_v41 = vmax.f32 %v556_v6, 1e-24  ;;  %v611_v62 = vmax.f32 %v553_v63, 1e-24 }
  0xcc   : > { %v4329_v54 = vpop.eup %4328  ;;  %v670_v56 = vmul.f32 %v4327_v31, %v5009_v37 }
  0xcd   : > { %710 = vst.msk [vmem:[#allocation3 + $0x28] sm:$0xff] %vm496_vm0, %v694_v36  ;;  %v669_v34 = vmul.f32 %v4329_v54, %v5011_v38  ;;  %4338 = vrsqrt.f32 %v612_v41  ;;  %3792 = vmatmul.mubr.msk.bf16.gmra.mrb[4].mxu0 %vm496_vm0, %v5278_v7  ;;  %v3987_v54 = vld [vmem:[%s5125_s7 + $0x40] sm:$0xff]  }
  0xce   : > { %4340 = vrsqrt.f32 %v611_v62  ;;  %v562_v35 = vpop.xlane.xlu1 %561  ;;  %v559_v59 = vpop.xlane.xlu0 %558  ;;  %1183 = vmatprep.mubr.bf16.mxu0 %v7061_v29  ;;  %v5299_v62 = vld [vmem:[#allocation3 + $0x18] sm:$0xff] }
  0xcf   : > { %v4331_v8 = vpop.eup %4330  ;;  %v695_v46 = vpack.c.bf16 %v670_v56, %v669_v34  ;;  %v614_v12 = vmax.f32 %v562_v35, 1e-24  ;;  %v613_v20 = vmax.f32 %v559_v59, 1e-24 }
  0xd0   : > { %v4333_v37 = vpop.eup %4332  ;;  %v672_v21 = vmul.f32 %v4331_v8, %v5027_v45  ;;  %v5302_v8 = vunpack.c.h.bf16 %v3987_v54 }
  0xd1   : > { %711 = vst.msk [vmem:[#allocation3 + $0x30] sm:$0xff] %vm496_vm0, %v695_v46  ;;  %v671_v38 = vmul.f32 %v4333_v37, %v5033_v50  ;;  %4342 = vrsqrt.f32 %v614_v12  ;;  %v5305_v12 = vunpack.c.l.bf16 %v3987_v54 }
  0xd2   : > { %4344 = vrsqrt.f32 %v613_v20  ;;  %v568_v0 = vpop.xlane.xlu1 %567  ;;  %v565_v22 = vpop.xlane.xlu0 %564  ;;  %v802_v20 = vmul.f32 %v5302_v8, %v5302_v8 }
  0xd3   : > { %v4335_v17 = vpop.eup %4334  ;;  %v696_v3 = vpack.c.bf16 %v672_v21, %v671_v38  ;;  %v616_v52 = vmax.f32 %v568_v0, 1e-24  ;;  %v615_v30 = vmax.f32 %v565_v22, 1e-24 }
  0xd4   : > { %v4337_v53 = vpop.eup %4336  ;;  %v674_v27 = vmul.f32 %v4335_v17, %v5041_v55 }
  0xd5   : > { %712 = vst.msk [vmem:[#allocation3 + $0x38] sm:$0xff] %vm496_vm0, %v696_v3  ;;  %v673_v45 = vmul.f32 %v4337_v53, %v5046_v58  ;;  %4346 = vrsqrt.f32 %v616_v52  ;;  %3793 = vmatmul.mubr.msk.bf16.gmra.mrb[8].mxu0 %vm496_vm0, %v5288_v16 }
  0xd6   : > { %4348 = vrsqrt.f32 %v615_v30  ;;  %v574_v50 = vpop.xlane.xlu1 %573  ;;  %v571_v4 = vpop.xlane.xlu0 %570  ;;  %1193 = vmatprep.mubr.bf16.mxu0 %v7061_v29 }
  0xd7   : > { %v4339_v5 = vpop.eup %4338  ;;  %v697_v28 = vpack.c.bf16 %v674_v27, %v673_v45  ;;  %v618_v6 = vmax.f32 %v574_v50, 1e-24  ;;  %v617_v63 = vmax.f32 %v571_v4, 1e-24  ;;  %v5324_v45 = vld [vmem:[#allocation3 + $0x20] sm:$0xff] }
  0xd8   : > { %v4341_v31 = vpop.eup %4340  ;;  %v676_v55 = vmul.f32 %v4339_v5, %v5055_v1  ;;  %v3988_v4 = vld [vmem:[%s5125_s7 + $0x48] sm:$0xff]   ;;  %v3989_v5 = vld [vmem:[%s5125_s7 + $0x50] sm:$0xff]  }
  0xd9   : > { %713 = vst.msk [vmem:[#allocation3 + $0x40] sm:$0xff] %vm496_vm0, %v697_v28  ;;  %v675_v58 = vmul.f32 %v4341_v31, %v5060_v11  ;;  %4350 = vrsqrt.f32 %v618_v6  ;;  %v3990_v28 = vld [vmem:[%s5125_s7 + $0x58] sm:$0xff]   ;;  %v5336_v54 = vunpack.c.l.bf16 %v3988_v4 }
  0xda   : > { %4352 = vrsqrt.f32 %v617_v63  ;;  %v580_v36 = vpop.xlane.xlu1 %579  ;;  %v577_v41 = vpop.xlane.xlu0 %576 }
  0xdb   : > { %v4343_v56 = vpop.eup %4342  ;;  %v698_v34 = vpack.c.bf16 %v676_v55, %v675_v58  ;;  %v620_v35 = vmax.f32 %v580_v36, 1e-24  ;;  %v619_v59 = vmax.f32 %v577_v41, 1e-24  ;;  %v5331_v55 = vunpack.c.h.bf16 %v3988_v4 }
  0xdc   : > { %v4345_v46 = vpop.eup %4344  ;;  %v678_v1 = vmul.f32 %v4343_v56, %v5064_v18  ;;  %v801_v18 = vmul.f32 %v5305_v12, %v5305_v12  ;;  %v5338_v56 = vunpack.c.h.bf16 %v3989_v5 }
  0xdd   : > { %714 = vst.msk [vmem:[#allocation3 + $0x48] sm:$0xff] %vm496_vm0, %v698_v34  ;;  %v677_v11 = vmul.f32 %v4345_v46, %v5066_v19  ;;  %4354 = vrsqrt.f32 %v620_v35  ;;  %3794 = vmatmul.mubr.msk.bf16.gmra.mrb[12].mxu0 %vm496_vm0, %v5299_v62  ;;  %v868_v19 = vsel %vm496_vm0, %v802_v20, 0.0  ;;  %v5340_v34 = vunpack.c.l.bf16 %v3989_v5  ;;  %v3992_v5 = vld [vmem:[%s5125_s7 + $0x68] sm:$0xff]  }
  0xde   : > { %4356 = vrsqrt.f32 %v619_v59  ;;  %v586_v37 = vpop.xlane.xlu1 %585  ;;  %v583_v21 = vpop.xlane.xlu0 %582  ;;  %1203 = vmatprep.mubr.bf16.mxu0 %v7061_v29  ;;  %869 = vadd.xlane.f32.xlu1 %v868_v19  ;;  %v865_v53 = vsel %vm496_vm0, %v801_v18, 0.0  ;;  %v5349_v59 = vunpack.c.h.bf16 %v3990_v28 }
  0xdf   : > { %v4347_v38 = vpop.eup %4346  ;;  %v699_v0 = vpack.c.bf16 %v678_v1, %v677_v11  ;;  %v622_v22 = vmax.f32 %v586_v37, 1e-24  ;;  %v621_v17 = vmax.f32 %v583_v21, 1e-24  ;;  %866 = vadd.xlane.f32.xlu0 %v865_v53  ;;  %v806_v11 = vmul.f32 %v5338_v56, %v5338_v56 }
  0xe0   : > { %v4349_v3 = vpop.eup %4348  ;;  %v680_v52 = vmul.f32 %v4347_v38, %v5077_v32  ;;  %v5318_v30 = vld [vmem:[#allocation3 + $0x40] sm:$0xff]  ;;  %v805_v53 = vmul.f32 %v5340_v34, %v5340_v34 }
  0xe1   : > { %715 = vst.msk [vmem:[#allocation3 + $0x50] sm:$0xff] %vm496_vm0, %v699_v0  ;;  %v679_v27 = vmul.f32 %v4349_v3, %v5083_v42  ;;  %4358 = vrsqrt.f32 %v622_v22  ;;  %3995 = vmatprep.subr.bf16.mxu1 %v5318_v30  ;;  %4219 = vmatprep.subr.bf16.mxu0 %v5318_v30  ;;  %v3991_v0 = vld [vmem:[%s5125_s7 + $0x60] sm:$0xff]  }
  0xe2   : > { %4360 = vrsqrt.f32 %v621_v17  ;;  %3996 = vmatpush3.bf16.msra.mxu1 %v5267_v23  ;;  %v592_v32 = vpop.xlane.xlu1 %591  ;;  %v589_v50 = vpop.xlane.xlu0 %588  ;;  %v5376_v4 = vunpack.c.h.bf16 %v3991_v0 }
  0xe3   : > { %v4351_v6 = vpop.eup %4350  ;;  %v700_v63 = vpack.c.bf16 %v680_v52, %v679_v27  ;;  %v624_v31 = vmax.f32 %v592_v32, 1e-24  ;;  %v623_v42 = vmax.f32 %v589_v50, 1e-24  ;;  %v880_v52 = vsel %vm496_vm0, %v806_v11, 0.0  ;;  %v5374_v50 = vld [vmem:[#allocation3 + $0x28] sm:$0xff] }
  0xe4   : > { %v4353_v58 = vpop.eup %4352  ;;  %v682_v36 = vmul.f32 %v4351_v6, %v5088_v48  ;;  %v5334_v41 = vld [vmem:[#allocation3 + $0x48] sm:$0xff]  ;;  %v804_v48 = vmul.f32 %v5331_v55, %v5331_v55  ;;  %v5371_v32 = vunpack.c.l.bf16 %v3990_v28  ;;  %v877_v28 = vsel %vm496_vm0, %v805_v53, 0.0 }
  0xe5   : > { %716 = vst.msk [vmem:[#allocation3 + $0x58] sm:$0xff] %vm496_vm0, %v700_v63  ;;  %v681_v35 = vmul.f32 %v4353_v58, %v5094_v57  ;;  %4362 = vrsqrt.f32 %v624_v31  ;;  %3795 = vmatmul.mubr.msk.bf16.gmra.mrb[16].mxu0 %vm496_vm0, %v5324_v45  ;;  %3997 = vmatprep.subr.bf16.mxu1 %v5334_v41  ;;  %v803_v57 = vmul.f32 %v5336_v54, %v5336_v54 }
  0xe6   : > { %4364 = vrsqrt.f32 %v623_v42  ;;  %3998 = vmatpush3.bf16.msra.mxu1 %v5278_v7  ;;  %1213 = vmatprep.mubr.bf16.mxu0 %v7061_v29  ;;  %v822_v46 = vpop.xlane.xlu1 %821  ;;  %v819_v1 = vpop.xlane.xlu0 %818  ;;  %v874_v38 = vsel %vm496_vm0, %v804_v48, 0.0 }
  0xe7   : > { %v4355_v20 = vpop.eup %4354  ;;  %v701_v37 = vpack.c.bf16 %v682_v36, %v681_v35  ;;  %v914_v21 = vmax.f32 %v822_v46, 1e-24  ;;  %v913_v18 = vmax.f32 %v819_v1, 1e-24  ;;  %875 = vadd.xlane.f32.xlu1 %v874_v38  ;;  %v871_v3 = vsel %vm496_vm0, %v803_v57, 0.0  ;;  %v3993_v1 = vld [vmem:[%s5125_s7 + $0x70] sm:$0xff]  }
  0xe8   : > { %v4357_v22 = vpop.eup %4356  ;;  %v684_v17 = vmul.f32 %v4355_v20, %v5103_v2  ;;  %v5360_v19 = vld [vmem:[#allocation3 + $0x50] sm:$0xff]  ;;  %872 = vadd.xlane.f32.xlu0 %v871_v3  ;;  %v808_v2 = vmul.f32 %v5349_v59, %v5349_v59  ;;  %v807_v36 = vmul.f32 %v5371_v32, %v5371_v32  ;;  %v5395_v46 = vunpack.c.h.bf16 %v3992_v5 }
  0xe9   : > { %717 = vst.msk [vmem:[#allocation3 + $0x60] sm:$0xff] %vm496_vm0, %v701_v37  ;;  %v683_v27 = vmul.f32 %v4357_v22, %v5105_v9  ;;  %3999 = vmatprep.subr.bf16.mxu1 %v5360_v19  ;;  %4366 = vrsqrt.f32 %v914_v21  ;;  %v5379_v9 = vunpack.c.l.bf16 %v3991_v0  ;;  %v5402_v20 = vunpack.c.l.bf16 %v3992_v5 }
  0xea   : > { %4000 = vmatpush3.bf16.msra.mxu1 %v5288_v16  ;;  %4368 = vrsqrt.f32 %v913_v18  ;;  %v886_v48 = vsel %vm496_vm0, %v808_v2, 0.0  ;;  %v883_v38 = vsel %vm496_vm0, %v807_v36, 0.0  ;;  %v5414_v3 = vunpack.c.h.bf16 %v3993_v1  ;;  %v828_v2 = vpop.xlane.xlu1 %827  ;;  %v825_v5 = vpop.xlane.xlu0 %824 }
  0xeb   : > { %v4359_v6 = vpop.eup %4358  ;;  %v702_v63 = vpack.c.bf16 %v684_v17, %v683_v27  ;;  %881 = vadd.xlane.f32.xlu1 %v880_v52  ;;  %v812_v17 = vmul.f32 %v5395_v46, %v5395_v46  ;;  %v3994_v52 = vld [vmem:[%s5125_s7 + $0x78] sm:$0xff]   ;;  %v915_v36 = vmax.f32 %v825_v5, 1e-24 }
  0xec   : > { %v4361_v31 = vpop.eup %4360  ;;  %v686_v42 = vmul.f32 %v4359_v6, %v5109_v13  ;;  %v5382_v58 = vld [vmem:[#allocation3 + $0x58] sm:$0xff]  ;;  %v810_v13 = vmul.f32 %v5376_v4, %v5376_v4  ;;  %878 = vadd.xlane.f32.xlu0 %v877_v28  ;;  %v811_v6 = vmul.f32 %v5402_v20, %v5402_v20  ;;  %v916_v28 = vmax.f32 %v828_v2, 1e-24 }
  0xed   : > { %718 = vst.msk [vmem:[#allocation3 + $0x68] sm:$0xff] %vm496_vm0, %v702_v63  ;;  %v685_v35 = vmul.f32 %v4361_v31, %v5111_v14  ;;  %3796 = vmatmul.mubr.msk.bf16.gmra.mrb[20].mxu0 %vm496_vm0, %v5374_v50  ;;  %4001 = vmatprep.subr.bf16.mxu1 %v5382_v58  ;;  %v809_v14 = vmul.f32 %v5379_v9, %v5379_v9 }
  0xee   : > { %4002 = vmatpush3.bf16.msra.mxu1 %v5299_v62  ;;  %1223 = vmatprep.mubr.bf16.mxu0 %v7061_v29  ;;  %v892_v22 = vsel %vm496_vm0, %v810_v13, 0.0  ;;  %v898_v13 = vsel %vm496_vm0, %v812_v17, 0.0  ;;  %4370 = vrsqrt.f32 %v916_v28  ;;  %v831_v17 = vpop.xlane.xlu0 %830 }
  0xef   : > { %v4363_v57 = vpop.eup %4362  ;;  %v703_v11 = vpack.c.bf16 %v686_v42, %v685_v35  ;;  %887 = vadd.xlane.f32.xlu1 %v886_v48  ;;  %v5426_v35 = vunpack.c.l.bf16 %v3993_v1  ;;  %4372 = vrsqrt.f32 %v915_v36 }
  0xf0   : > { %v4365_v37 = vpop.eup %4364  ;;  %v688_v21 = vmul.f32 %v4363_v57, %v5129_v26  ;;  %v5405_v18 = vld [vmem:[#allocation3 + $0x60] sm:$0xff]  ;;  %v5417_v26 = vld [vmem:[#allocation3 + $0x30] sm:$0xff]  ;;  %884 = vadd.xlane.f32.xlu0 %v883_v38  ;;  %v814_v57 = vmul.f32 %v5414_v3, %v5414_v3 }
  0xf1   : > { %719 = vst.msk [vmem:[#allocation3 + $0x70] sm:$0xff] %vm496_vm0, %v703_v11  ;;  %v687_v0 = vmul.f32 %v4365_v37, %v5135_v33  ;;  %4003 = vmatprep.subr.bf16.mxu1 %v5405_v18  ;;  %v889_v33 = vsel %vm496_vm0, %v809_v14, 0.0  ;;  %v813_v14 = vmul.f32 %v5426_v35, %v5426_v35  ;;  %v5445_v37 = vunpack.c.l.bf16 %v3994_v52 }
  0xf2   : > { %4004 = vmatpush3.bf16.msra.mxu1 %v5324_v45 }
  0xf3   : > { %v4367_v53 = vpop.eup %4366  ;;  %v704_v27 = vpack.c.bf16 %v688_v21, %v687_v0  ;;  %893 = vadd.xlane.f32.xlu1 %v892_v22  ;;  %v904_v21 = vsel %vm496_vm0, %v814_v57, 0.0  ;;  %v5453_v0 = vld [vmem:[#allocation3 + $0x38] sm:$0xff]  ;;  %v834_v22 = vpop.xlane.xlu1 %833  ;;  %v901_v2 = vsel %vm496_vm0, %v813_v14, 0.0  ;;  %v815_v5 = vmul.f32 %v5445_v37, %v5445_v37 }
  0xf4   : > { %v4369_v63 = vpop.eup %4368  ;;  %v5423_v31 = vld [vmem:[#allocation3 + $0x68] sm:$0xff]  ;;  %v978_v42 = vmul.f32 %v4367_v53, %v5141_v44  ;;  %v5436_v44 = vunpack.c.h.bf16 %v3994_v52  ;;  %890 = vadd.xlane.f32.xlu0 %v889_v33  ;;  %v918_v52 = vmax.f32 %v834_v22, 1e-24 }
  0xf5   : > { %720 = vst.msk [vmem:[#allocation3 + $0x78] sm:$0xff] %vm496_vm0, %v704_v27  ;;  %3797 = vmatmul.mubr.msk.bf16.gmra.mrb[24].mxu0 %vm496_vm0, %v5417_v26  ;;  %4005 = vmatprep.subr.bf16.mxu1 %v5423_v31  ;;  %v977_v48 = vmul.f32 %v4369_v63, %v5146_v49  ;;  %v895_v49 = vsel %vm496_vm0, %v811_v6, 0.0  ;;  %v917_v27 = vmax.f32 %v831_v17, 1e-24  ;;  %v907_v63 = vsel %vm496_vm0, %v815_v5, 0.0 }
  0xf6   : > { %4006 = vmatpush3.bf16.msra.mxu1 %v5374_v50  ;;  %1233 = vmatprep.mubr.bf16.mxu0 %v7061_v29  ;;  %v816_v38 = vmul.f32 %v5436_v44, %v5436_v44  ;;  %4374 = vrsqrt.f32 %v918_v52 }
  0xf7   : > { %v1009_v1 = vpack.c.bf16 %v978_v42, %v977_v48  ;;  %899 = vadd.xlane.f32.xlu1 %v898_v13  ;;  %4376 = vrsqrt.f32 %v917_v27  ;;  %v840_v48 = vpop.xlane.xlu1 %839  ;;  %v837_v13 = vpop.xlane.xlu0 %836 }
  0xf8   : > { %v5440_v11 = vld [vmem:[#allocation3 + $0x70] sm:$0xff]  ;;  %896 = vadd.xlane.f32.xlu0 %v895_v49  ;;  %v910_v33 = vsel %vm496_vm0, %v816_v38, 0.0  ;;  %v4371_v6 = vpop.eup %4370  ;;  %v919_v49 = vmax.f32 %v837_v13, 1e-24 }
  0xf9   : > { %4007 = vmatprep.subr.bf16.mxu1 %v5440_v11  ;;  %1025 = vst.msk [vmem:[#allocation5] sm:$0xff] %vm496_vm0, %v1009_v1  ;;  %v4373_v42 = vpop.eup %4372  ;;  %v980_v28 = vmul.f32 %v4371_v6, %v5171_v39  ;;  %v920_v1 = vmax.f32 %v840_v48, 1e-24 }
  0xfa   : > { %4008 = vmatpush3.bf16.msra.mxu1 %v5417_v26  ;;  %v979_v36 = vmul.f32 %v4373_v42, %v5173_v40 }
  0xfb   : > { %905 = vadd.xlane.f32.xlu1 %v904_v21  ;;  %4378 = vrsqrt.f32 %v920_v1  ;;  %v843_v22 = vpop.xlane.xlu0 %842 }
  0xfc   : > { %v5455_v53 = vld [vmem:[#allocation3 + $0x78] sm:$0xff]  ;;  %902 = vadd.xlane.f32.xlu0 %v901_v2  ;;  %v1010_v57 = vpack.c.bf16 %v980_v28, %v979_v36  ;;  %4380 = vrsqrt.f32 %v919_v49  ;;  %v921_v52 = vmax.f32 %v843_v22, 1e-24 }
  0xfd   : > { %3798 = vmatmul.mubr.msk.bf16.gmra.mrb[28].mxu0 %vm496_vm0, %v5453_v0  ;;  %4009 = vmatprep.subr.bf16.mxu1 %v5455_v53 }
  0xfe   : > { %4010 = vmatpush3.bf16.msra.mxu1 %v5453_v0  ;;  %1243 = vmatprep.mubr.bf16.mxu0 %v7061_v29  ;;  %1026 = vst.msk [vmem:[#allocation5 + $0x8] sm:$0xff] %vm496_vm0, %v1010_v57 }
  0xff   : > { %911 = vadd.xlane.f32.xlu1 %v910_v33  ;;  %v849_v6 = vpop.xlane.xlu0 %848 }
 0x100   : > { %908 = vadd.xlane.f32.xlu0 %v907_v63  ;;  %v4375_v14 = vpop.eup %4374  ;;  %v923_v42 = vmax.f32 %v849_v6, 1e-24  ;;  %v7064_v6 = vld [vmem:[#allocation8_spill] sm:$0xff] }
 0x101   : > { %v4377_v21 = vpop.eup %4376  ;;  %v982_v39 = vmul.f32 %v4375_v14, %v5182_v60 }
 0x102   : > { %v981_v40 = vmul.f32 %v4377_v21, %v5184_v61 }
 0x103   : > { %v855_v13 = vpop.xlane.xlu0 %854 }
 0x104   : > { %v1011_v38 = vpack.c.bf16 %v982_v39, %v981_v40  ;;  %v925_v49 = vmax.f32 %v855_v13, 1e-24 }
 0x105   : > { %3799 = vmatmul.mubr.msk.bf16.gmra.mrb[32].mxu0 %vm496_vm0, %v5318_v30  ;;  %v846_v30 = vpop.xlane.xlu1 %845  ;;  %v4379_v27 = vpop.eup %4378 }
 0x106   : > { %1253 = vmatprep.mubr.bf16.mxu0 %v7061_v29  ;;  %1027 = vst.msk [vmem:[#allocation5 + $0x10] sm:$0xff] %vm496_vm0, %v1011_v38  ;;  %v922_v17 = vmax.f32 %v846_v30, 1e-24  ;;  %v4381_v2 = vpop.eup %4380  ;;  %v984_v5 = vmul.f32 %v4379_v27, %v5193_v24  ;;  %v7062_v27 = vld [vmem:[#allocation6_spill] sm:$0xff] }
 0x107   : > { %v983_v60 = vmul.f32 %v4381_v2, %v5195_v25  ;;  %v861_v40 = vpop.xlane.xlu0 %860 }
 0x108   : > { %4382 = vrsqrt.f32 %v922_v17  ;;  %v927_v22 = vmax.f32 %v861_v40, 1e-24 }
 0x109   : > { %4384 = vrsqrt.f32 %v921_v52  ;;  %v1012_v61 = vpack.c.bf16 %v984_v5, %v983_v60  ;;  %v852_v33 = vpop.xlane.xlu1 %851 }
 0x10a   : > { %v924_v63 = vmax.f32 %v852_v33, 1e-24 }
 0x10b   : > { %1028 = vst.msk [vmem:[#allocation5 + $0x18] sm:$0xff] %vm496_vm0, %v1012_v61  ;;  %v7063_v61 = vld [vmem:[#allocation7_spill] sm:$0xff] }
 0x10c   : > { %4386 = vrsqrt.f32 %v924_v63 }
 0x10d   : > { %3800 = vmatmul.mubr.msk.bf16.gmra.mrb[36].mxu0 %vm496_vm0, %v5334_v41  ;;  %4388 = vrsqrt.f32 %v923_v42  ;;  %v858_v48 = vpop.xlane.xlu1 %857  ;;  %v2111_v42 = vld [vmem:[#allocation5] sm:$0xff] }
 0x10e   : > { %1263 = vmatprep.mubr.bf16.mxu0 %v7061_v29  ;;  %v926_v1 = vmax.f32 %v858_v48, 1e-24 }
 0x110   : > { %4390 = vrsqrt.f32 %v926_v1 }
 0x111   : > { %4392 = vrsqrt.f32 %v925_v49  ;;  %v864_v39 = vpop.xlane.xlu1 %863 }
 0x112   : > { %v4383_v28 = vpop.eup %4382  ;;  %v928_v30 = vmax.f32 %v864_v39, 1e-24 }
 0x113   : > { %v4385_v24 = vpop.eup %4384  ;;  %v986_v36 = vmul.f32 %v4383_v28, %v5204_v47  ;;  %v2112_v28 = vld [vmem:[#allocation5 + $0x8] sm:$0xff] }
 0x114   : > { %v985_v25 = vmul.f32 %v4385_v24, %v5206_v51  ;;  %4394 = vrsqrt.f32 %v928_v30 }
 0x115   : > { %3801 = vmatmul.mubr.msk.bf16.gmra.mrb[40].mxu0 %vm496_vm0, %v5360_v19  ;;  %4396 = vrsqrt.f32 %v927_v22 }
 0x116   : > { %1273 = vmatprep.mubr.bf16.mxu0 %v7061_v29  ;;  %v1013_v57 = vpack.c.bf16 %v986_v36, %v985_v25  ;;  %v4387_v14 = vpop.eup %4386 }
 0x117   : > { %v4389_v21 = vpop.eup %4388  ;;  %v988_v47 = vmul.f32 %v4387_v14, %v5215_v10 }
 0x118   : > { %1029 = vst.msk [vmem:[#allocation5 + $0x20] sm:$0xff] %vm496_vm0, %v1013_v57  ;;  %v987_v51 = vmul.f32 %v4389_v21, %v5217_v15 }
 0x11a   : > { %v1014_v38 = vpack.c.bf16 %v988_v47, %v987_v51  ;;  %v4391_v17 = vpop.eup %4390 }
 0x11b   : > { %v4393_v52 = vpop.eup %4392  ;;  %v990_v10 = vmul.f32 %v4391_v17, %v5227_v43 }
 0x11c   : > { %1030 = vst.msk [vmem:[#allocation5 + $0x28] sm:$0xff] %vm496_vm0, %v1014_v38  ;;  %v989_v15 = vmul.f32 %v4393_v52, %v7062_v27 }
 0x11d   : > { %3802 = vmatmul.mubr.msk.bf16.gmra.mrb[44].mxu0 %vm496_vm0, %v5382_v58 }
 0x11e   : > { %1283 = vmatprep.mubr.bf16.mxu0 %v7061_v29  ;;  %v1015_v2 = vpack.c.bf16 %v990_v10, %v989_v15  ;;  %v4395_v5 = vpop.eup %4394 }
 0x11f   : > { %v4397_v60 = vpop.eup %4396  ;;  %v992_v33 = vmul.f32 %v4395_v5, %v7063_v61 }
 0x120   : > { %1031 = vst.msk [vmem:[#allocation5 + $0x30] sm:$0xff] %vm496_vm0, %v1015_v2  ;;  %v991_v63 = vmul.f32 %v4397_v60, %v7064_v6 }
 0x122   : > { %v1016_v43 = vpack.c.bf16 %v992_v33, %v991_v63 }
 0x124   : > { %1032 = vst.msk [vmem:[#allocation5 + $0x38] sm:$0xff] %vm496_vm0, %v1016_v43 }
 0x125   : > { %3803 = vmatmul.mubr.msk.bf16.gmra.mrb[48].mxu0 %vm496_vm0, %v5405_v18 }
 0x126   : > { %1293 = vmatprep.mubr.bf16.mxu0 %v7061_v29 }
 0x12b   : > { %v2118_v24 = vld [vmem:[#allocation5 + $0x38] sm:$0xff] }
 0x12d   : > { %3804 = vmatmul.mubr.msk.bf16.gmra.mrb[52].mxu0 %vm496_vm0, %v5423_v31 }
 0x12e   : > { %1303 = vmatprep.mubr.bf16.mxu0 %v7061_v29 }
 0x135   : > { %3805 = vmatmul.mubr.msk.bf16.gmra.mrb[56].mxu0 %vm496_vm0, %v5440_v11 }
 0x136   : > { %1313 = vmatprep.mubr.bf16.mxu0 %v7061_v29 }
 0x13d   : > { %3806 = vmatmul.mubr.msk.bf16.gmra.mrb[60].mxu0 %vm496_vm0, %v5455_v53 }
 0x13e   : > { %2223 = vmatprep.mubr.bf16.mxu0 %v7061_v29 }
 0x145   : > { %3809 = vmatmul.mubr.msk.bf16.vlgmr.msra.gmra.mrb[64].mxu0 %vm496_vm0, %v2111_v42 }
 0x146   : > { %4220 = vmatpush3.bf16.msra.mxu0 %v5267_v23  ;;  %2233 = vmatprep.mubr.bf16.mxu0 %v7061_v29  ;;  %v2113_v23 = vld [vmem:[#allocation5 + $0x10] sm:$0xff] }
 0x147   : > { %4221 = vmatprep.subr.bf16.mxu0 %v5334_v41 }
 0x14a   : > { %4222 = vmatpush3.bf16.msra.mxu0 %v5278_v7  ;;  %v2114_v7 = vld [vmem:[#allocation5 + $0x18] sm:$0xff] }
 0x14b   : > { %4223 = vmatprep.subr.bf16.mxu0 %v5360_v19 }
 0x14d   : > { %3810 = vmatmul.mubr.msk.bf16.gmra.mrb[68].mxu0 %vm496_vm0, %v2112_v28 }
 0x14e   : > { %4224 = vmatpush3.bf16.msra.mxu0 %v5288_v16  ;;  %2243 = vmatprep.mubr.bf16.mxu0 %v7061_v29  ;;  %v2115_v16 = vld [vmem:[#allocation5 + $0x20] sm:$0xff] }
 0x14f   : > { %4225 = vmatprep.subr.bf16.mxu0 %v5382_v58  ;;  %v2117_v58 = vld [vmem:[#allocation5 + $0x30] sm:$0xff] }
 0x152   : > { %4226 = vmatpush3.bf16.msra.mxu0 %v5299_v62  ;;  %v2116_v62 = vld [vmem:[#allocation5 + $0x28] sm:$0xff] }
 0x153   : > { %4227 = vmatprep.subr.bf16.mxu0 %v5405_v18 }
 0x155   : > { %3811 = vmatmul.mubr.msk.bf16.gmra.mrb[72].mxu0 %vm496_vm0, %v2113_v23 }
 0x156   : > { %4228 = vmatpush3.bf16.msra.mxu0 %v5324_v45  ;;  %2253 = vmatprep.mubr.bf16.mxu0 %v7061_v29 }
 0x157   : > { %4229 = vmatprep.subr.bf16.mxu0 %v5423_v31 }
 0x15a   : > { %4230 = vmatpush3.bf16.msra.mxu0 %v5374_v50 }
 0x15b   : > { %4231 = vmatprep.subr.bf16.mxu0 %v5440_v11 }
 0x15d   : > { %3812 = vmatmul.mubr.msk.bf16.gmra.mrb[76].mxu0 %vm496_vm0, %v2114_v7 }
 0x15e   : > { %4232 = vmatpush3.bf16.msra.mxu0 %v5417_v26  ;;  %2263 = vmatprep.mubr.bf16.mxu0 %v7061_v29 }
 0x15f   : > { %4233 = vmatprep.subr.bf16.mxu0 %v5455_v53 }
 0x162   : > { %4234 = vmatpush3.bf16.msra.mxu0 %v5453_v0 }
 0x165   : > { %3813 = vmatmul.mubr.msk.bf16.gmra.mrb[80].mxu0 %vm496_vm0, %v2115_v16 }
 0x166   : > { %2273 = vmatprep.mubr.bf16.mxu0 %v7061_v29 }
 0x16b   : > { %v870_v45 = vpop.xlane.xlu1 %869 }
 0x16c   : > { %v930_v41 = vmax.f32 %v870_v45, 1e-24  ;;  %v867_v19 = vpop.xlane.xlu0 %866 }
 0x16d   : > { %3814 = vmatmul.mubr.msk.bf16.gmra.mrb[84].mxu0 %vm496_vm0, %v2116_v62  ;;  %v929_v50 = vmax.f32 %v867_v19, 1e-24 }
 0x16e   : > { %2283 = vmatprep.mubr.bf16.mxu0 %v7061_v29  ;;  %4398 = vrsqrt.f32 %v930_v41 }
 0x16f   : > { %4400 = vrsqrt.f32 %v929_v50 }
 0x174   : > { %v876_v18 = vpop.xlane.xlu1 %875 }
 0x175   : > { %3815 = vmatmul.mubr.msk.bf16.gmra.mrb[88].mxu0 %vm496_vm0, %v2117_v58  ;;  %v932_v26 = vmax.f32 %v876_v18, 1e-24  ;;  %v873_v31 = vpop.xlane.xlu0 %872 }
 0x176   : > { %2293 = vmatprep.mubr.bf16.mxu0 %v7061_v29  ;;  %v931_v11 = vmax.f32 %v873_v31, 1e-24 }
 0x177   : > { %4402 = vrsqrt.f32 %v932_v26 }
 0x178   : > { %4404 = vrsqrt.f32 %v931_v11  ;;  %v882_v0 = vpop.xlane.xlu1 %881  ;;  %v4399_v53 = vpop.eup %4398 }
 0x179   : > { %v934_v36 = vmax.f32 %v882_v0, 1e-24  ;;  %v994_v25 = vmul.f32 %v4399_v53, %v5302_v8  ;;  %v4401_v48 = vpop.eup %4400  ;;  %v879_v13 = vpop.xlane.xlu0 %878 }
 0x17a   : > { %v993_v57 = vmul.f32 %v4401_v48, %v5305_v12  ;;  %v933_v1 = vmax.f32 %v879_v13, 1e-24 }
 0x17b   : > { %4406 = vrsqrt.f32 %v934_v36 }
 0x17c   : > { %v888_v49 = vpop.xlane.xlu1 %887  ;;  %v1017_v21 = vpack.c.bf16 %v994_v25, %v993_v57  ;;  %4408 = vrsqrt.f32 %v933_v1 }
 0x17d   : > { %3816 = vmatmul.mubr.msk.bf16.gmra.mrb[92].mxu0 %vm496_vm0, %v2118_v24  ;;  %v936_v14 = vmax.f32 %v888_v49, 1e-24  ;;  %v885_v47 = vpop.xlane.xlu0 %884 }
 0x17e   : > { %2303 = vmatprep.mubr.bf16.mxu0 %v7061_v29  ;;  %1033 = vst.msk [vmem:[#allocation5 + $0x40] sm:$0xff] %vm496_vm0, %v1017_v21  ;;  %v935_v51 = vmax.f32 %v885_v47, 1e-24 }
 0x17f   : > { %4410 = vrsqrt.f32 %v936_v14 }
 0x180   : > { %v894_v8 = vpop.xlane.xlu1 %893  ;;  %4412 = vrsqrt.f32 %v935_v51 }
 0x181   : > { %v4403_v39 = vpop.eup %4402  ;;  %v938_v40 = vmax.f32 %v894_v8, 1e-24  ;;  %v891_v22 = vpop.xlane.xlu0 %890 }
 0x182   : > { %v4405_v38 = vpop.eup %4404  ;;  %v996_v30 = vmul.f32 %v4403_v39, %v5331_v55  ;;  %v937_v17 = vmax.f32 %v891_v22, 1e-24 }
 0x183   : > { %v995_v12 = vmul.f32 %v4405_v38, %v5336_v54  ;;  %4414 = vrsqrt.f32 %v938_v40 }
 0x184   : > { %v900_v52 = vpop.xlane.xlu1 %899  ;;  %4416 = vrsqrt.f32 %v937_v17 }
 0x185   : > { %v4407_v10 = vpop.eup %4406  ;;  %v1018_v27 = vpack.c.bf16 %v996_v30, %v995_v12  ;;  %v940_v15 = vmax.f32 %v900_v52, 1e-24  ;;  %v2119_v5 = vld [vmem:[#allocation5 + $0x40] sm:$0xff]  ;;  %v897_v60 = vpop.xlane.xlu0 %896 }
 0x186   : > { %v998_v2 = vmul.f32 %v4407_v10, %v5338_v56  ;;  %v4409_v61 = vpop.eup %4408  ;;  %3817 = vmatmul.mubr.msk.bf16.gmra.mrb[96].mxu0 %vm496_vm0, %v2119_v5  ;;  %4107 = vmatprep.subr.bf16.mxu1 %v2119_v5  ;;  %v939_v55 = vmax.f32 %v897_v60, 1e-24 }
 0x187   : > { %1034 = vst.msk [vmem:[#allocation5 + $0x48] sm:$0xff] %vm496_vm0, %v1018_v27  ;;  %4418 = vrsqrt.f32 %v940_v15  ;;  %v997_v6 = vmul.f32 %v4409_v61, %v5340_v34  ;;  %2313 = vmatprep.mubr.bf16.mxu0 %v7061_v29 }
 0x188   : > { %v906_v54 = vpop.xlane.xlu1 %905  ;;  %4420 = vrsqrt.f32 %v939_v55 }
 0x189   : > { %v4411_v33 = vpop.eup %4410  ;;  %v942_v63 = vmax.f32 %v906_v54, 1e-24  ;;  %v1019_v43 = vpack.c.bf16 %v998_v2, %v997_v6  ;;  %v903_v56 = vpop.xlane.xlu0 %902 }
 0x18a   : > { %v1000_v42 = vmul.f32 %v4411_v33, %v5349_v59  ;;  %v4413_v28 = vpop.eup %4412  ;;  %v941_v23 = vmax.f32 %v903_v56, 1e-24 }
 0x18b   : > { %4422 = vrsqrt.f32 %v942_v63  ;;  %1035 = vst.msk [vmem:[#allocation5 + $0x50] sm:$0xff] %vm496_vm0, %v1019_v43  ;;  %v999_v62 = vmul.f32 %v4413_v28, %v5371_v32 }
 0x18c   : > { %v912_v7 = vpop.xlane.xlu1 %911  ;;  %4424 = vrsqrt.f32 %v941_v23 }
 0x18d   : > { %v4415_v16 = vpop.eup %4414  ;;  %v944_v45 = vmax.f32 %v912_v7, 1e-24  ;;  %v1020_v34 = vpack.c.bf16 %v1000_v42, %v999_v62  ;;  %v909_v50 = vpop.xlane.xlu0 %908 }
 0x18e   : > { %v2120_v41 = vld [vmem:[#allocation5 + $0x48] sm:$0xff]  ;;  %v1002_v19 = vmul.f32 %v4415_v16, %v5376_v4  ;;  %v4417_v58 = vpop.eup %4416  ;;  %v943_v59 = vmax.f32 %v909_v50, 1e-24 }
 0x18f   : > { %4426 = vrsqrt.f32 %v944_v45  ;;  %3818 = vmatmul.mubr.msk.bf16.gmra.mrb[100].mxu0 %vm496_vm0, %v2120_v41  ;;  %1036 = vst.msk [vmem:[#allocation5 + $0x58] sm:$0xff] %vm496_vm0, %v1020_v34  ;;  %v1001_v26 = vmul.f32 %v4417_v58, %v5379_v9 }
 0x190   : > { %2323 = vmatprep.mubr.bf16.mxu0 %v7061_v29  ;;  %4428 = vrsqrt.f32 %v943_v59 }
 0x191   : > { %v4419_v18 = vpop.eup %4418  ;;  %v1021_v32 = vpack.c.bf16 %v1002_v19, %v1001_v26 }
 0x192   : > { %v1004_v31 = vmul.f32 %v4419_v18, %v5395_v46  ;;  %v4421_v11 = vpop.eup %4420  ;;  %v2121_v53 = vld [vmem:[#allocation5 + $0x50] sm:$0xff] }
 0x193   : > { %1037 = vst.msk [vmem:[#allocation5 + $0x60] sm:$0xff] %vm496_vm0, %v1021_v32  ;;  %v1003_v4 = vmul.f32 %v4421_v11, %v5402_v20 }
 0x195   : > { %v4423_v0 = vpop.eup %4422  ;;  %v1022_v36 = vpack.c.bf16 %v1004_v31, %v1003_v4 }
 0x196   : > { %v1006_v25 = vmul.f32 %v4423_v0, %v5414_v3  ;;  %v4425_v48 = vpop.eup %4424  ;;  %v2122_v47 = vld [vmem:[#allocation5 + $0x58] sm:$0xff] }
 0x197   : > { %3819 = vmatmul.mubr.msk.bf16.gmra.mrb[104].mxu0 %vm496_vm0, %v2121_v53  ;;  %1038 = vst.msk [vmem:[#allocation5 + $0x68] sm:$0xff] %vm496_vm0, %v1022_v36  ;;  %v1005_v20 = vmul.f32 %v4425_v48, %v5426_v35 }
 0x198   : > { %v5564_v24 = vpop.f32.mrb[0].mxu0  ;;  %2333 = vmatprep.mubr.bf16.mxu0 %v7061_v29 }
 0x199   : > { %v5567_v9 = vpop.f32.mrb[1].mxu0  ;;  %v4427_v13 = vpop.eup %4426  ;;  %v1023_v49 = vpack.c.bf16 %v1006_v25, %v1005_v20 }
 0x19a   : > { %v5570_v57 = vpop.f32.mrb[2].mxu0  ;;  %v1324_v46 = vmax.f32 %v5564_v24, %v5567_v9  ;;  %v1008_v14 = vmul.f32 %v4427_v13, %v5436_v44  ;;  %v4429_v21 = vpop.eup %4428  ;;  %v2123_v30 = vld [vmem:[#allocation5 + $0x60] sm:$0xff] }
 0x19b   : > { %v5577_v1 = vpop.f32.mrb[3].mxu0  ;;  %1039 = vst.msk [vmem:[#allocation5 + $0x70] sm:$0xff] %vm496_vm0, %v1023_v49  ;;  %v1007_v51 = vmul.f32 %v4429_v21, %v5445_v37 }
 0x19c   : > { %1325 = vmax.xlane.f32.xlu0 %v1324_v46  ;;  %v1327_v3 = vmax.f32 %v5570_v57, %v5577_v1 }
 0x19d   : > { %v1024_v35 = vpack.c.bf16 %v1008_v14, %v1007_v51 }
 0x19e   : > { %1328 = vmax.xlane.f32.xlu1 %v1327_v3  ;;  %v2124_v15 = vld [vmem:[#allocation5 + $0x68] sm:$0xff] }
 0x19f   : > { %3820 = vmatmul.mubr.msk.bf16.gmra.mrb[108].mxu0 %vm496_vm0, %v2122_v47  ;;  %1040 = vst.msk [vmem:[#allocation5 + $0x78] sm:$0xff] %vm496_vm0, %v1024_v35 }
 0x1a0   : > { %v5584_v8 = vpop.f32.mrb[4].mxu0  ;;  %2343 = vmatprep.mubr.bf16.mxu0 %v7061_v29 }
 0x1a1   : > { %v5586_v39 = vpop.f32.mrb[5].mxu0 }
 0x1a2   : > { %v5589_v40 = vpop.f32.mrb[6].mxu0  ;;  %v1330_v38 = vmax.f32 %v5584_v8, %v5586_v39  ;;  %v2125_v33 = vld [vmem:[#allocation5 + $0x70] sm:$0xff] }
 0x1a3   : > { %v5595_v44 = vpop.f32.mrb[7].mxu0 }
 0x1a4   : > { %1331 = vmax.xlane.f32.xlu0 %v1330_v38  ;;  %v1333_v37 = vmax.f32 %v5589_v40, %v5595_v44 }
 0x1a6   : > { %1334 = vmax.xlane.f32.xlu1 %v1333_v37  ;;  %v2126_v23 = vld [vmem:[#allocation5 + $0x78] sm:$0xff] }
 0x1a7   : > { %3821 = vmatmul.mubr.msk.bf16.gmra.mrb[112].mxu0 %vm496_vm0, %v2123_v30 }
 0x1a8   : > { %v5599_v12 = vpop.f32.mrb[8].mxu0  ;;  %2353 = vmatprep.mubr.bf16.mxu0 %v7061_v29 }
 0x1a9   : > { %v5601_v22 = vpop.f32.mrb[9].mxu0 }
 0x1aa   : > { %v5604_v17 = vpop.f32.mrb[10].mxu0  ;;  %v1336_v52 = vmax.f32 %v5599_v12, %v5601_v22 }
 0x1ab   : > { %v5609_v10 = vpop.f32.mrb[11].mxu0 }
 0x1ac   : > { %1337 = vmax.xlane.f32.xlu0 %v1336_v52  ;;  %v1339_v27 = vmax.f32 %v5604_v17, %v5609_v10 }
 0x1ae   : > { %1340 = vmax.xlane.f32.xlu1 %v1339_v27 }
 0x1af   : > { %3822 = vmatmul.mubr.msk.bf16.gmra.mrb[116].mxu0 %vm496_vm0, %v2124_v15 }
 0x1b0   : > { %v5613_v2 = vpop.f32.mrb[12].mxu0  ;;  %2363 = vmatprep.mubr.bf16.mxu0 %v7061_v29 }
 0x1b1   : > { %v5615_v5 = vpop.f32.mrb[13].mxu0 }
 0x1b2   : > { %v5618_v60 = vpop.f32.mrb[14].mxu0  ;;  %v1342_v61 = vmax.f32 %v5613_v2, %v5615_v5 }
 0x1b3   : > { %v5623_v55 = vpop.f32.mrb[15].mxu0 }
 0x1b4   : > { %1343 = vmax.xlane.f32.xlu0 %v1342_v61  ;;  %v1345_v54 = vmax.f32 %v5618_v60, %v5623_v55 }
 0x1b6   : > { %1346 = vmax.xlane.f32.xlu1 %v1345_v54 }
 0x1b7   : > { %3823 = vmatmul.mubr.msk.bf16.gmra.mrb[120].mxu0 %vm496_vm0, %v2125_v33 }
 0x1b8   : > { %v5627_v6 = vpop.f32.mrb[16].mxu0  ;;  %2373 = vmatprep.mubr.bf16.mxu0 %v7061_v29 }
 0x1b9   : > { %v5629_v63 = vpop.f32.mrb[17].mxu0 }
 0x1ba   : > { %v5632_v43 = vpop.f32.mrb[18].mxu0  ;;  %v1348_v42 = vmax.f32 %v5627_v6, %v5629_v63 }
 0x1bb   : > { %v5637_v56 = vpop.f32.mrb[19].mxu0 }
 0x1bc   : > { %1349 = vmax.xlane.f32.xlu0 %v1348_v42  ;;  %v1351_v28 = vmax.f32 %v5632_v43, %v5637_v56 }
 0x1be   : > { %1352 = vmax.xlane.f32.xlu1 %v1351_v28 }
 0x1bf   : > { %3824 = vmatmul.mubr.msk.bf16.gmra.mrb[124].mxu0 %vm496_vm0, %v2126_v23 }
 0x1c0   : > { %v5641_v7 = vpop.f32.mrb[20].mxu0 }
 0x1c1   : > { %v5643_v16 = vpop.f32.mrb[21].mxu0 }
 0x1c2   : > { %v5646_v62 = vpop.f32.mrb[22].mxu0  ;;  %v1354_v45 = vmax.f32 %v5641_v7, %v5643_v16 }
 0x1c3   : > { %v5650_v41 = vpop.f32.mrb[23].mxu0 }
 0x1c4   : > { %1355 = vmax.xlane.f32.xlu0 %v1354_v45  ;;  %v1357_v34 = vmax.f32 %v5646_v62, %v5650_v41 }
 0x1c6   : > { %1358 = vmax.xlane.f32.xlu1 %v1357_v34 }
 0x1c8   : > { %v5654_v19 = vpop.f32.mrb[24].mxu0 }
 0x1c9   : > { %v5656_v50 = vpop.f32.mrb[25].mxu0 }
 0x1ca   : > { %v5658_v58 = vpop.f32.mrb[26].mxu0  ;;  %v1360_v59 = vmax.f32 %v5654_v19, %v5656_v50 }
 0x1cb   : > { %v5662_v18 = vpop.f32.mrb[27].mxu0 }
 0x1cc   : > { %1361 = vmax.xlane.f32.xlu0 %v1360_v59  ;;  %v1363_v26 = vmax.f32 %v5658_v58, %v5662_v18 }
 0x1ce   : > { %1364 = vmax.xlane.f32.xlu1 %v1363_v26 }
 0x1d0   : > { %v5666_v32 = vpop.f32.mrb[28].mxu0 }
 0x1d1   : > { %v5668_v31 = vpop.f32.mrb[29].mxu0 }
 0x1d2   : > { %v5670_v11 = vpop.f32.mrb[30].mxu0  ;;  %v1366_v0 = vmax.f32 %v5666_v32, %v5668_v31 }
 0x1d3   : > { %7065 = vst [vmem:[#allocation6_spill] sm:$0xff] %v5670_v11  ;;  %v5674_v4 = vpop.f32.mrb[31].mxu0 }
 0x1d4   : > { %7066 = vst [vmem:[#allocation7_spill] sm:$0xff] %v5674_v4  ;;  %1367 = vmax.xlane.f32.xlu0 %v1366_v0  ;;  %v1369_v53 = vmax.f32 %v5670_v11, %v5674_v4 }
 0x1d6   : > { %1370 = vmax.xlane.f32.xlu1 %v1369_v53 }
 0x1d8   : > { %v5678_v36 = vpop.f32.mrb[32].mxu0 }
 0x1d9   : > { %7067 = vst [vmem:[#allocation8_spill] sm:$0xff] %v5678_v36  ;;  %v5680_v25 = vpop.f32.mrb[33].mxu0 }
 0x1da   : > { %7068 = vst [vmem:[#allocation9_spill] sm:$0xff] %v5680_v25  ;;  %v5682_v48 = vpop.f32.mrb[34].mxu0  ;;  %v1372_v13 = vmax.f32 %v5678_v36, %v5680_v25 }
 0x1db   : > { %7069 = vst [vmem:[#allocation10_spill] sm:$0xff] %v5682_v48  ;;  %v5686_v46 = vpop.f32.mrb[35].mxu0 }
 0x1dc   : > { %7070 = vst [vmem:[#allocation11_spill] sm:$0xff] %v5686_v46  ;;  %1373 = vmax.xlane.f32.xlu0 %v1372_v13  ;;  %v1375_v20 = vmax.f32 %v5682_v48, %v5686_v46 }
 0x1de   : > { %1376 = vmax.xlane.f32.xlu1 %v1375_v20 }
 0x1e0   : > { %v5690_v3 = vpop.f32.mrb[36].mxu0 }
 0x1e1   : > { %7071 = vst [vmem:[#allocation12_spill] sm:$0xff] %v5690_v3  ;;  %v5692_v49 = vpop.f32.mrb[37].mxu0 }
 0x1e2   : > { %7072 = vst [vmem:[#allocation13_spill] sm:$0xff] %v5692_v49  ;;  %v5694_v14 = vpop.f32.mrb[38].mxu0  ;;  %v1378_v21 = vmax.f32 %v5690_v3, %v5692_v49 }
 0x1e3   : > { %7073 = vst [vmem:[#allocation14_spill] sm:$0xff] %v5694_v14  ;;  %v5698_v47 = vpop.f32.mrb[39].mxu0 }
 0x1e4   : > { %7074 = vst [vmem:[#allocation15_spill] sm:$0xff] %v5698_v47  ;;  %1379 = vmax.xlane.f32.xlu0 %v1378_v21  ;;  %v1381_v51 = vmax.f32 %v5694_v14, %v5698_v47 }
 0x1e6   : > { %1382 = vmax.xlane.f32.xlu1 %v1381_v51 }
 0x1e8   : > { %v5702_v35 = vpop.f32.mrb[40].mxu0 }
 0x1e9   : > { %7075 = vst [vmem:[#allocation16_spill] sm:$0xff] %v5702_v35  ;;  %v5704_v38 = vpop.f32.mrb[41].mxu0 }
 0x1ea   : > { %7076 = vst [vmem:[#allocation17_spill] sm:$0xff] %v5704_v38  ;;  %v5706_v37 = vpop.f32.mrb[42].mxu0  ;;  %v1384_v30 = vmax.f32 %v5702_v35, %v5704_v38 }
 0x1eb   : > { %7077 = vst [vmem:[#allocation18_spill] sm:$0xff] %v5706_v37  ;;  %v5710_v52 = vpop.f32.mrb[43].mxu0 }
 0x1ec   : > { %7078 = vst [vmem:[#allocation19_spill] sm:$0xff] %v5710_v52  ;;  %1385 = vmax.xlane.f32.xlu0 %v1384_v30  ;;  %v1387_v27 = vmax.f32 %v5706_v37, %v5710_v52 }
 0x1ee   : > { %1388 = vmax.xlane.f32.xlu1 %v1387_v27 }
 0x1f0   : > { %v5714_v15 = vpop.f32.mrb[44].mxu0 }
 0x1f1   : > { %7079 = vst [vmem:[#allocation20_spill] sm:$0xff] %v5714_v15  ;;  %v5716_v61 = vpop.f32.mrb[45].mxu0 }
 0x1f2   : > { %7080 = vst [vmem:[#allocation21_spill] sm:$0xff] %v5716_v61  ;;  %v5718_v54 = vpop.f32.mrb[46].mxu0  ;;  %v1390_v33 = vmax.f32 %v5714_v15, %v5716_v61 }
 0x1f3   : > { %7081 = vst [vmem:[#allocation22_spill] sm:$0xff] %v5718_v54  ;;  %v5722_v42 = vpop.f32.mrb[47].mxu0 }
 0x1f4   : > { %7082 = vst [vmem:[#allocation23_spill] sm:$0xff] %v5722_v42  ;;  %1391 = vmax.xlane.f32.xlu0 %v1390_v33  ;;  %v1393_v28 = vmax.f32 %v5718_v54, %v5722_v42 }
 0x1f6   : > { %1394 = vmax.xlane.f32.xlu1 %v1393_v28 }
 0x1f8   : > { %v5726_v23 = vpop.f32.mrb[48].mxu0 }
 0x1f9   : > { %v5728_v45 = vpop.f32.mrb[49].mxu0 }
 0x1fa   : > { %v5730_v34 = vpop.f32.mrb[50].mxu0 }
 0x1fb   : > { %v5734_v26 = vpop.f32.mrb[51].mxu0 }
 0x200   : > { %v5738_v53 = vpop.f32.mrb[52].mxu0 }
 0x201   : > { %v5740_v13 = vpop.f32.mrb[53].mxu0 }
 0x202   : > { %v5742_v20 = vpop.f32.mrb[54].mxu0 }
 0x203   : > { %v5746_v51 = vpop.f32.mrb[55].mxu0 }
 0x208   : > { %v5750_v27 = vpop.f32.mrb[56].mxu0 }
 0x209   : > { %v5752_v33 = vpop.f32.mrb[57].mxu0 }
 0x20a   : > { %v5756_v0 = vpop.f32.mrb[58].mxu0 }
 0x20b   : > { %v5758_v59 = vpop.f32.mrb[59].mxu0 }
 0x210   : > { %v5762_v21 = vpop.f32.mrb[60].mxu0 }
 0x211   : > { %v5764_v54 = vpop.f32.mrb[61].mxu0 }
 0x212   : > { %v5768_v61 = vpop.f32.mrb[62].mxu0 }
 0x213   : > { %v5770_v15 = vpop.f32.mrb[63].mxu0 }
 0x218   : > { %v5774_v52 = vpop.f32.mrb[64].mxu0 }
 0x219   : > { %v5776_v37 = vpop.f32.mrb[65].mxu0 }
 0x21a   : > { %7083 = vst [vmem:[#allocation24_spill] sm:$0xff] %v5776_v37  ;;  %v5780_v38 = vpop.f32.mrb[66].mxu0 }
 0x21b   : > { %7084 = vst [vmem:[#allocation25_spill] sm:$0xff] %v5780_v38  ;;  %v5782_v35 = vpop.f32.mrb[67].mxu0 }
 0x21c   : > { %7085 = vst [vmem:[#allocation26_spill] sm:$0xff] %v5782_v35 }
 0x220   : > { %v5786_v47 = vpop.f32.mrb[68].mxu0 }
 0x221   : > { %7086 = vst [vmem:[#allocation27_spill] sm:$0xff] %v5786_v47  ;;  %v5788_v14 = vpop.f32.mrb[69].mxu0 }
 0x222   : > { %7087 = vst [vmem:[#allocation28_spill] sm:$0xff] %v5788_v14  ;;  %v5792_v49 = vpop.f32.mrb[70].mxu0 }
 0x223   : > { %7088 = vst [vmem:[#allocation29_spill] sm:$0xff] %v5792_v49  ;;  %v5794_v3 = vpop.f32.mrb[71].mxu0 }
 0x224   : > { %7089 = vst [vmem:[#allocation30_spill] sm:$0xff] %v5794_v3 }
 0x228   : > { %v5798_v46 = vpop.f32.mrb[72].mxu0 }
 0x229   : > { %7090 = vst [vmem:[#allocation31_spill] sm:$0xff] %v5798_v46  ;;  %v1326_v48 = vpop.xlane.xlu0 %1325  ;;  %v5800_v29 = vpop.f32.mrb[73].mxu0 }
 0x22a   : > { %7091 = vst [vmem:[#allocation32_spill] sm:$0xff] %v5800_v29  ;;  %v1420_v30 = vsub.f32 %v5564_v24, %v1326_v48  ;;  %v1421_v25 = vsub.f32 %v5567_v9, %v1326_v48  ;;  %v5806_v28 = vpop.f32.mrb[74].mxu0 }
 0x22b   : > { %7092 = vst [vmem:[#allocation33_spill] sm:$0xff] %v5806_v28  ;;  %v1329_v14 = vpop.xlane.xlu1 %1328  ;;  %v5808_v47 = vpop.f32.mrb[75].mxu0 }
 0x22c   : > { %7093 = vst [vmem:[#allocation34_spill] sm:$0xff] %v5808_v47  ;;  %v1484_v4 = vmul.f32 1.442695, %v1420_v30  ;;  %v1486_v11 = vmul.f32 1.442695, %v1421_v25  ;;  %v1422_v42 = vsub.f32 %v5570_v57, %v1329_v14  ;;  %v1423_v3 = vsub.f32 %v5577_v1, %v1329_v14 }
 0x22e   : > { %4430 = vpow2.f32 %v1484_v4  ;;  %v1488_v24 = vmul.f32 1.442695, %v1422_v42  ;;  %v1490_v9 = vmul.f32 1.442695, %v1423_v3 }
 0x22f   : > { %4432 = vpow2.f32 %v1486_v11 }
 0x230   : > { %4434 = vpow2.f32 %v1488_v24  ;;  %v5814_v48 = vpop.f32.mrb[76].mxu0 }
 0x231   : > { %7094 = vst [vmem:[#allocation35_spill] sm:$0xff] %v5814_v48  ;;  %4436 = vpow2.f32 %v1490_v9  ;;  %v1332_v36 = vpop.xlane.xlu0 %1331  ;;  %v5816_v29 = vpop.f32.mrb[77].mxu0 }
 0x232   : > { %7095 = vst [vmem:[#allocation36_spill] sm:$0xff] %v5816_v29  ;;  %v1424_v25 = vsub.f32 %v5584_v8, %v1332_v36  ;;  %v1425_v57 = vsub.f32 %v5586_v39, %v1332_v36  ;;  %v5822_v14 = vpop.f32.mrb[78].mxu0 }
 0x233   : > { %7096 = vst [vmem:[#allocation37_spill] sm:$0xff] %v5822_v14  ;;  %v1335_v4 = vpop.xlane.xlu1 %1334  ;;  %v5824_v42 = vpop.f32.mrb[79].mxu0 }
 0x234   : > { %7097 = vst [vmem:[#allocation38_spill] sm:$0xff] %v5824_v42  ;;  %v1492_v11 = vmul.f32 1.442695, %v1424_v25  ;;  %v1494_v3 = vmul.f32 1.442695, %v1425_v57  ;;  %v1426_v30 = vsub.f32 %v5589_v40, %v1335_v4  ;;  %v1427_v24 = vsub.f32 %v5595_v44, %v1335_v4 }
 0x236   : > { %4438 = vpow2.f32 %v1492_v11  ;;  %v1496_v8 = vmul.f32 1.442695, %v1426_v30  ;;  %v1498_v39 = vmul.f32 1.442695, %v1427_v24 }
 0x237   : > { %4440 = vpow2.f32 %v1494_v3 }
 0x238   : > { %v5830_v36 = vpop.eup %4430  ;;  %4442 = vpow2.f32 %v1496_v8  ;;  %v5832_v1 = vpop.f32.mrb[80].mxu0 }
 0x239   : > { %7098 = vst [vmem:[#allocation39_spill] sm:$0xff] %v5830_v36  ;;  %7099 = vst [vmem:[#allocation40_spill] sm:$0xff] %v5832_v1  ;;  %v5834_v49 = vpop.eup %4432  ;;  %4444 = vpow2.f32 %v1498_v39  ;;  %v1338_v25 = vpop.xlane.xlu0 %1337 }
 0x23a   : > { %7100 = vst [vmem:[#allocation41_spill] sm:$0xff] %v5834_v49  ;;  %v5836_v57 = vpop.f32.mrb[81].mxu0  ;;  %v5838_v40 = vpop.eup %4434  ;;  %v1428_v44 = vsub.f32 %v5599_v12, %v1338_v25  ;;  %v1429_v4 = vsub.f32 %v5601_v22, %v1338_v25  ;;  %v1612_v11 = vadd.f32 %v5834_v49, %v5830_v36 }
 0x23b   : > { %7101 = vst [vmem:[#allocation42_spill] sm:$0xff] %v5836_v57  ;;  %7102 = vst [vmem:[#allocation43_spill] sm:$0xff] %v5838_v40  ;;  %v5846_v30 = vpop.f32.mrb[82].mxu0  ;;  %v5848_v24 = vpop.eup %4436 }
 0x23c   : > { %7103 = vst [vmem:[#allocation44_spill] sm:$0xff] %v5846_v30  ;;  %7104 = vst [vmem:[#allocation45_spill] sm:$0xff] %v5848_v24  ;;  %v1341_v8 = vpop.xlane.xlu1 %1340  ;;  %v5850_v39 = vpop.f32.mrb[83].mxu0  ;;  %v1500_v9 = vmul.f32 1.442695, %v1428_v44  ;;  %1613 = vadd.xlane.f32.xlu0 %v1612_v11  ;;  %v1615_v22 = vadd.f32 %v5848_v24, %v5838_v40 }
 0x23d   : > { %7105 = vst [vmem:[#allocation46_spill] sm:$0xff] %v5850_v39  ;;  %v1502_v42 = vmul.f32 1.442695, %v1429_v4  ;;  %v1430_v14 = vsub.f32 %v5604_v17, %v1341_v8  ;;  %v1431_v12 = vsub.f32 %v5609_v10, %v1341_v8  ;;  %v7107_v17 = vmax.f32 %v5726_v23, %v5728_v45 }
 0x23e   : > { %4446 = vpow2.f32 %v1500_v9  ;;  %1616 = vadd.xlane.f32.xlu1 %v1615_v22 }
 0x23f   : > { %v1504_v3 = vmul.f32 1.442695, %v1430_v14  ;;  %v1506_v36 = vmul.f32 1.442695, %v1431_v12  ;;  %4448 = vpow2.f32 %v1502_v42 }
 0x240   : > { %v5858_v49 = vpop.eup %4438  ;;  %1397 = vmax.xlane.f32.xlu0 %v7107_v17  ;;  %v5863_v10 = vpop.f32.mrb[84].mxu0 }
 0x241   : > { %7106 = vst [vmem:[#allocation47_spill] sm:$0xff] %v5858_v49  ;;  %4450 = vpow2.f32 %v1504_v3  ;;  %v5865_v44 = vpop.eup %4440  ;;  %v1344_v4 = vpop.xlane.xlu0 %1343 }
 0x242   : > { %7108 = vst [vmem:[#allocation48_spill] sm:$0xff] %v5865_v44  ;;  %4452 = vpow2.f32 %v1506_v36  ;;  %v5867_v11 = vpop.f32.mrb[85].mxu0  ;;  %v5869_v9 = vpop.eup %4442  ;;  %v1432_v14 = vsub.f32 %v5613_v2, %v1344_v4  ;;  %v1433_v42 = vsub.f32 %v5615_v5, %v1344_v4  ;;  %v1618_v3 = vadd.f32 %v5865_v44, %v5858_v49 }
 0x243   : > { %7109 = vst [vmem:[#allocation49_spill] sm:$0xff] %v5869_v9  ;;  %v5877_v12 = vpop.f32.mrb[86].mxu0  ;;  %v5879_v22 = vpop.eup %4444  ;;  %v7111_v36 = vmax.f32 %v5730_v34, %v5734_v26 }
 0x244   : > { %7110 = vst [vmem:[#allocation50_spill] sm:$0xff] %v5879_v22  ;;  %v1347_v17 = vpop.xlane.xlu1 %1346  ;;  %v5884_v25 = vpop.f32.mrb[87].mxu0  ;;  %v1508_v2 = vmul.f32 1.442695, %v1432_v14  ;;  %v1510_v40 = vmul.f32 1.442695, %v1433_v42  ;;  %1619 = vadd.xlane.f32.xlu0 %v1618_v3  ;;  %v1621_v8 = vadd.f32 %v5879_v22, %v5869_v9 }
 0x245   : > { %1400 = vmax.xlane.f32.xlu1 %v7111_v36  ;;  %v1434_v5 = vsub.f32 %v5618_v60, %v1347_v17  ;;  %v1435_v4 = vsub.f32 %v5623_v55, %v1347_v17  ;;  %v7113_v60 = vmax.f32 %v5738_v53, %v5740_v13 }
 0x246   : > { %4454 = vpow2.f32 %v1508_v2 }
 0x247   : > { %v1512_v44 = vmul.f32 1.442695, %v1434_v5  ;;  %v1514_v24 = vmul.f32 1.442695, %v1435_v4  ;;  %4456 = vpow2.f32 %v1510_v40 }
 0x248   : > { %v5892_v36 = vpop.eup %4446  ;;  %1403 = vmax.xlane.f32.xlu0 %v7113_v60  ;;  %v5897_v55 = vpop.f32.mrb[88].mxu0 }
 0x249   : > { %1622 = vadd.xlane.f32.xlu1 %v1621_v8  ;;  %7112 = vst [vmem:[#allocation51_spill] sm:$0xff] %v5892_v36  ;;  %4458 = vpow2.f32 %v1512_v44  ;;  %7114 = vst [vmem:[#allocation52_spill] sm:$0xff] %v5897_v55  ;;  %v5899_v14 = vpop.eup %4448  ;;  %v1350_v42 = vpop.xlane.xlu0 %1349 }
 0x24a   : > { %7115 = vst [vmem:[#allocation53_spill] sm:$0xff] %v5899_v14  ;;  %4460 = vpow2.f32 %v1514_v24  ;;  %v5901_v3 = vpop.f32.mrb[89].mxu0  ;;  %v1436_v40 = vsub.f32 %v5627_v6, %v1350_v42  ;;  %v1437_v8 = vsub.f32 %v5629_v63, %v1350_v42  ;;  %v1624_v44 = vadd.f32 %v5899_v14, %v5892_v36 }
 0x24b   : > { %7116 = vst [vmem:[#allocation54_spill] sm:$0xff] %v5901_v3  ;;  %v5903_v17 = vpop.eup %4450  ;;  %v5911_v5 = vpop.f32.mrb[90].mxu0  ;;  %v7120_v24 = vmax.f32 %v5742_v20, %v5746_v51 }
 0x24c   : > { %7117 = vst [vmem:[#allocation55_spill] sm:$0xff] %v5903_v17  ;;  %7118 = vst [vmem:[#allocation56_spill] sm:$0xff] %v5911_v5  ;;  %v5913_v4 = vpop.eup %4452  ;;  %v1353_v60 = vpop.xlane.xlu1 %1352  ;;  %v1516_v6 = vmul.f32 1.442695, %v1436_v40  ;;  %v1518_v9 = vmul.f32 1.442695, %v1437_v8  ;;  %1625 = vadd.xlane.f32.xlu0 %v1624_v44 }
 0x24d   : > { %7119 = vst [vmem:[#allocation57_spill] sm:$0xff] %v5913_v4  ;;  %1406 = vmax.xlane.f32.xlu1 %v7120_v24  ;;  %v5918_v49 = vpop.f32.mrb[91].mxu0  ;;  %v1438_v63 = vsub.f32 %v5632_v43, %v1353_v60  ;;  %v1439_v42 = vsub.f32 %v5637_v56, %v1353_v60  ;;  %v1627_v2 = vadd.f32 %v5913_v4, %v5903_v17 }
 0x24e   : > { %7121 = vst [vmem:[#allocation58_spill] sm:$0xff] %v5918_v49  ;;  %4462 = vpow2.f32 %v1516_v6  ;;  %v7123_v43 = vmax.f32 %v5750_v27, %v5752_v33 }
 0x24f   : > { %v1520_v14 = vmul.f32 1.442695, %v1438_v63  ;;  %v1522_v22 = vmul.f32 1.442695, %v1439_v42  ;;  %4464 = vpow2.f32 %v1518_v9 }
 0x250   : > { %v5926_v24 = vpop.eup %4454  ;;  %1409 = vmax.xlane.f32.xlu0 %v7123_v43  ;;  %v5931_v56 = vpop.f32.mrb[92].mxu0 }
 0x251   : > { %1628 = vadd.xlane.f32.xlu1 %v1627_v2  ;;  %7122 = vst [vmem:[#allocation59_spill] sm:$0xff] %v5926_v24  ;;  %4466 = vpow2.f32 %v1520_v14  ;;  %7124 = vst [vmem:[#allocation60_spill] sm:$0xff] %v5931_v56  ;;  %v5933_v40 = vpop.eup %4456  ;;  %v1356_v8 = vpop.xlane.xlu0 %1355 }
 0x252   : > { %7125 = vst [vmem:[#allocation61_spill] sm:$0xff] %v5933_v40  ;;  %4468 = vpow2.f32 %v1522_v22  ;;  %v5935_v44 = vpop.f32.mrb[93].mxu0  ;;  %v1440_v9 = vsub.f32 %v5641_v7, %v1356_v8  ;;  %v1441_v2 = vsub.f32 %v5643_v16, %v1356_v8  ;;  %v1630_v14 = vadd.f32 %v5933_v40, %v5926_v24 }
 0x253   : > { %7126 = vst [vmem:[#allocation62_spill] sm:$0xff] %v5935_v44  ;;  %v5937_v60 = vpop.eup %4458  ;;  %v5945_v63 = vpop.f32.mrb[94].mxu0  ;;  %v7130_v22 = vmax.f32 %v5756_v0, %v5758_v59 }
 0x254   : > { %7127 = vst [vmem:[#allocation63_spill] sm:$0xff] %v5937_v60  ;;  %7128 = vst [vmem:[#allocation64_spill] sm:$0xff] %v5945_v63  ;;  %v5947_v42 = vpop.eup %4460  ;;  %v1359_v43 = vpop.xlane.xlu1 %1358  ;;  %v1524_v7 = vmul.f32 1.442695, %v1440_v9  ;;  %v1526_v17 = vmul.f32 1.442695, %v1441_v2  ;;  %1631 = vadd.xlane.f32.xlu0 %v1630_v14 }
 0x255   : > { %7129 = vst [vmem:[#allocation65_spill] sm:$0xff] %v5947_v42  ;;  %1412 = vmax.xlane.f32.xlu1 %v7130_v22  ;;  %v5952_v36 = vpop.f32.mrb[95].mxu0  ;;  %v1442_v16 = vsub.f32 %v5646_v62, %v1359_v43  ;;  %v1443_v8 = vsub.f32 %v5650_v41, %v1359_v43  ;;  %v1633_v6 = vadd.f32 %v5947_v42, %v5937_v60 }
 0x256   : > { %7131 = vst [vmem:[#allocation66_spill] sm:$0xff] %v5952_v36  ;;  %4470 = vpow2.f32 %v1524_v7  ;;  %v7133_v62 = vmax.f32 %v5762_v21, %v5764_v54 }
 0x257   : > { %v1528_v40 = vmul.f32 1.442695, %v1442_v16  ;;  %v1530_v4 = vmul.f32 1.442695, %v1443_v8  ;;  %4472 = vpow2.f32 %v1526_v17 }
 0x258   : > { %v5960_v22 = vpop.eup %4462  ;;  %1415 = vmax.xlane.f32.xlu0 %v7133_v62 }
 0x259   : > { %1634 = vadd.xlane.f32.xlu1 %v1633_v6  ;;  %7132 = vst [vmem:[#allocation67_spill] sm:$0xff] %v5960_v22  ;;  %4474 = vpow2.f32 %v1528_v40  ;;  %v5965_v41 = vpop.eup %4464  ;;  %v1362_v9 = vpop.xlane.xlu0 %1361  ;;  %v7137_v40 = vmax.f32 %v5768_v61, %v5770_v15 }
 0x25a   : > { %7134 = vst [vmem:[#allocation68_spill] sm:$0xff] %v5965_v41  ;;  %4476 = vpow2.f32 %v1530_v4  ;;  %v1444_v14 = vsub.f32 %v5654_v19, %v1362_v9  ;;  %v1445_v43 = vsub.f32 %v5656_v50, %v1362_v9  ;;  %v1636_v17 = vadd.f32 %v5965_v41, %v5960_v22  ;;  %v5982_v24 = vpop.f32.mrb[96].mxu0 }
 0x25b   : > { %v5967_v2 = vpop.eup %4466  ;;  %v1365_v7 = vpop.xlane.xlu1 %1364 }
 0x25c   : > { %7135 = vst [vmem:[#allocation69_spill] sm:$0xff] %v5967_v2  ;;  %v5973_v6 = vpop.eup %4468  ;;  %v1532_v16 = vmul.f32 1.442695, %v1444_v14  ;;  %v1534_v8 = vmul.f32 1.442695, %v1445_v43  ;;  %v1446_v4 = vsub.f32 %v5658_v58, %v1365_v7  ;;  %v1447_v62 = vsub.f32 %v5662_v18, %v1365_v7  ;;  %1637 = vadd.xlane.f32.xlu0 %v1636_v17  ;;  %v5989_v58 = vpop.f32.mrb[97].mxu0 }
 0x25d   : > { %7136 = vst [vmem:[#allocation70_spill] sm:$0xff] %v5973_v6  ;;  %1418 = vmax.xlane.f32.xlu1 %v7137_v40  ;;  %v1639_v19 = vadd.f32 %v5973_v6, %v5967_v2  ;;  %v7139_v14 = vmax.f32 %v5774_v52, %v5776_v37  ;;  %v5993_v17 = vpop.f32.mrb[98].mxu0  ;;  %v7144_v2 = vld [vmem:[#allocation6_spill] sm:$0xff] }
 0x25e   : > { %4478 = vpow2.f32 %v1532_v16  ;;  %v1536_v50 = vmul.f32 1.442695, %v1446_v4  ;;  %v1538_v9 = vmul.f32 1.442695, %v1447_v62  ;;  %v6001_v4 = vpop.f32.mrb[99].mxu0 }
 0x25f   : > { %4480 = vpow2.f32 %v1534_v8 }
 0x260   : > { %v5984_v22 = vpop.eup %4470  ;;  %4482 = vpow2.f32 %v1536_v50  ;;  %2385 = vmax.xlane.f32.xlu0 %v7139_v14  ;;  %v4863_v14 = vld.sshfl [vmem:[#allocation2] sm:$0x33 pattern:$0x76325410] }
 0x261   : > { %1640 = vadd.xlane.f32.xlu1 %v1639_v19  ;;  %7138 = vst [vmem:[#allocation71_spill] sm:$0xff] %v5984_v22  ;;  %v5991_v18 = vpop.eup %4472  ;;  %4484 = vpow2.f32 %v1538_v9  ;;  %v1368_v43 = vpop.xlane.xlu0 %1367  ;;  %v7143_v19 = vmax.f32 %v5780_v38, %v5782_v35  ;;  %v3345_v42 = vcombine.high %v4863_v14, %v4863_v14  ;;  %v7161_v38 = vld [vmem:[#allocation11_spill] sm:$0xff] }
 0x262   : > { %7140 = vst [vmem:[#allocation72_spill] sm:$0xff] %v5991_v18  ;;  %v1448_v7 = vsub.f32 %v5666_v32, %v1368_v43  ;;  %v1449_v16 = vsub.f32 %v5668_v31, %v1368_v43  ;;  %v1642_v8 = vadd.f32 %v5991_v18, %v5984_v22  ;;  %v7145_v18 = vld [vmem:[#allocation7_spill] sm:$0xff]  ;;  %v6016_v9 = vpop.f32.mrb[100].mxu0 }
 0x263   : > { %v5995_v40 = vpop.eup %4474  ;;  %v1371_v50 = vpop.xlane.xlu1 %1370  ;;  %3380 = vmatprep.mubr.bf16.mxu0 %v3345_v42 }
 0x264   : > { %7141 = vst [vmem:[#allocation73_spill] sm:$0xff] %v5995_v40  ;;  %v6003_v62 = vpop.eup %4476  ;;  %v1540_v31 = vmul.f32 1.442695, %v1448_v7  ;;  %v1542_v43 = vmul.f32 1.442695, %v1449_v16  ;;  %v1450_v22 = vsub.f32 %v7144_v2, %v1371_v50  ;;  %v1451_v6 = vsub.f32 %v7145_v18, %v1371_v50  ;;  %1643 = vadd.xlane.f32.xlu0 %v1642_v8  ;;  %v7147_v7 = vld [vmem:[#allocation27_spill] sm:$0xff]  ;;  %3381 = vmatmul.mubr.bf16.vlgmr.msra.gmra.mrb[128].mxu0 %v4863_v14 }
 0x265   : > { %7142 = vst [vmem:[#allocation74_spill] sm:$0xff] %v6003_v62  ;;  %2388 = vmax.xlane.f32.xlu1 %v7143_v19  ;;  %v1645_v41 = vadd.f32 %v6003_v62, %v5995_v40  ;;  %v7148_v16 = vld [vmem:[#allocation28_spill] sm:$0xff]  ;;  %v6023_v18 = vpop.f32.mrb[101].mxu0  ;;  %v7160_v14 = vld [vmem:[#allocation10_spill] sm:$0xff] }
 0x266   : > { %4486 = vpow2.f32 %v1540_v31  ;;  %v1544_v19 = vmul.f32 1.442695, %v1450_v22  ;;  %v1546_v60 = vmul.f32 1.442695, %v1451_v6  ;;  %v7149_v2 = vmax.f32 %v7147_v7, %v7148_v16  ;;  %v6027_v22 = vpop.f32.mrb[102].mxu0  ;;  %v7152_v6 = vld [vmem:[#allocation8_spill] sm:$0xff] }
 0x267   : > { %4488 = vpow2.f32 %v1542_v43  ;;  %v7153_v43 = vld [vmem:[#allocation9_spill] sm:$0xff] }
 0x268   : > { %v6018_v32 = vpop.eup %4478  ;;  %4490 = vpow2.f32 %v1544_v19  ;;  %2391 = vmax.xlane.f32.xlu0 %v7149_v2  ;;  %v6035_v2 = vpop.f32.mrb[103].mxu0  ;;  %v7156_v16 = vld [vmem:[#allocation29_spill] sm:$0xff] }
 0x269   : > { %1646 = vadd.xlane.f32.xlu1 %v1645_v41  ;;  %7146 = vst [vmem:[#allocation6_spill] sm:$0xff] %v6018_v32  ;;  %v6025_v8 = vpop.eup %4480  ;;  %4492 = vpow2.f32 %v1546_v60  ;;  %v1374_v50 = vpop.xlane.xlu0 %1373  ;;  %7154 = vst [vmem:[#allocation8_spill] sm:$0xff] %v6035_v2  ;;  %v7157_v60 = vld [vmem:[#allocation30_spill] sm:$0xff] }
 0x26a   : > { %7150 = vst [vmem:[#allocation7_spill] sm:$0xff] %v6025_v8  ;;  %v6029_v41 = vpop.eup %4482  ;;  %v1452_v31 = vsub.f32 %v7152_v6, %v1374_v50  ;;  %v1453_v40 = vsub.f32 %v7153_v43, %v1374_v50  ;;  %v1648_v19 = vadd.f32 %v6025_v8, %v6018_v32  ;;  %v7158_v7 = vmax.f32 %v7156_v16, %v7157_v60  ;;  %v6051_v35 = vpop.f32.mrb[104].mxu0 }
 0x26b   : > { %7151 = vst [vmem:[#allocation75_spill] sm:$0xff] %v6029_v41  ;;  %v6037_v62 = vpop.eup %4484  ;;  %v1377_v42 = vpop.xlane.xlu1 %1376  ;;  %v7159_v50 = vmov 0  }
 0x26c   : > { %7155 = vst [vmem:[#allocation9_spill] sm:$0xff] %v6037_v62  ;;  %3456 = vmatprep.mubr.bf16.mxu0 %v7159_v50  ;;  %v1548_v43 = vmul.f32 1.442695, %v1452_v31  ;;  %v1550_v32 = vmul.f32 1.442695, %v1453_v40  ;;  %v1454_v8 = vsub.f32 %v7160_v14, %v1377_v42  ;;  %v1455_v37 = vsub.f32 %v7161_v38, %v1377_v42  ;;  %1649 = vadd.xlane.f32.xlu0 %v1648_v19  ;;  %v7163_v40 = vld [vmem:[#allocation32_spill] sm:$0xff] }
 0x26d   : > { %2394 = vmax.xlane.f32.xlu1 %v7158_v7  ;;  %v1651_v60 = vadd.f32 %v6037_v62, %v6029_v41  ;;  %v7164_v31 = vmax.f32 %v5798_v46, %v7163_v40  ;;  %v6058_v14 = vpop.f32.mrb[105].mxu0  ;;  %v7172_v41 = vmax.f32 %v5806_v28, %v5808_v47 }
 0x26e   : > { %4494 = vpow2.f32 %v1548_v43  ;;  %v1552_v7 = vmul.f32 1.442695, %v1454_v8  ;;  %v1554_v16 = vmul.f32 1.442695, %v1455_v37  ;;  %v6062_v42 = vpop.f32.mrb[106].mxu0 }
 0x26f   : > { %4496 = vpow2.f32 %v1550_v32  ;;  %7166 = vst [vmem:[#allocation76_spill] sm:$0xff] %v6062_v42  ;;  %v7168_v32 = vld [vmem:[#allocation12_spill] sm:$0xff]  ;;  %v6070_v50 = vpop.f32.mrb[107].mxu0 }
 0x270   : > { %v6053_v6 = vpop.eup %4486  ;;  %4498 = vpow2.f32 %v1552_v7  ;;  %2397 = vmax.xlane.f32.xlu0 %v7164_v31  ;;  %7170 = vst [vmem:[#allocation12_spill] sm:$0xff] %v6070_v50 }
 0x271   : > { %1652 = vadd.xlane.f32.xlu1 %v1651_v60  ;;  %7162 = vst [vmem:[#allocation10_spill] sm:$0xff] %v6053_v6  ;;  %v6060_v38 = vpop.eup %4488  ;;  %4500 = vpow2.f32 %v1554_v16  ;;  %v1380_v19 = vpop.xlane.xlu0 %1379  ;;  %v7169_v60 = vld [vmem:[#allocation13_spill] sm:$0xff] }
 0x272   : > { %7165 = vst [vmem:[#allocation11_spill] sm:$0xff] %v6060_v38  ;;  %v6064_v37 = vpop.eup %4490  ;;  %v1456_v8 = vsub.f32 %v7168_v32, %v1380_v19  ;;  %v1457_v43 = vsub.f32 %v7169_v60, %v1380_v19  ;;  %v1654_v7 = vadd.f32 %v6060_v38, %v6053_v6  ;;  %v7173_v60 = vld [vmem:[#allocation14_spill] sm:$0xff]  ;;  %v7174_v6 = vld [vmem:[#allocation15_spill] sm:$0xff]  ;;  %v6085_v28 = vpop.f32.mrb[108].mxu0  ;;  %v7182_v32 = vld [vmem:[#allocation37_spill] sm:$0xff] }
 0x273   : > { %7167 = vst [vmem:[#allocation77_spill] sm:$0xff] %v6064_v37  ;;  %v6072_v31 = vpop.eup %4492  ;;  %v1383_v16 = vpop.xlane.xlu1 %1382 }
 0x274   : > { %7171 = vst [vmem:[#allocation13_spill] sm:$0xff] %v6072_v31  ;;  %v1556_v40 = vmul.f32 1.442695, %v1456_v8  ;;  %v1558_v19 = vmul.f32 1.442695, %v1457_v43  ;;  %v1458_v46 = vsub.f32 %v7173_v60, %v1383_v16  ;;  %v1459_v38 = vsub.f32 %v7174_v6, %v1383_v16  ;;  %1655 = vadd.xlane.f32.xlu0 %v1654_v7  ;;  %v6092_v43 = vpop.f32.mrb[109].mxu0 }
 0x275   : > { %2400 = vmax.xlane.f32.xlu1 %v7172_v41  ;;  %v1657_v2 = vadd.f32 %v6072_v31, %v6064_v37  ;;  %v7176_v8 = vmax.f32 %v5814_v48, %v5816_v29  ;;  %v7180_v16 = vld [vmem:[#allocation17_spill] sm:$0xff]  ;;  %v7183_v37 = vld [vmem:[#allocation38_spill] sm:$0xff] }
 0x276   : > { %4502 = vpow2.f32 %v1556_v40  ;;  %v1560_v47 = vmul.f32 1.442695, %v1458_v46  ;;  %v1562_v41 = vmul.f32 1.442695, %v1459_v38  ;;  %v6096_v40 = vpop.f32.mrb[110].mxu0  ;;  %v7184_v31 = vmax.f32 %v7182_v32, %v7183_v37 }
 0x277   : > { %4504 = vpow2.f32 %v1558_v19  ;;  %v6104_v60 = vpop.f32.mrb[111].mxu0 }
 0x278   : > { %v6087_v62 = vpop.eup %4494  ;;  %4506 = vpow2.f32 %v1560_v47  ;;  %2403 = vmax.xlane.f32.xlu0 %v7176_v8 }
 0x279   : > { %1658 = vadd.xlane.f32.xlu1 %v1657_v2  ;;  %7175 = vst [vmem:[#allocation14_spill] sm:$0xff] %v6087_v62  ;;  %v6094_v6 = vpop.eup %4496  ;;  %4508 = vpow2.f32 %v1562_v41  ;;  %v1386_v7 = vpop.xlane.xlu0 %1385  ;;  %v7179_v2 = vld [vmem:[#allocation16_spill] sm:$0xff] }
 0x27a   : > { %7177 = vst [vmem:[#allocation15_spill] sm:$0xff] %v6094_v6  ;;  %v6098_v46 = vpop.eup %4498  ;;  %v1460_v38 = vsub.f32 %v7179_v2, %v1386_v7  ;;  %v1461_v19 = vsub.f32 %v7180_v16, %v1386_v7  ;;  %v1660_v47 = vadd.f32 %v6094_v6, %v6087_v62  ;;  %v7185_v16 = vld [vmem:[#allocation18_spill] sm:$0xff]  ;;  %v7186_v62 = vld [vmem:[#allocation19_spill] sm:$0xff]  ;;  %v6119_v32 = vpop.f32.mrb[112].mxu0  ;;  %v7194_v2 = vmax.f32 %v5846_v30, %v5850_v39 }
 0x27b   : > { %7178 = vst [vmem:[#allocation78_spill] sm:$0xff] %v6098_v46  ;;  %v6106_v8 = vpop.eup %4500  ;;  %v1389_v41 = vpop.xlane.xlu1 %1388 }
 0x27c   : > { %7181 = vst [vmem:[#allocation16_spill] sm:$0xff] %v6106_v8  ;;  %v1564_v48 = vmul.f32 1.442695, %v1460_v38  ;;  %v1566_v7 = vmul.f32 1.442695, %v1461_v19  ;;  %v1462_v50 = vsub.f32 %v7185_v16, %v1389_v41  ;;  %v1463_v6 = vsub.f32 %v7186_v62, %v1389_v41  ;;  %1661 = vadd.xlane.f32.xlu0 %v1660_v47  ;;  %v6126_v19 = vpop.f32.mrb[113].mxu0 }
 0x27d   : > { %2406 = vmax.xlane.f32.xlu1 %v7184_v31  ;;  %v1663_v42 = vadd.f32 %v6106_v8, %v6098_v46  ;;  %v7188_v38 = vmax.f32 %v5832_v1, %v5836_v57  ;;  %v7192_v41 = vld [vmem:[#allocation21_spill] sm:$0xff] }
 0x27e   : > { %4510 = vpow2.f32 %v1564_v48  ;;  %v1568_v37 = vmul.f32 1.442695, %v1462_v50  ;;  %v1570_v31 = vmul.f32 1.442695, %v1463_v6  ;;  %v6130_v48 = vpop.f32.mrb[114].mxu0 }
 0x27f   : > { %4512 = vpow2.f32 %v1566_v7  ;;  %v6138_v16 = vpop.f32.mrb[115].mxu0 }
 0x280   : > { %v6121_v29 = vpop.eup %4502  ;;  %4514 = vpow2.f32 %v1568_v37  ;;  %2409 = vmax.xlane.f32.xlu0 %v7188_v38 }
 0x281   : > { %1664 = vadd.xlane.f32.xlu1 %v1663_v42  ;;  %7187 = vst [vmem:[#allocation17_spill] sm:$0xff] %v6121_v29  ;;  %v6128_v62 = vpop.eup %4504  ;;  %4516 = vpow2.f32 %v1570_v31  ;;  %v1392_v47 = vpop.xlane.xlu0 %1391  ;;  %v7191_v42 = vld [vmem:[#allocation20_spill] sm:$0xff] }
 0x282   : > { %7189 = vst [vmem:[#allocation18_spill] sm:$0xff] %v6128_v62  ;;  %v6132_v50 = vpop.eup %4506  ;;  %v1464_v6 = vsub.f32 %v7191_v42, %v1392_v47  ;;  %v1465_v7 = vsub.f32 %v7192_v41, %v1392_v47  ;;  %v1666_v37 = vadd.f32 %v6128_v62, %v6121_v29  ;;  %v7195_v41 = vld [vmem:[#allocation22_spill] sm:$0xff]  ;;  %v7196_v29 = vld [vmem:[#allocation23_spill] sm:$0xff]  ;;  %v6153_v30 = vpop.f32.mrb[116].mxu0  ;;  %v7204_v42 = vmax.f32 %v5897_v55, %v5901_v3 }
 0x283   : > { %7190 = vst [vmem:[#allocation19_spill] sm:$0xff] %v6132_v50  ;;  %v6140_v38 = vpop.eup %4508  ;;  %v1395_v31 = vpop.xlane.xlu1 %1394 }
 0x284   : > { %7193 = vst [vmem:[#allocation20_spill] sm:$0xff] %v6140_v38  ;;  %v1572_v8 = vmul.f32 1.442695, %v1464_v6  ;;  %v1574_v47 = vmul.f32 1.442695, %v1465_v7  ;;  %v1466_v57 = vsub.f32 %v7195_v41, %v1395_v31  ;;  %v1467_v62 = vsub.f32 %v7196_v29, %v1395_v31  ;;  %1667 = vadd.xlane.f32.xlu0 %v1666_v37  ;;  %v6160_v7 = vpop.f32.mrb[117].mxu0 }
 0x285   : > { %2412 = vmax.xlane.f32.xlu1 %v7194_v2  ;;  %v1669_v1 = vadd.f32 %v6140_v38, %v6132_v50  ;;  %v7198_v6 = vmax.f32 %v5863_v10, %v5867_v11  ;;  %v6164_v37 = vpop.f32.mrb[118].mxu0 }
 0x286   : > { %4518 = vpow2.f32 %v1572_v8  ;;  %v1576_v39 = vmul.f32 1.442695, %v1466_v57  ;;  %v1578_v2 = vmul.f32 1.442695, %v1467_v62  ;;  %v6170_v8 = vpop.f32.mrb[119].mxu0 }
 0x287   : > { %4520 = vpow2.f32 %v1574_v47 }
 0x288   : > { %v6155_v46 = vpop.eup %4510  ;;  %4522 = vpow2.f32 %v1576_v39  ;;  %2415 = vmax.xlane.f32.xlu0 %v7198_v6  ;;  %v7202_v39 = vmax.f32 %v5877_v12, %v5884_v25 }
 0x289   : > { %1670 = vadd.xlane.f32.xlu1 %v1669_v1  ;;  %7197 = vst [vmem:[#allocation21_spill] sm:$0xff] %v6155_v46  ;;  %v6162_v29 = vpop.eup %4512  ;;  %4524 = vpow2.f32 %v1578_v2 }
 0x28a   : > { %7199 = vst [vmem:[#allocation22_spill] sm:$0xff] %v6162_v29  ;;  %v6166_v57 = vpop.eup %4514  ;;  %v1672_v1 = vadd.f32 %v6162_v29, %v6155_v46  ;;  %v6183_v2 = vpop.f32.mrb[120].mxu0  ;;  %v7212_v29 = vmax.f32 %v5945_v63, %v5952_v36 }
 0x28b   : > { %7200 = vst [vmem:[#allocation23_spill] sm:$0xff] %v6166_v57  ;;  %v6172_v62 = vpop.eup %4516 }
 0x28c   : > { %7201 = vst [vmem:[#allocation79_spill] sm:$0xff] %v6172_v62  ;;  %1673 = vadd.xlane.f32.xlu0 %v1672_v1  ;;  %v1675_v41 = vadd.f32 %v6172_v62, %v6166_v57  ;;  %v7208_v62 = vmax.f32 %v5911_v5, %v5918_v49 }
 0x28d   : > { %2418 = vmax.xlane.f32.xlu1 %v7202_v39  ;;  %v6190_v39 = vpop.f32.mrb[121].mxu0 }
 0x28e   : > { %v6194_v31 = vpop.f32.mrb[122].mxu0 }
 0x290   : > { %v6185_v6 = vpop.eup %4518  ;;  %2421 = vmax.xlane.f32.xlu0 %v7204_v42 }
 0x291   : > { %1676 = vadd.xlane.f32.xlu1 %v1675_v41  ;;  %7203 = vst [vmem:[#allocation80_spill] sm:$0xff] %v6185_v6  ;;  %v6192_v46 = vpop.eup %4520  ;;  %v6200_v41 = vpop.f32.mrb[123].mxu0 }
 0x292   : > { %7205 = vst [vmem:[#allocation81_spill] sm:$0xff] %v6192_v46  ;;  %v6196_v47 = vpop.eup %4522  ;;  %v1678_v1 = vadd.f32 %v6192_v46, %v6185_v6  ;;  %v6213_v38 = vpop.f32.mrb[124].mxu0 }
 0x293   : > { %7206 = vst [vmem:[#allocation82_spill] sm:$0xff] %v6196_v47  ;;  %v6202_v57 = vpop.eup %4524  ;;  %v6215_v6 = vpop.f32.mrb[125].mxu0 }
 0x294   : > { %7207 = vst [vmem:[#allocation83_spill] sm:$0xff] %v6202_v57  ;;  %1679 = vadd.xlane.f32.xlu0 %v1678_v1  ;;  %v1681_v50 = vadd.f32 %v6202_v57, %v6196_v47  ;;  %v6219_v49 = vpop.f32.mrb[126].mxu0 }
 0x295   : > { %2424 = vmax.xlane.f32.xlu1 %v7208_v62  ;;  %7209 = vst [vmem:[#allocation84_spill] sm:$0xff] %v6219_v49  ;;  %v7210_v62 = vmax.f32 %v5931_v56, %v5935_v44  ;;  %v6224_v42 = vpop.f32.mrb[127].mxu0 }
 0x296   : > { %7211 = vst [vmem:[#allocation85_spill] sm:$0xff] %v6224_v42 }
 0x298   : > { %2427 = vmax.xlane.f32.xlu0 %v7210_v62 }
 0x299   : > { %1682 = vadd.xlane.f32.xlu1 %v1681_v50 }
 0x29d   : > { %2430 = vmax.xlane.f32.xlu1 %v7212_v29 }
 0x2c9   : > { %v1614_v47 = vpop.xlane.xlu0 %1613 }
 0x2ca   : > { %4526 = vrcp.f32 %v1614_v47 }
 0x2cb   : > { %v1617_v50 = vpop.xlane.xlu1 %1616 }
 0x2cc   : > { %4528 = vrcp.f32 %v1617_v50 }
 0x2cd   : > { %v1398_v46 = vpop.xlane.xlu0 %1397 }
 0x2ce   : > { %v1468_v57 = vsub.f32 %v5726_v23, %v1398_v46  ;;  %v1469_v5 = vsub.f32 %v5728_v45, %v1398_v46 }
 0x2d0   : > { %v1580_v44 = vmul.f32 1.442695, %v1468_v57  ;;  %v1582_v62 = vmul.f32 1.442695, %v1469_v5 }
 0x2d1   : > { %v1620_v42 = vpop.xlane.xlu0 %1619 }
 0x2d2   : > { %v1401_v56 = vpop.xlane.xlu1 %1400  ;;  %4530 = vpow2.f32 %v1580_v44 }
 0x2d3   : > { %v1470_v3 = vsub.f32 %v5730_v34, %v1401_v56  ;;  %v1471_v1 = vsub.f32 %v5734_v26, %v1401_v56  ;;  %4532 = vpow2.f32 %v1582_v62  ;;  %v7213_v34 = vld [vmem:[#allocation41_spill] sm:$0xff]  ;;  %v7214_v26 = vld [vmem:[#allocation39_spill] sm:$0xff] }
 0x2d4   : > { %v4527_v47 = vpop.eup %4526  ;;  %4534 = vrcp.f32 %v1620_v42  ;;  %v7216_v42 = vld [vmem:[#allocation43_spill] sm:$0xff] }
 0x2d5   : > { %v1584_v29 = vmul.f32 1.442695, %v1470_v3  ;;  %v1586_v36 = vmul.f32 1.442695, %v1471_v1  ;;  %v1404_v63 = vpop.xlane.xlu0 %1403  ;;  %v1741_v46 = vmul.f32 %v4527_v47, %v7213_v34  ;;  %v1740_v56 = vmul.f32 %v4527_v47, %v7214_v26  ;;  %v7215_v1 = vld [vmem:[#allocation45_spill] sm:$0xff] }
 0x2d6   : > { %v1623_v50 = vpop.xlane.xlu1 %1622  ;;  %v1472_v23 = vsub.f32 %v5738_v53, %v1404_v63  ;;  %v1473_v45 = vsub.f32 %v5740_v13, %v1404_v63  ;;  %v4529_v5 = vpop.eup %4528 }
 0x2d7   : > { %4536 = vpow2.f32 %v1584_v29  ;;  %v1743_v62 = vmul.f32 %v4529_v5, %v7215_v1  ;;  %v1742_v49 = vmul.f32 %v4529_v5, %v7216_v42 }
 0x2d8   : > { %4538 = vpow2.f32 %v1586_v36  ;;  %v1588_v44 = vmul.f32 1.442695, %v1472_v23  ;;  %v1590_v57 = vmul.f32 1.442695, %v1473_v45  ;;  %v2896_v45 = vld [vmem:[#allocation5] sm:$0xff] }
 0x2d9   : > { %4540 = vrcp.f32 %v1623_v50  ;;  %v1626_v53 = vpop.xlane.xlu0 %1625  ;;  %v1805_v13 = vpack.c.bf16 %v1743_v62, %v1741_v46  ;;  %v1804_v63 = vpack.c.bf16 %v1742_v49, %v1740_v56  ;;  %v4822_v56 = vld [vmem:[#allocation5 + $0x48] sm:$0xff] }
 0x2da   : > { %v1407_v3 = vpop.xlane.xlu1 %1406  ;;  %4542 = vpow2.f32 %v1588_v44 }
 0x2db   : > { %v1474_v29 = vsub.f32 %v5742_v20, %v1407_v3  ;;  %v1475_v36 = vsub.f32 %v5746_v51, %v1407_v3  ;;  %4544 = vpow2.f32 %v1590_v57  ;;  %1884 = vmatprep.mubr.bf16.mxu1 %v1805_v13 }
 0x2dc   : > { %v6243_v55 = vpop.eup %4530  ;;  %4546 = vrcp.f32 %v1626_v53  ;;  %1885 = vmatmul.mubr.bf16.vlgmr.msra.gmra.mrb[0].mxu1 %v1804_v63  ;;  %v7217_v53 = vld [vmem:[#allocation48_spill] sm:$0xff]  ;;  %v7218_v63 = vld [vmem:[#allocation50_spill] sm:$0xff] }
 0x2dd   : > { %v1592_v50 = vmul.f32 1.442695, %v1474_v29  ;;  %v1594_v34 = vmul.f32 1.442695, %v1475_v36  ;;  %v6245_v23 = vpop.eup %4532  ;;  %v1410_v20 = vpop.xlane.xlu0 %1409  ;;  %4108 = vmatpush3.bf16.msra.mxu1 %v2896_v45  ;;  %v7220_v45 = vld [vmem:[#allocation49_spill] sm:$0xff] }
 0x2de   : > { %v1629_v47 = vpop.xlane.xlu1 %1628  ;;  %v4535_v5 = vpop.eup %4534  ;;  %v1476_v51 = vsub.f32 %v5750_v27, %v1410_v20  ;;  %v1477_v49 = vsub.f32 %v5752_v33, %v1410_v20  ;;  %v1684_v46 = vadd.f32 %v6245_v23, %v6243_v55  ;;  %4109 = vmatprep.subr.bf16.mxu1 %v4822_v56  ;;  %v2897_v33 = vld [vmem:[#allocation5 + $0x8] sm:$0xff] }
 0x2df   : > { %4548 = vpow2.f32 %v1592_v50  ;;  %v1745_v13 = vmul.f32 %v4535_v5, %v7217_v53  ;;  %v4824_v53 = vld [vmem:[#allocation5 + $0x58] sm:$0xff] }
 0x2e0   : > { %4550 = vpow2.f32 %v1594_v34  ;;  %v1596_v57 = vmul.f32 1.442695, %v1476_v51  ;;  %v1598_v3 = vmul.f32 1.442695, %v1477_v49  ;;  %1685 = vadd.xlane.f32.xlu0 %v1684_v46  ;;  %v7219_v34 = vld [vmem:[#allocation47_spill] sm:$0xff]  ;;  %v4823_v49 = vld [vmem:[#allocation5 + $0x50] sm:$0xff] }
 0x2e1   : > { %v6251_v26 = vpop.eup %4536  ;;  %4552 = vrcp.f32 %v1629_v47  ;;  %v1632_v29 = vpop.xlane.xlu0 %1631  ;;  %4110 = vmatpush3.bf16.msra.mxu1 %v2897_v33  ;;  %v1744_v47 = vmul.f32 %v4535_v5, %v7219_v34  ;;  %v2898_v5 = vld [vmem:[#allocation5 + $0x10] sm:$0xff]  ;;  %v7224_v34 = vmax.f32 %v5993_v17, %v6001_v4 }
 0x2e2   : > { %v6253_v44 = vpop.eup %4538  ;;  %v1413_v1 = vpop.xlane.xlu1 %1412  ;;  %4554 = vpow2.f32 %v1596_v57  ;;  %4111 = vmatprep.subr.bf16.mxu1 %v4823_v49  ;;  %v7222_v57 = vmax.f32 %v5982_v24, %v5989_v58  ;;  %v7225_v49 = vld [vmem:[#allocation53_spill] sm:$0xff] }
 0x2e3   : > { %v4541_v62 = vpop.eup %4540  ;;  %v1478_v42 = vsub.f32 %v5756_v0, %v1413_v1  ;;  %v1479_v27 = vsub.f32 %v5758_v59, %v1413_v1  ;;  %v1687_v36 = vadd.f32 %v6253_v44, %v6251_v26  ;;  %4556 = vpow2.f32 %v1598_v3 }
 0x2e4   : > { %v1747_v50 = vmul.f32 %v4541_v62, %v7218_v63  ;;  %v1746_v20 = vmul.f32 %v4541_v62, %v7220_v45  ;;  %v6263_v59 = vpop.eup %4542  ;;  %4558 = vrcp.f32 %v1632_v29  ;;  %2433 = vmax.xlane.f32.xlu0 %v7222_v57 }
 0x2e5   : > { %v1600_v51 = vmul.f32 1.442695, %v1478_v42  ;;  %v1602_v0 = vmul.f32 1.442695, %v1479_v27  ;;  %1688 = vadd.xlane.f32.xlu1 %v1687_v36  ;;  %7221 = vst [vmem:[#allocation41_spill] sm:$0xff] %v6263_v59  ;;  %v6268_v33 = vpop.eup %4544  ;;  %v1416_v3 = vpop.xlane.xlu0 %1415  ;;  %4112 = vmatpush3.bf16.msra.mxu1 %v2898_v5 }
 0x2e6   : > { %v1807_v46 = vpack.c.bf16 %v1747_v50, %v1745_v13  ;;  %v1635_v56 = vpop.xlane.xlu1 %1634  ;;  %v1806_v1 = vpack.c.bf16 %v1746_v20, %v1744_v47  ;;  %v4547_v62 = vpop.eup %4546  ;;  %v1480_v42 = vsub.f32 %v5762_v21, %v1416_v3  ;;  %v1481_v27 = vsub.f32 %v5764_v54, %v1416_v3  ;;  %4113 = vmatprep.subr.bf16.mxu1 %v4824_v53  ;;  %v2899_v20 = vld [vmem:[#allocation5 + $0x18] sm:$0xff]  ;;  %v7228_v3 = vld [vmem:[#allocation55_spill] sm:$0xff] }
 0x2e7   : > { %4560 = vpow2.f32 %v1600_v51  ;;  %v1690_v29 = vadd.f32 %v6268_v33, %v6263_v59 }
 0x2e8   : > { %4562 = vpow2.f32 %v1602_v0  ;;  %1892 = vmatprep.mubr.bf16.mxu1 %v1807_v46  ;;  %v1604_v63 = vmul.f32 1.442695, %v1480_v42  ;;  %v1606_v50 = vmul.f32 1.442695, %v1481_v27  ;;  %v1749_v46 = vmul.f32 %v4547_v62, %v7225_v49 }
 0x2e9   : > { %v6274_v36 = vpop.eup %4548  ;;  %4564 = vrcp.f32 %v1635_v56  ;;  %1893 = vmatmul.mubr.bf16.gmra.mrb[4].mxu1 %v1806_v1  ;;  %2436 = vmax.xlane.f32.xlu1 %v7224_v34  ;;  %v1638_v51 = vpop.xlane.xlu0 %1637  ;;  %v7226_v56 = vld [vmem:[#allocation57_spill] sm:$0xff]  ;;  %v7227_v1 = vld [vmem:[#allocation51_spill] sm:$0xff] }
 0x2ea   : > { %7223 = vst [vmem:[#allocation39_spill] sm:$0xff] %v6274_v36  ;;  %v6276_v13 = vpop.eup %4550  ;;  %1691 = vadd.xlane.f32.xlu0 %v1690_v29  ;;  %v1419_v21 = vpop.xlane.xlu1 %1418  ;;  %4566 = vpow2.f32 %v1604_v63  ;;  %4114 = vmatpush3.bf16.msra.mxu1 %v2899_v20  ;;  %v1748_v5 = vmul.f32 %v4547_v62, %v7227_v1  ;;  %v4825_v29 = vld [vmem:[#allocation5 + $0x60] sm:$0xff]  ;;  %v7230_v63 = vmax.f32 %v6016_v9, %v6023_v18 }
 0x2eb   : > { %v4553_v54 = vpop.eup %4552  ;;  %v1482_v47 = vsub.f32 %v5768_v61, %v1419_v21  ;;  %v1483_v45 = vsub.f32 %v5770_v15, %v1419_v21  ;;  %v1693_v0 = vadd.f32 %v6276_v13, %v6274_v36  ;;  %4568 = vpow2.f32 %v1606_v50  ;;  %4115 = vmatprep.subr.bf16.mxu1 %v4825_v29  ;;  %v2900_v62 = vld [vmem:[#allocation5 + $0x20] sm:$0xff] }
 0x2ec   : > { %v1751_v57 = vmul.f32 %v4553_v54, %v7226_v56  ;;  %v1750_v42 = vmul.f32 %v4553_v54, %v7228_v3  ;;  %v6289_v15 = vpop.eup %4554  ;;  %4570 = vrcp.f32 %v1638_v51  ;;  %v7238_v29 = vld [vmem:[#allocation26_spill] sm:$0xff] }
 0x2ed   : > { %v1608_v27 = vmul.f32 1.442695, %v1482_v47  ;;  %v1610_v61 = vmul.f32 1.442695, %v1483_v45  ;;  %7229 = vst [vmem:[#allocation45_spill] sm:$0xff] %v6289_v15  ;;  %1694 = vadd.xlane.f32.xlu1 %v1693_v0  ;;  %v6294_v20 = vpop.eup %4556  ;;  %v2386_v50 = vpop.xlane.xlu0 %2385  ;;  %v7232_v45 = vld [vmem:[#allocation24_spill] sm:$0xff] }
 0x2ee   : > { %v1809_v53 = vpack.c.bf16 %v1751_v57, %v1749_v46  ;;  %2439 = vmax.xlane.f32.xlu0 %v7230_v63  ;;  %v1641_v34 = vpop.xlane.xlu1 %1640  ;;  %v1808_v21 = vpack.c.bf16 %v1750_v42, %v1748_v5  ;;  %7231 = vst [vmem:[#allocation43_spill] sm:$0xff] %v6294_v20  ;;  %v4559_v54 = vpop.eup %4558  ;;  %4116 = vmatpush3.bf16.msra.mxu1 %v2900_v62  ;;  %v4826_v46 = vld [vmem:[#allocation5 + $0x68] sm:$0xff]  ;;  %v7235_v5 = vld [vmem:[#allocation8_spill] sm:$0xff]  ;;  %v7239_v62 = vld [vmem:[#allocation61_spill] sm:$0xff] }
 0x2ef   : > { %4572 = vpow2.f32 %v1608_v27  ;;  %v2480_v47 = vsub.f32 %v5774_v52, %v2386_v50  ;;  %v2481_v51 = vsub.f32 %v7232_v45, %v2386_v50  ;;  %v1696_v0 = vadd.f32 %v6294_v20, %v6289_v15  ;;  %4117 = vmatprep.subr.bf16.mxu1 %v4826_v46  ;;  %v7237_v27 = vld [vmem:[#allocation25_spill] sm:$0xff]  ;;  %v2901_v63 = vld [vmem:[#allocation5 + $0x28] sm:$0xff]  ;;  %v4827_v20 = vld [vmem:[#allocation5 + $0x70] sm:$0xff] }
 0x2f0   : > { %4574 = vpow2.f32 %v1610_v61  ;;  %1900 = vmatprep.mubr.bf16.mxu1 %v1809_v53  ;;  %v7236_v3 = vmax.f32 %v6027_v22, %v7235_v5  ;;  %v1753_v50 = vmul.f32 %v4559_v54, %v7239_v62 }
 0x2f1   : > { %v6300_v49 = vpop.eup %4560  ;;  %4576 = vrcp.f32 %v1641_v34  ;;  %1901 = vmatmul.mubr.bf16.gmra.mrb[8].mxu1 %v1808_v21  ;;  %v2544_v57 = vmul.f32 1.442695, %v2480_v47  ;;  %v2546_v1 = vmul.f32 1.442695, %v2481_v51  ;;  %v1644_v34 = vpop.xlane.xlu0 %1643  ;;  %v7240_v47 = vld [vmem:[#allocation65_spill] sm:$0xff]  ;;  %v7241_v51 = vld [vmem:[#allocation59_spill] sm:$0xff] }
 0x2f2   : > { %7233 = vst [vmem:[#allocation48_spill] sm:$0xff] %v6300_v49  ;;  %v6302_v56 = vpop.eup %4562  ;;  %2442 = vmax.xlane.f32.xlu1 %v7236_v3  ;;  %1697 = vadd.xlane.f32.xlu0 %v1696_v0  ;;  %v2389_v52 = vpop.xlane.xlu1 %2388  ;;  %v1752_v46 = vmul.f32 %v4559_v54, %v7241_v51  ;;  %v7242_v0 = vld [vmem:[#allocation63_spill] sm:$0xff]  ;;  %v2902_v54 = vld [vmem:[#allocation5 + $0x30] sm:$0xff] }
 0x2f3   : > { %7234 = vst [vmem:[#allocation50_spill] sm:$0xff] %v6302_v56  ;;  %v4565_v42 = vpop.eup %4564  ;;  %v2482_v61 = vsub.f32 %v7237_v27, %v2389_v52  ;;  %v2483_v53 = vsub.f32 %v7238_v29, %v2389_v52  ;;  %v1699_v21 = vadd.f32 %v6302_v56, %v6300_v49  ;;  %4578 = vpow2.f32 %v2544_v57  ;;  %4118 = vmatpush3.bf16.msra.mxu1 %v2901_v63  ;;  %v7258_v56 = vld [vmem:[#allocation69_spill] sm:$0xff] }
 0x2f4   : > { %v1755_v45 = vmul.f32 %v4565_v42, %v7240_v47  ;;  %v1754_v3 = vmul.f32 %v4565_v42, %v7242_v0  ;;  %4580 = vpow2.f32 %v2546_v1  ;;  %4119 = vmatprep.subr.bf16.mxu1 %v4827_v20  ;;  %v6315_v52 = vpop.eup %4566  ;;  %v7244_v57 = vmax.f32 %v6051_v35, %v6058_v14  ;;  %v7246_v20 = vld [vmem:[#allocation27_spill] sm:$0xff]  ;;  %v7250_v0 = vld [vmem:[#allocation76_spill] sm:$0xff] }
 0x2f5   : > { %v2548_v15 = vmul.f32 1.442695, %v2482_v61  ;;  %v2550_v27 = vmul.f32 1.442695, %v2483_v53  ;;  %7243 = vst [vmem:[#allocation47_spill] sm:$0xff] %v6315_v52  ;;  %4582 = vrcp.f32 %v1644_v34  ;;  %v6320_v47 = vpop.eup %4568  ;;  %v2392_v1 = vpop.xlane.xlu0 %2391  ;;  %v7247_v53 = vld [vmem:[#allocation28_spill] sm:$0xff] }
 0x2f6   : > { %1700 = vadd.xlane.f32.xlu1 %v1699_v21  ;;  %v1811_v29 = vpack.c.bf16 %v1755_v45, %v1753_v50  ;;  %2445 = vmax.xlane.f32.xlu0 %v7244_v57  ;;  %v1647_v63 = vpop.xlane.xlu1 %1646  ;;  %v1810_v62 = vpack.c.bf16 %v1754_v3, %v1752_v46  ;;  %7245 = vst [vmem:[#allocation49_spill] sm:$0xff] %v6320_v47  ;;  %v4571_v42 = vpop.eup %4570  ;;  %v4828_v45 = vld [vmem:[#allocation5 + $0x78] sm:$0xff]  ;;  %v7251_v3 = vld [vmem:[#allocation12_spill] sm:$0xff] }
 0x2f7   : > { %4584 = vpow2.f32 %v2548_v15  ;;  %4120 = vmatpush3.bf16.msra.mxu1 %v2902_v54  ;;  %v2484_v61 = vsub.f32 %v7246_v20, %v2392_v1  ;;  %v2485_v34 = vsub.f32 %v7247_v53, %v2392_v1  ;;  %v1702_v21 = vadd.f32 %v6320_v47, %v6315_v52  ;;  %v7253_v54 = vld [vmem:[#allocation29_spill] sm:$0xff]  ;;  %v7254_v20 = vld [vmem:[#allocation30_spill] sm:$0xff] }
 0x2f8   : > { %4586 = vpow2.f32 %v2550_v27  ;;  %1908 = vmatprep.mubr.bf16.mxu1 %v1811_v29  ;;  %4121 = vmatprep.subr.bf16.mxu1 %v4828_v45  ;;  %v7252_v27 = vmax.f32 %v7250_v0, %v7251_v3  ;;  %v2903_v52 = vld [vmem:[#allocation5 + $0x38] sm:$0xff]  ;;  %v7255_v45 = vld [vmem:[#allocation68_spill] sm:$0xff] }
 0x2f9   : > { %v6326_v50 = vpop.eup %4572  ;;  %4588 = vrcp.f32 %v1647_v63  ;;  %1909 = vmatmul.mubr.bf16.gmra.mrb[12].mxu1 %v1810_v62  ;;  %v2552_v51 = vmul.f32 1.442695, %v2484_v61  ;;  %v2554_v46 = vmul.f32 1.442695, %v2485_v34  ;;  %v1650_v63 = vpop.xlane.xlu0 %1649  ;;  %v1757_v47 = vmul.f32 %v4571_v42, %v7255_v45  ;;  %v3484_v61 = vld [vmem:[#allocation5 + $0x40] sm:$0xff] }
 0x2fa   : > { %7248 = vst [vmem:[#allocation53_spill] sm:$0xff] %v6326_v50  ;;  %v6328_v15 = vpop.eup %4574  ;;  %2448 = vmax.xlane.f32.xlu1 %v7252_v27  ;;  %1703 = vadd.xlane.f32.xlu0 %v1702_v21  ;;  %v2395_v29 = vpop.xlane.xlu1 %2394  ;;  %v7256_v34 = vld [vmem:[#allocation70_spill] sm:$0xff]  ;;  %v7257_v27 = vld [vmem:[#allocation67_spill] sm:$0xff] }
 0x2fb   : > { %7249 = vst [vmem:[#allocation57_spill] sm:$0xff] %v6328_v15  ;;  %v4577_v57 = vpop.eup %4576  ;;  %v2486_v1 = vsub.f32 %v7253_v54, %v2395_v29  ;;  %v2487_v53 = vsub.f32 %v7254_v20, %v2395_v29  ;;  %v1705_v62 = vadd.f32 %v6328_v15, %v6326_v50  ;;  %4590 = vpow2.f32 %v2552_v51  ;;  %4122 = vmatpush3.bf16.msra.mxu1 %v2903_v52 }
 0x2fc   : > { %v1759_v49 = vmul.f32 %v4577_v57, %v7256_v34  ;;  %v1756_v21 = vmul.f32 %v4571_v42, %v7257_v27  ;;  %v1758_v36 = vmul.f32 %v4577_v57, %v7258_v56  ;;  %4592 = vpow2.f32 %v2554_v46  ;;  %4241 = vmatprep.subr.bf16.mxu1 %v3484_v61  ;;  %v7262_v46 = vld [vmem:[#allocation31_spill] sm:$0xff] }
 0x2fd   : > { %v2556_v54 = vmul.f32 1.442695, %v2486_v1  ;;  %v2558_v59 = vmul.f32 1.442695, %v2487_v53  ;;  %v6341_v29 = vpop.eup %4578  ;;  %4594 = vrcp.f32 %v1650_v63  ;;  %v7260_v20 = vmax.f32 %v6085_v28, %v6092_v43  ;;  %v2398_v42 = vpop.xlane.xlu0 %2397  ;;  %v7263_v1 = vld [vmem:[#allocation32_spill] sm:$0xff] }
 0x2fe   : > { %7259 = vst [vmem:[#allocation51_spill] sm:$0xff] %v6341_v29  ;;  %1706 = vadd.xlane.f32.xlu1 %v1705_v62  ;;  %v1813_v52 = vpack.c.bf16 %v1759_v49, %v1757_v47  ;;  %v1653_v51 = vpop.xlane.xlu1 %1652  ;;  %v1812_v45 = vpack.c.bf16 %v1758_v36, %v1756_v21  ;;  %v6346_v34 = vpop.eup %4580  ;;  %v2488_v57 = vsub.f32 %v7262_v46, %v2398_v42  ;;  %v7267_v21 = vld [vmem:[#allocation33_spill] sm:$0xff] }
 0x2ff   : > { %2451 = vmax.xlane.f32.xlu0 %v7260_v20  ;;  %7261 = vst [vmem:[#allocation55_spill] sm:$0xff] %v6346_v34  ;;  %4596 = vpow2.f32 %v2556_v54  ;;  %v4583_v56 = vpop.eup %4582  ;;  %v2489_v53 = vsub.f32 %v7263_v1, %v2398_v42  ;;  %v2672_v63 = vadd.f32 %v6346_v34, %v6341_v29  ;;  %v7266_v61 = vmax.f32 %v6096_v40, %v6104_v60  ;;  %v7268_v20 = vld [vmem:[#allocation34_spill] sm:$0xff]  ;;  %v7272_v29 = vld [vmem:[#allocation73_spill] sm:$0xff] }
 0x300   : > { %4598 = vpow2.f32 %v2558_v59  ;;  %1916 = vmatprep.mubr.bf16.mxu1 %v1813_v52  ;;  %v2560_v36 = vmul.f32 1.442695, %v2488_v57  ;;  %v7270_v57 = vld [vmem:[#allocation74_spill] sm:$0xff] }
 0x301   : > { %v6352_v62 = vpop.eup %4584  ;;  %4600 = vrcp.f32 %v1653_v51  ;;  %1917 = vmatmul.mubr.bf16.gmra.mrb[16].mxu1 %v1812_v45  ;;  %v2562_v47 = vmul.f32 1.442695, %v2489_v53  ;;  %v1656_v42 = vpop.xlane.xlu0 %1655  ;;  %v7269_v45 = vld [vmem:[#allocation72_spill] sm:$0xff]  ;;  %v7271_v53 = vld [vmem:[#allocation71_spill] sm:$0xff] }
 0x302   : > { %7264 = vst [vmem:[#allocation24_spill] sm:$0xff] %v6352_v62  ;;  %v6354_v49 = vpop.eup %4586  ;;  %2454 = vmax.xlane.f32.xlu1 %v7266_v61  ;;  %v2401_v59 = vpop.xlane.xlu1 %2400  ;;  %v1761_v46 = vmul.f32 %v4583_v56, %v7269_v45  ;;  %4602 = vpow2.f32 %v2560_v36  ;;  %v1760_v34 = vmul.f32 %v4583_v56, %v7271_v53 }
 0x303   : > { %7265 = vst [vmem:[#allocation8_spill] sm:$0xff] %v6354_v49  ;;  %2673 = vadd.xlane.f32.xlu0 %v2672_v63  ;;  %v4589_v27 = vpop.eup %4588  ;;  %v2490_v54 = vsub.f32 %v7267_v21, %v2401_v59  ;;  %v2491_v52 = vsub.f32 %v7268_v20, %v2401_v59  ;;  %v2675_v51 = vadd.f32 %v6354_v49, %v6352_v62  ;;  %4604 = vpow2.f32 %v2562_v47 }
 0x304   : > { %v1763_v1 = vmul.f32 %v4589_v27, %v7270_v57  ;;  %v1762_v61 = vmul.f32 %v4589_v27, %v7272_v29  ;;  %4606 = vrcp.f32 %v1656_v42  ;;  %v7274_v59 = vmax.f32 %v6119_v32, %v6126_v19  ;;  %v7276_v29 = vld [vmem:[#allocation35_spill] sm:$0xff]  ;;  %v7277_v27 = vld [vmem:[#allocation36_spill] sm:$0xff] }
 0x305   : > { %v2564_v63 = vmul.f32 1.442695, %v2490_v54  ;;  %v2566_v50 = vmul.f32 1.442695, %v2491_v52  ;;  %v6367_v15 = vpop.eup %4590  ;;  %v2404_v56 = vpop.xlane.xlu0 %2403 }
 0x306   : > { %7273 = vst [vmem:[#allocation25_spill] sm:$0xff] %v6367_v15  ;;  %2676 = vadd.xlane.f32.xlu1 %v2675_v51  ;;  %v1815_v21 = vpack.c.bf16 %v1763_v1, %v1761_v46  ;;  %v1659_v20 = vpop.xlane.xlu1 %1658  ;;  %v1814_v36 = vpack.c.bf16 %v1762_v61, %v1760_v34  ;;  %v6372_v45 = vpop.eup %4592  ;;  %v2492_v47 = vsub.f32 %v7276_v29, %v2404_v56  ;;  %v7281_v61 = vld [vmem:[#allocation37_spill] sm:$0xff] }
 0x307   : > { %2457 = vmax.xlane.f32.xlu0 %v7274_v59  ;;  %7275 = vst [vmem:[#allocation26_spill] sm:$0xff] %v6372_v45  ;;  %4608 = vpow2.f32 %v2564_v63  ;;  %v4595_v57 = vpop.eup %4594  ;;  %v2493_v54 = vsub.f32 %v7277_v27, %v2404_v56  ;;  %v2678_v52 = vadd.f32 %v6372_v45, %v6367_v15  ;;  %v7280_v1 = vmax.f32 %v6130_v48, %v6138_v16  ;;  %v7282_v59 = vld [vmem:[#allocation38_spill] sm:$0xff]  ;;  %v7286_v45 = vld [vmem:[#allocation75_spill] sm:$0xff] }
 0x308   : > { %4610 = vpow2.f32 %v2566_v50  ;;  %1924 = vmatprep.mubr.bf16.mxu1 %v1815_v21  ;;  %v2568_v34 = vmul.f32 1.442695, %v2492_v47  ;;  %v7284_v47 = vld [vmem:[#allocation9_spill] sm:$0xff] }
 0x309   : > { %v6378_v42 = vpop.eup %4596  ;;  %4612 = vrcp.f32 %v1659_v20  ;;  %1925 = vmatmul.mubr.bf16.gmra.mrb[20].mxu1 %v1814_v36  ;;  %v2570_v46 = vmul.f32 1.442695, %v2493_v54  ;;  %v1662_v56 = vpop.xlane.xlu0 %1661  ;;  %v7283_v36 = vld [vmem:[#allocation7_spill] sm:$0xff]  ;;  %v7285_v54 = vld [vmem:[#allocation6_spill] sm:$0xff] }
 0x30a   : > { %7278 = vst [vmem:[#allocation61_spill] sm:$0xff] %v6378_v42  ;;  %v6380_v51 = vpop.eup %4598  ;;  %2460 = vmax.xlane.f32.xlu1 %v7280_v1  ;;  %v2407_v50 = vpop.xlane.xlu1 %2406  ;;  %v1765_v29 = vmul.f32 %v4595_v57, %v7283_v36  ;;  %4614 = vpow2.f32 %v2568_v34  ;;  %v1764_v15 = vmul.f32 %v4595_v57, %v7285_v54 }
 0x30b   : > { %7279 = vst [vmem:[#allocation65_spill] sm:$0xff] %v6380_v51  ;;  %2679 = vadd.xlane.f32.xlu0 %v2678_v52  ;;  %v4601_v53 = vpop.eup %4600  ;;  %v2494_v63 = vsub.f32 %v7281_v61, %v2407_v50  ;;  %v2495_v21 = vsub.f32 %v7282_v59, %v2407_v50  ;;  %v2681_v20 = vadd.f32 %v6380_v51, %v6378_v42  ;;  %4616 = vpow2.f32 %v2570_v46 }
 0x30c   : > { %v1767_v27 = vmul.f32 %v4601_v53, %v7284_v47  ;;  %v1766_v1 = vmul.f32 %v4601_v53, %v7286_v45  ;;  %v6393_v62 = vpop.eup %4602  ;;  %4618 = vrcp.f32 %v1662_v56  ;;  %v7288_v50 = vmax.f32 %v6153_v30, %v6160_v7  ;;  %v7290_v45 = vld [vmem:[#allocation40_spill] sm:$0xff]  ;;  %v7291_v53 = vld [vmem:[#allocation42_spill] sm:$0xff] }
 0x30d   : > { %v2572_v52 = vmul.f32 1.442695, %v2494_v63  ;;  %v2574_v49 = vmul.f32 1.442695, %v2495_v21  ;;  %7287 = vst [vmem:[#allocation59_spill] sm:$0xff] %v6393_v62  ;;  %v6398_v36 = vpop.eup %4604  ;;  %v2410_v57 = vpop.xlane.xlu0 %2409 }
 0x30e   : > { %2682 = vadd.xlane.f32.xlu1 %v2681_v20  ;;  %v1817_v61 = vpack.c.bf16 %v1767_v27, %v1765_v29  ;;  %v1665_v59 = vpop.xlane.xlu1 %1664  ;;  %v1816_v34 = vpack.c.bf16 %v1766_v1, %v1764_v15  ;;  %7289 = vst [vmem:[#allocation63_spill] sm:$0xff] %v6398_v36  ;;  %v4607_v47 = vpop.eup %4606  ;;  %v2496_v46 = vsub.f32 %v7290_v45, %v2410_v57  ;;  %v7293_v1 = vld [vmem:[#allocation44_spill] sm:$0xff] }
 0x30f   : > { %2463 = vmax.xlane.f32.xlu0 %v7288_v50  ;;  %4620 = vpow2.f32 %v2572_v52  ;;  %v2497_v63 = vsub.f32 %v7291_v53, %v2410_v57  ;;  %v2684_v21 = vadd.f32 %v6398_v36, %v6393_v62  ;;  %v7292_v27 = vmax.f32 %v6164_v37, %v6170_v8  ;;  %v7294_v50 = vld [vmem:[#allocation46_spill] sm:$0xff]  ;;  %v7298_v36 = vld [vmem:[#allocation77_spill] sm:$0xff] }
 0x310   : > { %4622 = vpow2.f32 %v2574_v49  ;;  %1932 = vmatprep.mubr.bf16.mxu1 %v1817_v61  ;;  %v2576_v15 = vmul.f32 1.442695, %v2496_v46  ;;  %v7296_v46 = vld [vmem:[#allocation13_spill] sm:$0xff] }
 0x311   : > { %v6404_v56 = vpop.eup %4608  ;;  %4624 = vrcp.f32 %v1665_v59  ;;  %1933 = vmatmul.mubr.bf16.gmra.mrb[24].mxu1 %v1816_v34  ;;  %v2578_v29 = vmul.f32 1.442695, %v2497_v63  ;;  %v1668_v57 = vpop.xlane.xlu0 %1667  ;;  %v7295_v34 = vld [vmem:[#allocation11_spill] sm:$0xff]  ;;  %v7297_v63 = vld [vmem:[#allocation10_spill] sm:$0xff] }
 0x312   : > { %v6406_v20 = vpop.eup %4610  ;;  %2466 = vmax.xlane.f32.xlu1 %v7292_v27  ;;  %v2413_v49 = vpop.xlane.xlu1 %2412  ;;  %v1769_v45 = vmul.f32 %v4607_v47, %v7295_v34  ;;  %4626 = vpow2.f32 %v2576_v15  ;;  %v1768_v62 = vmul.f32 %v4607_v47, %v7297_v63 }
 0x313   : > { %2685 = vadd.xlane.f32.xlu0 %v2684_v21  ;;  %v4613_v54 = vpop.eup %4612  ;;  %v2498_v52 = vsub.f32 %v7293_v1, %v2413_v49  ;;  %v2499_v61 = vsub.f32 %v7294_v50, %v2413_v49  ;;  %v2687_v59 = vadd.f32 %v6406_v20, %v6404_v56  ;;  %4628 = vpow2.f32 %v2578_v29 }
 0x314   : > { %v1771_v53 = vmul.f32 %v4613_v54, %v7296_v46  ;;  %v1770_v27 = vmul.f32 %v4613_v54, %v7298_v36  ;;  %v6419_v51 = vpop.eup %4614  ;;  %4630 = vrcp.f32 %v1668_v57  ;;  %v7300_v49 = vmax.f32 %v6183_v2, %v6190_v39 }
 0x315   : > { %v2580_v21 = vmul.f32 1.442695, %v2498_v52  ;;  %v2582_v42 = vmul.f32 1.442695, %v2499_v61  ;;  %7299 = vst [vmem:[#allocation27_spill] sm:$0xff] %v6419_v51  ;;  %v6424_v34 = vpop.eup %4616  ;;  %v2416_v47 = vpop.xlane.xlu0 %2415 }
 0x316   : > { %2688 = vadd.xlane.f32.xlu1 %v2687_v59  ;;  %v1819_v1 = vpack.c.bf16 %v1771_v53, %v1769_v45  ;;  %v1671_v50 = vpop.xlane.xlu1 %1670  ;;  %v1818_v15 = vpack.c.bf16 %v1770_v27, %v1768_v62  ;;  %7301 = vst [vmem:[#allocation28_spill] sm:$0xff] %v6424_v34  ;;  %v4619_v46 = vpop.eup %4618  ;;  %v2500_v36 = vsub.f32 %v5863_v10, %v2416_v47  ;;  %v7305_v27 = vld [vmem:[#allocation15_spill] sm:$0xff] }
 0x317   : > { %2469 = vmax.xlane.f32.xlu0 %v7300_v49  ;;  %4632 = vpow2.f32 %v2580_v21  ;;  %v2501_v29 = vsub.f32 %v5867_v11, %v2416_v47  ;;  %v2690_v54 = vadd.f32 %v6424_v34, %v6419_v51  ;;  %v7304_v59 = vmax.f32 %v6194_v31, %v6200_v41  ;;  %v7306_v49 = vld [vmem:[#allocation16_spill] sm:$0xff]  ;;  %v7308_v47 = vld [vmem:[#allocation78_spill] sm:$0xff]  ;;  %v7323_v51 = vld [vmem:[#allocation19_spill] sm:$0xff] }
 0x318   : > { %4634 = vpow2.f32 %v2582_v42  ;;  %1940 = vmatprep.mubr.bf16.mxu1 %v1819_v1  ;;  %v2584_v62 = vmul.f32 1.442695, %v2500_v36  ;;  %v1773_v21 = vmul.f32 %v4619_v46, %v7305_v27 }
 0x319   : > { %v6430_v52 = vpop.eup %4620  ;;  %4636 = vrcp.f32 %v1671_v50  ;;  %1941 = vmatmul.mubr.bf16.gmra.mrb[28].mxu1 %v1818_v15  ;;  %v2586_v57 = vmul.f32 1.442695, %v2501_v29  ;;  %v1674_v53 = vpop.xlane.xlu0 %1673  ;;  %v7307_v50 = vld [vmem:[#allocation14_spill] sm:$0xff] }
 0x31a   : > { %7302 = vst [vmem:[#allocation76_spill] sm:$0xff] %v6430_v52  ;;  %v6432_v61 = vpop.eup %4622  ;;  %2472 = vmax.xlane.f32.xlu1 %v7304_v59  ;;  %v2419_v42 = vpop.xlane.xlu1 %2418  ;;  %4638 = vpow2.f32 %v2584_v62  ;;  %v1772_v15 = vmul.f32 %v4619_v46, %v7307_v50 }
 0x31b   : > { %7303 = vst [vmem:[#allocation12_spill] sm:$0xff] %v6432_v61  ;;  %2691 = vadd.xlane.f32.xlu0 %v2690_v54  ;;  %v4625_v10 = vpop.eup %4624  ;;  %v2502_v11 = vsub.f32 %v5877_v12, %v2419_v42  ;;  %v2503_v45 = vsub.f32 %v5884_v25, %v2419_v42  ;;  %v2693_v63 = vadd.f32 %v6432_v61, %v6430_v52  ;;  %4640 = vpow2.f32 %v2586_v57  ;;  %v7312_v57 = vld [vmem:[#allocation52_spill] sm:$0xff] }
 0x31c   : > { %v1775_v1 = vmul.f32 %v4625_v10, %v7306_v49  ;;  %v1774_v36 = vmul.f32 %v4625_v10, %v7308_v47  ;;  %v6445_v59 = vpop.eup %4626  ;;  %4642 = vrcp.f32 %v1674_v53  ;;  %v7310_v25 = vmax.f32 %v6213_v38, %v6215_v6  ;;  %v7316_v47 = vld [vmem:[#allocation85_spill] sm:$0xff] }
 0x31d   : > { %v2588_v29 = vmul.f32 1.442695, %v2502_v11  ;;  %v2590_v54 = vmul.f32 1.442695, %v2503_v45  ;;  %7309 = vst [vmem:[#allocation29_spill] sm:$0xff] %v6445_v59  ;;  %v6450_v27 = vpop.eup %4628  ;;  %v2422_v46 = vpop.xlane.xlu0 %2421  ;;  %v7313_v11 = vld [vmem:[#allocation54_spill] sm:$0xff] }
 0x31e   : > { %2694 = vadd.xlane.f32.xlu1 %v2693_v63  ;;  %v1821_v12 = vpack.c.bf16 %v1775_v1, %v1773_v21  ;;  %v1677_v42 = vpop.xlane.xlu1 %1676  ;;  %v1820_v62 = vpack.c.bf16 %v1774_v36, %v1772_v15  ;;  %7311 = vst [vmem:[#allocation30_spill] sm:$0xff] %v6450_v27  ;;  %v4631_v49 = vpop.eup %4630  ;;  %v2504_v10 = vsub.f32 %v7312_v57, %v2422_v46  ;;  %v7315_v15 = vld [vmem:[#allocation84_spill] sm:$0xff] }
 0x31f   : > { %2475 = vmax.xlane.f32.xlu0 %v7310_v25  ;;  %4644 = vpow2.f32 %v2588_v29  ;;  %v2505_v45 = vsub.f32 %v7313_v11, %v2422_v46  ;;  %v2696_v53 = vadd.f32 %v6450_v27, %v6445_v59  ;;  %v7317_v36 = vmax.f32 %v7315_v15, %v7316_v47  ;;  %v7318_v25 = vld [vmem:[#allocation56_spill] sm:$0xff]  ;;  %v7319_v46 = vld [vmem:[#allocation58_spill] sm:$0xff]  ;;  %v7322_v27 = vld [vmem:[#allocation17_spill] sm:$0xff] }
 0x320   : > { %4646 = vpow2.f32 %v2590_v54  ;;  %1948 = vmatprep.mubr.bf16.mxu1 %v1821_v12  ;;  %v2592_v1 = vmul.f32 1.442695, %v2504_v10  ;;  %v7321_v10 = vld [vmem:[#allocation20_spill] sm:$0xff]  ;;  %v1776_v52 = vmul.f32 %v4631_v49, %v7322_v27 }
 0x321   : > { %v6456_v63 = vpop.eup %4632  ;;  %4648 = vrcp.f32 %v1677_v42  ;;  %1949 = vmatmul.mubr.bf16.gmra.mrb[32].mxu1 %v1820_v62  ;;  %v2594_v50 = vmul.f32 1.442695, %v2505_v45  ;;  %v1680_v11 = vpop.xlane.xlu0 %1679  ;;  %v7320_v62 = vld [vmem:[#allocation18_spill] sm:$0xff]  ;;  %v7326_v27 = vld [vmem:[#allocation60_spill] sm:$0xff] }
 0x322   : > { %7314 = vst [vmem:[#allocation68_spill] sm:$0xff] %v6456_v63  ;;  %v6458_v21 = vpop.eup %4634  ;;  %2478 = vmax.xlane.f32.xlu1 %v7317_v36  ;;  %v2425_v29 = vpop.xlane.xlu1 %2424  ;;  %v1777_v59 = vmul.f32 %v4631_v49, %v7320_v62  ;;  %4650 = vpow2.f32 %v2592_v1 }
 0x323   : > { %2697 = vadd.xlane.f32.xlu0 %v2696_v53  ;;  %v4637_v54 = vpop.eup %4636  ;;  %v2506_v12 = vsub.f32 %v7318_v25, %v2425_v29  ;;  %v2507_v57 = vsub.f32 %v7319_v46, %v2425_v29  ;;  %v2699_v42 = vadd.f32 %v6458_v21, %v6456_v63  ;;  %4652 = vpow2.f32 %v2594_v50 }
 0x324   : > { %v1779_v45 = vmul.f32 %v4637_v54, %v7321_v10  ;;  %v1778_v36 = vmul.f32 %v4637_v54, %v7323_v51  ;;  %v6471_v34 = vpop.eup %4638  ;;  %4654 = vrcp.f32 %v1680_v11  ;;  %v7327_v51 = vld [vmem:[#allocation62_spill] sm:$0xff] }
 0x325   : > { %v2596_v53 = vmul.f32 1.442695, %v2506_v12  ;;  %v2598_v61 = vmul.f32 1.442695, %v2507_v57  ;;  %7324 = vst [vmem:[#allocation70_spill] sm:$0xff] %v6471_v34  ;;  %v6473_v63 = vpop.eup %4640  ;;  %v2428_v1 = vpop.xlane.xlu0 %2427 }
 0x326   : > { %2700 = vadd.xlane.f32.xlu1 %v2699_v42  ;;  %v1823_v29 = vpack.c.bf16 %v1779_v45, %v1777_v59  ;;  %v1683_v25 = vpop.xlane.xlu1 %1682  ;;  %v1822_v46 = vpack.c.bf16 %v1778_v36, %v1776_v52  ;;  %7325 = vst [vmem:[#allocation67_spill] sm:$0xff] %v6473_v63  ;;  %v4643_v62 = vpop.eup %4642  ;;  %v2508_v49 = vsub.f32 %v7326_v27, %v2428_v1  ;;  %v7330_v45 = vld [vmem:[#allocation66_spill] sm:$0xff]  ;;  %v7332_v27 = vld [vmem:[#allocation79_spill] sm:$0xff] }
 0x327   : > { %4656 = vpow2.f32 %v2596_v53  ;;  %v2509_v50 = vsub.f32 %v7327_v51, %v2428_v1  ;;  %v2702_v54 = vadd.f32 %v6473_v63, %v6471_v34  ;;  %v7334_v34 = vld [vmem:[#allocation23_spill] sm:$0xff] }
 0x328   : > { %4658 = vpow2.f32 %v2598_v61  ;;  %1956 = vmatprep.mubr.bf16.mxu1 %v1823_v29  ;;  %v2600_v52 = vmul.f32 1.442695, %v2508_v49  ;;  %v7329_v61 = vld [vmem:[#allocation64_spill] sm:$0xff]  ;;  %v7331_v29 = vld [vmem:[#allocation22_spill] sm:$0xff] }
 0x329   : > { %v6479_v12 = vpop.eup %4644  ;;  %4660 = vrcp.f32 %v1683_v25  ;;  %1957 = vmatmul.mubr.bf16.gmra.mrb[36].mxu1 %v1822_v46  ;;  %v2602_v57 = vmul.f32 1.442695, %v2509_v50  ;;  %2703 = vadd.xlane.f32.xlu0 %v2702_v54  ;;  %v1781_v1 = vmul.f32 %v4643_v62, %v7331_v29  ;;  %v7333_v46 = vld [vmem:[#allocation21_spill] sm:$0xff] }
 0x32a   : > { %7328 = vst [vmem:[#allocation69_spill] sm:$0xff] %v6479_v12  ;;  %v6481_v59 = vpop.eup %4646  ;;  %v2431_v11 = vpop.xlane.xlu1 %2430  ;;  %4662 = vpow2.f32 %v2600_v52  ;;  %v1780_v51 = vmul.f32 %v4643_v62, %v7333_v46 }
 0x32b   : > { %v4649_v42 = vpop.eup %4648  ;;  %v2510_v10 = vsub.f32 %v7329_v61, %v2431_v11  ;;  %v2511_v36 = vsub.f32 %v7330_v45, %v2431_v11  ;;  %v2705_v53 = vadd.f32 %v6481_v59, %v6479_v12  ;;  %4664 = vpow2.f32 %v2602_v57 }
 0x32c   : > { %v1783_v25 = vmul.f32 %v4649_v42, %v7332_v27  ;;  %v1782_v49 = vmul.f32 %v4649_v42, %v7334_v34  ;;  %v6491_v63 = vpop.eup %4650 }
 0x32d   : > { %v2604_v50 = vmul.f32 1.442695, %v2510_v10  ;;  %v2606_v54 = vmul.f32 1.442695, %v2511_v36  ;;  %2706 = vadd.xlane.f32.xlu1 %v2705_v53  ;;  %v6493_v45 = vpop.eup %4652  ;;  %v7335_v10 = vld [vmem:[#allocation81_spill] sm:$0xff]  ;;  %v7336_v53 = vld [vmem:[#allocation83_spill] sm:$0xff] }
 0x32e   : > { %v1825_v61 = vpack.c.bf16 %v1783_v25, %v1781_v1  ;;  %v1824_v11 = vpack.c.bf16 %v1782_v49, %v1780_v51  ;;  %v4655_v12 = vpop.eup %4654  ;;  %v2708_v52 = vadd.f32 %v6493_v45, %v6491_v63  ;;  %v7337_v1 = vld [vmem:[#allocation80_spill] sm:$0xff]  ;;  %v7338_v25 = vld [vmem:[#allocation82_spill] sm:$0xff] }
 0x32f   : > { %4666 = vpow2.f32 %v2604_v50  ;;  %v1785_v36 = vmul.f32 %v4655_v12, %v7335_v10  ;;  %v1784_v27 = vmul.f32 %v4655_v12, %v7337_v1 }
 0x330   : > { %4668 = vpow2.f32 %v2606_v54  ;;  %1964 = vmatprep.mubr.bf16.mxu1 %v1825_v61  ;;  %2709 = vadd.xlane.f32.xlu0 %v2708_v52 }
 0x331   : > { %v6497_v62 = vpop.eup %4656  ;;  %1965 = vmatmul.mubr.bf16.gmra.mrb[40].mxu1 %v1824_v11 }
 0x332   : > { %v6499_v34 = vpop.eup %4658 }
 0x333   : > { %v4661_v57 = vpop.eup %4660  ;;  %v2711_v42 = vadd.f32 %v6499_v34, %v6497_v62 }
 0x334   : > { %v1787_v29 = vmul.f32 %v4661_v57, %v7336_v53  ;;  %v1786_v46 = vmul.f32 %v4661_v57, %v7338_v25  ;;  %v6507_v51 = vpop.eup %4662 }
 0x335   : > { %2712 = vadd.xlane.f32.xlu1 %v2711_v42  ;;  %7339 = vst [vmem:[#allocation31_spill] sm:$0xff] %v6507_v51  ;;  %v6509_v54 = vpop.eup %4664 }
 0x336   : > { %v1827_v49 = vpack.c.bf16 %v1787_v29, %v1785_v36  ;;  %v1826_v50 = vpack.c.bf16 %v1786_v46, %v1784_v27  ;;  %v2714_v61 = vadd.f32 %v6509_v54, %v6507_v51 }
 0x337   : > { %v4235_v57 = vpop.f32.mrb[128].mxu0 }
 0x338   : > { %1972 = vmatprep.mubr.bf16.mxu1 %v1827_v49  ;;  %2715 = vadd.xlane.f32.xlu0 %v2714_v61  ;;  %v4236_v42 = vpop.f32.mrb[129].mxu0 }
 0x339   : > { %v6513_v11 = vpop.eup %4666  ;;  %1973 = vmatmul.mubr.bf16.gmra.mrb[44].mxu1 %v1826_v50  ;;  %v6519_v10 = vadd.f32 %v4236_v42, %v4235_v57  ;;  %v4238_v36 = vpop.f32.mrb[130].mxu0 }
 0x33a   : > { %v6515_v52 = vpop.eup %4668  ;;  %v4239_v53 = vpop.f32.mrb[131].mxu0 }
 0x33b   : > { %v2717_v12 = vadd.f32 %v6515_v52, %v6513_v11 }
 0x33d   : > { %2718 = vadd.xlane.f32.xlu1 %v2717_v12 }
 0x36d   : > { %v1686_v29 = vpop.xlane.xlu0 %1685 }
 0x36e   : > { %4670 = vrcp.f32 %v1686_v29 }
 0x371   : > { %v2434_v27 = vpop.xlane.xlu0 %2433 }
 0x372   : > { %v1689_v1 = vpop.xlane.xlu1 %1688  ;;  %v2512_v25 = vsub.f32 %v5982_v24, %v2434_v27  ;;  %v2513_v46 = vsub.f32 %v5989_v58, %v2434_v27 }
 0x373   : > { %4672 = vrcp.f32 %v1689_v1 }
 0x374   : > { %v2608_v49 = vmul.f32 1.442695, %v2512_v25  ;;  %v2610_v50 = vmul.f32 1.442695, %v2513_v46 }
 0x376   : > { %v2437_v61 = vpop.xlane.xlu1 %2436  ;;  %4674 = vpow2.f32 %v2608_v49 }
 0x377   : > { %v1692_v51 = vpop.xlane.xlu0 %1691  ;;  %v2514_v12 = vsub.f32 %v5993_v17, %v2437_v61  ;;  %v2515_v57 = vsub.f32 %v6001_v4, %v2437_v61  ;;  %4676 = vpow2.f32 %v2610_v50 }
 0x378   : > { %v4671_v42 = vpop.eup %4670  ;;  %4678 = vrcp.f32 %v1692_v51 }
 0x379   : > { %v2612_v36 = vmul.f32 1.442695, %v2514_v12  ;;  %v2614_v53 = vmul.f32 1.442695, %v2515_v57  ;;  %v1789_v25 = vmul.f32 %v4671_v42, %v6245_v23  ;;  %v1788_v51 = vmul.f32 %v4671_v42, %v6243_v55 }
 0x37a   : > { %v1695_v29 = vpop.xlane.xlu1 %1694 }
 0x37b   : > { %v2440_v1 = vpop.xlane.xlu0 %2439  ;;  %4680 = vpow2.f32 %v2612_v36 }
 0x37c   : > { %v2516_v24 = vsub.f32 %v6016_v9, %v2440_v1  ;;  %v2517_v58 = vsub.f32 %v6023_v18, %v2440_v1  ;;  %4682 = vpow2.f32 %v2614_v53 }
 0x37d   : > { %v4673_v27 = vpop.eup %4672  ;;  %4684 = vrcp.f32 %v1695_v29 }
 0x37e   : > { %v2616_v17 = vmul.f32 1.442695, %v2516_v24  ;;  %v2618_v46 = vmul.f32 1.442695, %v2517_v58  ;;  %v1791_v4 = vmul.f32 %v4673_v27, %v6253_v44  ;;  %v1790_v61 = vmul.f32 %v4673_v27, %v6251_v26 }
 0x37f   : > { %v2443_v49 = vpop.xlane.xlu1 %2442  ;;  %v1698_v50 = vpop.xlane.xlu0 %1697 }
 0x380   : > { %4686 = vpow2.f32 %v2616_v17  ;;  %v2518_v9 = vsub.f32 %v6027_v22, %v2443_v49  ;;  %v2519_v18 = vsub.f32 %v7235_v5, %v2443_v49  ;;  %v1829_v12 = vpack.c.bf16 %v1791_v4, %v1789_v25  ;;  %v6533_v23 = vpop.eup %4674 }
 0x381   : > { %4688 = vpow2.f32 %v2618_v46  ;;  %v1828_v57 = vpack.c.bf16 %v1790_v61, %v1788_v51  ;;  %v6535_v44 = vpop.eup %4676  ;;  %v7340_v51 = vld [vmem:[#allocation41_spill] sm:$0xff] }
 0x382   : > { %v2620_v36 = vmul.f32 1.442695, %v2518_v9  ;;  %v2622_v53 = vmul.f32 1.442695, %v2519_v18  ;;  %4690 = vrcp.f32 %v1698_v50  ;;  %1980 = vmatprep.mubr.bf16.mxu1 %v1829_v12  ;;  %v4679_v26 = vpop.eup %4678  ;;  %v2720_v42 = vadd.f32 %v6535_v44, %v6533_v23  ;;  %v7341_v9 = vld [vmem:[#allocation39_spill] sm:$0xff] }
 0x383   : > { %v1701_v29 = vpop.xlane.xlu1 %1700  ;;  %1981 = vmatmul.mubr.bf16.gmra.mrb[48].mxu1 %v1828_v57  ;;  %v2446_v55 = vpop.xlane.xlu0 %2445  ;;  %v1793_v46 = vmul.f32 %v4679_v26, %v6268_v33  ;;  %v1792_v61 = vmul.f32 %v4679_v26, %v7340_v51  ;;  %v7344_v51 = vld [vmem:[#allocation45_spill] sm:$0xff] }
 0x384   : > { %4692 = vpow2.f32 %v2620_v36  ;;  %v2520_v22 = vsub.f32 %v6051_v35, %v2446_v55  ;;  %v2521_v5 = vsub.f32 %v6058_v14, %v2446_v55  ;;  %2721 = vadd.xlane.f32.xlu0 %v2720_v42 }
 0x385   : > { %4694 = vpow2.f32 %v2622_v53  ;;  %v6541_v1 = vpop.eup %4680 }
 0x386   : > { %4696 = vrcp.f32 %v1701_v29  ;;  %v2624_v24 = vmul.f32 1.442695, %v2520_v22  ;;  %v2626_v58 = vmul.f32 1.442695, %v2521_v5  ;;  %v6543_v27 = vpop.eup %4682 }
 0x387   : > { %v2449_v25 = vpop.xlane.xlu1 %2448  ;;  %v1704_v17 = vpop.xlane.xlu0 %1703  ;;  %v2723_v49 = vadd.f32 %v6543_v27, %v6541_v1 }
 0x388   : > { %v4685_v4 = vpop.eup %4684  ;;  %4698 = vpow2.f32 %v2624_v24  ;;  %v2522_v35 = vsub.f32 %v7250_v0, %v2449_v25  ;;  %v2523_v14 = vsub.f32 %v7251_v3, %v2449_v25 }
 0x389   : > { %4700 = vpow2.f32 %v2626_v58  ;;  %v1795_v50 = vmul.f32 %v4685_v4, %v6276_v13  ;;  %v1794_v18 = vmul.f32 %v4685_v4, %v7341_v9  ;;  %2724 = vadd.xlane.f32.xlu1 %v2723_v49  ;;  %v7343_v49 = vld [vmem:[#allocation50_spill] sm:$0xff]  ;;  %v7345_v9 = vld [vmem:[#allocation48_spill] sm:$0xff] }
 0x38a   : > { %v6553_v12 = vpop.eup %4686  ;;  %v2628_v57 = vmul.f32 1.442695, %v2522_v35  ;;  %v2630_v33 = vmul.f32 1.442695, %v2523_v14  ;;  %4702 = vrcp.f32 %v1704_v17 }
 0x38b   : > { %v6555_v36 = vpop.eup %4688  ;;  %v1831_v0 = vpack.c.bf16 %v1795_v50, %v1793_v46  ;;  %v1707_v3 = vpop.xlane.xlu1 %1706  ;;  %v1830_v53 = vpack.c.bf16 %v1794_v18, %v1792_v61  ;;  %v7342_v46 = vld [vmem:[#allocation43_spill] sm:$0xff] }
 0x38c   : > { %v2452_v29 = vpop.xlane.xlu0 %2451  ;;  %v4691_v55 = vpop.eup %4690  ;;  %4704 = vpow2.f32 %v2628_v57  ;;  %v2726_v22 = vadd.f32 %v6555_v36, %v6553_v12 }
 0x38d   : > { %v2524_v13 = vsub.f32 %v6085_v28, %v2452_v29  ;;  %v2525_v26 = vsub.f32 %v6092_v43, %v2452_v29  ;;  %4706 = vpow2.f32 %v2630_v33  ;;  %1988 = vmatprep.mubr.bf16.mxu1 %v1831_v0  ;;  %v1797_v28 = vmul.f32 %v4691_v55, %v7342_v46 }
 0x38e   : > { %v6561_v5 = vpop.eup %4692  ;;  %4708 = vrcp.f32 %v1707_v3  ;;  %1989 = vmatmul.mubr.bf16.gmra.mrb[52].mxu1 %v1830_v53  ;;  %2727 = vadd.xlane.f32.xlu0 %v2726_v22  ;;  %v1796_v61 = vmul.f32 %v4691_v55, %v7344_v51  ;;  %v7348_v51 = vld [vmem:[#allocation47_spill] sm:$0xff] }
 0x38f   : > { %v2632_v42 = vmul.f32 1.442695, %v2524_v13  ;;  %v2634_v24 = vmul.f32 1.442695, %v2525_v26  ;;  %v6563_v58 = vpop.eup %4694  ;;  %v2455_v25 = vpop.xlane.xlu1 %2454 }
 0x390   : > { %v2674_v17 = vpop.xlane.xlu0 %2673  ;;  %v4697_v4 = vpop.eup %4696  ;;  %v2526_v43 = vsub.f32 %v6096_v40, %v2455_v25  ;;  %v2527_v35 = vsub.f32 %v6104_v60, %v2455_v25  ;;  %v2729_v14 = vadd.f32 %v6563_v58, %v6561_v5 }
 0x391   : > { %4710 = vpow2.f32 %v2632_v42  ;;  %v1799_v50 = vmul.f32 %v4697_v4, %v7343_v49  ;;  %v1798_v18 = vmul.f32 %v4697_v4, %v7345_v9  ;;  %v7346_v4 = vld [vmem:[#allocation49_spill] sm:$0xff] }
 0x392   : > { %4712 = vpow2.f32 %v2634_v24  ;;  %v6573_v57 = vpop.eup %4698  ;;  %v2636_v33 = vmul.f32 1.442695, %v2526_v43  ;;  %v2638_v0 = vmul.f32 1.442695, %v2527_v35  ;;  %2730 = vadd.xlane.f32.xlu1 %v2729_v14  ;;  %v7347_v49 = vld [vmem:[#allocation57_spill] sm:$0xff] }
 0x393   : > { %4714 = vrcp.f32 %v2674_v17  ;;  %v6575_v3 = vpop.eup %4700  ;;  %v1833_v40 = vpack.c.bf16 %v1799_v50, %v1797_v28  ;;  %v2677_v60 = vpop.xlane.xlu1 %2676  ;;  %v1832_v53 = vpack.c.bf16 %v1798_v18, %v1796_v61  ;;  %v7349_v9 = vld [vmem:[#allocation53_spill] sm:$0xff] }
 0x394   : > { %v2458_v29 = vpop.xlane.xlu0 %2457  ;;  %v4703_v13 = vpop.eup %4702  ;;  %4716 = vpow2.f32 %v2636_v33  ;;  %v2732_v22 = vadd.f32 %v6575_v3, %v6573_v57 }
 0x395   : > { %v2528_v26 = vsub.f32 %v6119_v32, %v2458_v29  ;;  %v2529_v55 = vsub.f32 %v6126_v19, %v2458_v29  ;;  %4718 = vpow2.f32 %v2638_v0  ;;  %1996 = vmatprep.mubr.bf16.mxu1 %v1833_v40  ;;  %v1801_v32 = vmul.f32 %v4703_v13, %v7346_v4  ;;  %v7350_v4 = vld [vmem:[#allocation51_spill] sm:$0xff] }
 0x396   : > { %v6581_v42 = vpop.eup %4704  ;;  %4720 = vrcp.f32 %v2677_v60  ;;  %1997 = vmatmul.mubr.bf16.gmra.mrb[56].mxu1 %v1832_v53  ;;  %2733 = vadd.xlane.f32.xlu0 %v2732_v22  ;;  %v1800_v61 = vmul.f32 %v4703_v13, %v7348_v51  ;;  %v7352_v51 = vld [vmem:[#allocation55_spill] sm:$0xff] }
 0x397   : > { %v2640_v24 = vmul.f32 1.442695, %v2528_v26  ;;  %v2642_v25 = vmul.f32 1.442695, %v2529_v55  ;;  %v6583_v17 = vpop.eup %4706  ;;  %v2461_v46 = vpop.xlane.xlu1 %2460 }
 0x398   : > { %v2680_v28 = vpop.xlane.xlu0 %2679  ;;  %v4709_v43 = vpop.eup %4708  ;;  %v2530_v19 = vsub.f32 %v6130_v48, %v2461_v46  ;;  %v2531_v35 = vsub.f32 %v6138_v16, %v2461_v46  ;;  %v2735_v14 = vadd.f32 %v6583_v17, %v6581_v42 }
 0x399   : > { %4722 = vpow2.f32 %v2640_v24  ;;  %v1803_v50 = vmul.f32 %v4709_v43, %v7347_v49  ;;  %v1802_v18 = vmul.f32 %v4709_v43, %v7349_v9  ;;  %v7351_v49 = vld [vmem:[#allocation24_spill] sm:$0xff] }
 0x39a   : > { %4724 = vpow2.f32 %v2642_v25  ;;  %v2644_v0 = vmul.f32 1.442695, %v2530_v19  ;;  %v2646_v40 = vmul.f32 1.442695, %v2531_v35  ;;  %2736 = vadd.xlane.f32.xlu1 %v2735_v14  ;;  %v7353_v9 = vld [vmem:[#allocation8_spill] sm:$0xff] }
 0x39b   : > { %v6593_v33 = vpop.eup %4710  ;;  %4726 = vrcp.f32 %v2680_v28  ;;  %v1835_v48 = vpack.c.bf16 %v1803_v50, %v1801_v32  ;;  %v2683_v16 = vpop.xlane.xlu1 %2682  ;;  %v1834_v53 = vpack.c.bf16 %v1802_v18, %v1800_v61 }
 0x39c   : > { %v6595_v60 = vpop.eup %4712  ;;  %v2464_v29 = vpop.xlane.xlu0 %2463  ;;  %4728 = vpow2.f32 %v2644_v0 }
 0x39d   : > { %v4715_v26 = vpop.eup %4714  ;;  %v2532_v55 = vsub.f32 %v6153_v30, %v2464_v29  ;;  %v2533_v13 = vsub.f32 %v6160_v7, %v2464_v29  ;;  %v2738_v22 = vadd.f32 %v6595_v60, %v6593_v33  ;;  %4730 = vpow2.f32 %v2646_v40  ;;  %2004 = vmatprep.mubr.bf16.mxu1 %v1835_v48 }
 0x39e   : > { %v6601_v24 = vpop.eup %4716  ;;  %4732 = vrcp.f32 %v2683_v16  ;;  %2005 = vmatmul.mubr.bf16.gmra.mrb[60].mxu1 %v1834_v53  ;;  %v2800_v32 = vmul.f32 %v4715_v26, %v7350_v4  ;;  %v2801_v61 = vmul.f32 %v4715_v26, %v7352_v51  ;;  %v7355_v51 = vld [vmem:[#allocation65_spill] sm:$0xff] }
 0x39f   : > { %v2648_v25 = vmul.f32 1.442695, %v2532_v55  ;;  %v2650_v46 = vmul.f32 1.442695, %v2533_v13  ;;  %2739 = vadd.xlane.f32.xlu0 %v2738_v22  ;;  %v6603_v28 = vpop.eup %4718  ;;  %v2467_v43 = vpop.xlane.xlu1 %2466 }
 0x3a0   : > { %v2686_v30 = vpop.xlane.xlu0 %2685  ;;  %v4721_v19 = vpop.eup %4720  ;;  %v2534_v7 = vsub.f32 %v6164_v37, %v2467_v43  ;;  %v2535_v35 = vsub.f32 %v6170_v8, %v2467_v43  ;;  %v2741_v14 = vadd.f32 %v6603_v28, %v6601_v24 }
 0x3a1   : > { %4734 = vpow2.f32 %v2648_v25  ;;  %v2802_v50 = vmul.f32 %v4721_v19, %v7351_v49  ;;  %v2803_v18 = vmul.f32 %v4721_v19, %v7353_v9  ;;  %v7356_v9 = vld [vmem:[#allocation25_spill] sm:$0xff] }
 0x3a2   : > { %4736 = vpow2.f32 %v2650_v46  ;;  %v2652_v40 = vmul.f32 1.442695, %v2534_v7  ;;  %v2654_v48 = vmul.f32 1.442695, %v2535_v35  ;;  %2742 = vadd.xlane.f32.xlu1 %v2741_v14  ;;  %v3476_v46 = vld [vmem:[#allocation5] sm:$0xff] }
 0x3a3   : > { %v6613_v0 = vpop.eup %4722  ;;  %4738 = vrcp.f32 %v2686_v30  ;;  %v2865_v37 = vpack.c.bf16 %v2803_v18, %v2801_v61  ;;  %v2689_v8 = vpop.xlane.xlu1 %2688  ;;  %v2864_v53 = vpack.c.bf16 %v2802_v50, %v2800_v32  ;;  %v3485_v30 = vld [vmem:[#allocation5 + $0x48] sm:$0xff] }
 0x3a4   : > { %v6615_v16 = vpop.eup %4724  ;;  %v2470_v29 = vpop.xlane.xlu0 %2469  ;;  %4740 = vpow2.f32 %v2652_v40  ;;  %v7357_v40 = vld [vmem:[#allocation61_spill] sm:$0xff] }
 0x3a5   : > { %v4727_v55 = vpop.eup %4726  ;;  %v2536_v13 = vsub.f32 %v6183_v2, %v2470_v29  ;;  %v2537_v26 = vsub.f32 %v6190_v39, %v2470_v29  ;;  %v2744_v22 = vadd.f32 %v6615_v16, %v6613_v0  ;;  %4742 = vpow2.f32 %v2654_v48  ;;  %2944 = vmatprep.mubr.bf16.mxu1 %v2865_v37  ;;  %v7354_v39 = vld [vmem:[#allocation26_spill] sm:$0xff]  ;;  %v3477_v29 = vld [vmem:[#allocation5 + $0x8] sm:$0xff] }
 0x3a6   : > { %v6621_v25 = vpop.eup %4728  ;;  %4744 = vrcp.f32 %v2689_v8  ;;  %2945 = vmatmul.mubr.bf16.vlgmr.msra.gmra.mrb[64].mxu1 %v2864_v53  ;;  %v2805_v7 = vmul.f32 %v4727_v55, %v7354_v39  ;;  %v2804_v18 = vmul.f32 %v4727_v55, %v7356_v9 }
 0x3a7   : > { %v2656_v4 = vmul.f32 1.442695, %v2536_v13  ;;  %v2658_v43 = vmul.f32 1.442695, %v2537_v26  ;;  %2745 = vadd.xlane.f32.xlu0 %v2744_v22  ;;  %v6623_v32 = vpop.eup %4730  ;;  %4242 = vmatpush3.bf16.msra.mxu1 %v3476_v46  ;;  %v2473_v2 = vpop.xlane.xlu1 %2472 }
 0x3a8   : > { %v2692_v19 = vpop.xlane.xlu0 %2691  ;;  %v4733_v35 = vpop.eup %4732  ;;  %4243 = vmatprep.subr.bf16.mxu1 %v3485_v30  ;;  %v2538_v14 = vsub.f32 %v6194_v31, %v2473_v2  ;;  %v2539_v49 = vsub.f32 %v6200_v41, %v2473_v2  ;;  %v2747_v50 = vadd.f32 %v6623_v32, %v6621_v25  ;;  %v3486_v31 = vld [vmem:[#allocation5 + $0x50] sm:$0xff] }
 0x3a9   : > { %4746 = vpow2.f32 %v2656_v4  ;;  %v2807_v61 = vmul.f32 %v4733_v35, %v7355_v51  ;;  %v2806_v48 = vmul.f32 %v4733_v35, %v7357_v40 }
 0x3aa   : > { %4748 = vpow2.f32 %v2658_v43  ;;  %v2660_v8 = vmul.f32 1.442695, %v2538_v14  ;;  %v2662_v53 = vmul.f32 1.442695, %v2539_v49  ;;  %2748 = vadd.xlane.f32.xlu1 %v2747_v50  ;;  %v3487_v14 = vld [vmem:[#allocation5 + $0x58] sm:$0xff]  ;;  %v7358_v49 = vld [vmem:[#allocation63_spill] sm:$0xff] }
 0x3ab   : > { %v6633_v37 = vpop.eup %4734  ;;  %4244 = vmatpush3.bf16.msra.mxu1 %v3477_v29  ;;  %4750 = vrcp.f32 %v2692_v19  ;;  %v2867_v41 = vpack.c.bf16 %v2807_v61, %v2805_v7  ;;  %v2695_v26 = vpop.xlane.xlu1 %2694  ;;  %v2866_v22 = vpack.c.bf16 %v2806_v48, %v2804_v18  ;;  %v3478_v19 = vld [vmem:[#allocation5 + $0x10] sm:$0xff]  ;;  %v7359_v48 = vld [vmem:[#allocation59_spill] sm:$0xff] }
 0x3ac   : > { %v6635_v13 = vpop.eup %4736  ;;  %v2476_v46 = vpop.xlane.xlu0 %2475  ;;  %4752 = vpow2.f32 %v2660_v8  ;;  %4245 = vmatprep.subr.bf16.mxu1 %v3486_v31 }
 0x3ad   : > { %v4739_v4 = vpop.eup %4738  ;;  %v2540_v55 = vsub.f32 %v6213_v38, %v2476_v46  ;;  %v2541_v43 = vsub.f32 %v6215_v6, %v2476_v46  ;;  %v2750_v30 = vadd.f32 %v6635_v13, %v6633_v37  ;;  %4754 = vpow2.f32 %v2662_v53  ;;  %2952 = vmatprep.mubr.bf16.mxu1 %v2867_v41 }
 0x3ae   : > { %v6641_v2 = vpop.eup %4740  ;;  %4756 = vrcp.f32 %v2695_v26  ;;  %2953 = vmatmul.mubr.bf16.gmra.mrb[68].mxu1 %v2866_v22  ;;  %v2809_v6 = vmul.f32 %v4739_v4, %v7358_v49  ;;  %v2808_v8 = vmul.f32 %v4739_v4, %v7359_v48  ;;  %v3479_v26 = vld [vmem:[#allocation5 + $0x18] sm:$0xff] }
 0x3af   : > { %v2664_v39 = vmul.f32 1.442695, %v2540_v55  ;;  %v2666_v7 = vmul.f32 1.442695, %v2541_v43  ;;  %2751 = vadd.xlane.f32.xlu0 %v2750_v30  ;;  %v6643_v35 = vpop.eup %4742  ;;  %4246 = vmatpush3.bf16.msra.mxu1 %v3478_v19  ;;  %v2479_v38 = vpop.xlane.xlu1 %2478 }
 0x3b0   : > { %v4745_v50 = vpop.eup %4744  ;;  %4247 = vmatprep.subr.bf16.mxu1 %v3487_v14  ;;  %v2542_v51 = vsub.f32 %v7315_v15, %v2479_v38  ;;  %v2543_v61 = vsub.f32 %v7316_v47, %v2479_v38  ;;  %v2698_v9 = vpop.xlane.xlu0 %2697  ;;  %v2753_v18 = vadd.f32 %v6643_v35, %v6641_v2  ;;  %v3488_v47 = vld [vmem:[#allocation5 + $0x60] sm:$0xff] }
 0x3b1   : > { %4758 = vpow2.f32 %v2664_v39  ;;  %v2811_v40 = vmul.f32 %v4745_v50, %v6406_v20  ;;  %v2810_v53 = vmul.f32 %v4745_v50, %v6404_v56  ;;  %v4011_v15 = vpop.f32.mrb[0].mxu1  ;;  %v3480_v14 = vld [vmem:[#allocation5 + $0x20] sm:$0xff] }
 0x3b2   : > { %4760 = vpow2.f32 %v2666_v7  ;;  %v2668_v31 = vmul.f32 1.442695, %v2542_v51  ;;  %v2670_v41 = vmul.f32 1.442695, %v2543_v61  ;;  %2754 = vadd.xlane.f32.xlu1 %v2753_v18  ;;  %v4012_v20 = vpop.f32.mrb[1].mxu1 }
 0x3b3   : > { %v6653_v29 = vpop.eup %4746  ;;  %4248 = vmatpush3.bf16.msra.mxu1 %v3479_v26  ;;  %4762 = vrcp.f32 %v2698_v9  ;;  %v2869_v46 = vpack.c.bf16 %v2811_v40, %v2809_v6  ;;  %v2701_v55 = vpop.xlane.xlu1 %2700  ;;  %v2868_v43 = vpack.c.bf16 %v2810_v53, %v2808_v8  ;;  %v6657_v4 = vadd.f32 %v4012_v20, %v4011_v15  ;;  %v3489_v6 = vld [vmem:[#allocation5 + $0x68] sm:$0xff]  ;;  %v7360_v9 = vld [vmem:[#allocation28_spill] sm:$0xff] }
 0x3b4   : > { %v6655_v22 = vpop.eup %4748  ;;  %4764 = vpow2.f32 %v2668_v31  ;;  %4249 = vmatprep.subr.bf16.mxu1 %v3488_v47  ;;  %v4014_v56 = vpop.f32.mrb[2].mxu1  ;;  %v7361_v40 = vld [vmem:[#allocation12_spill] sm:$0xff]  ;;  %v7362_v8 = vld [vmem:[#allocation27_spill] sm:$0xff] }
 0x3b5   : > { %v2756_v30 = vadd.f32 %v6655_v22, %v6653_v29  ;;  %v4751_v19 = vpop.eup %4750  ;;  %4766 = vpow2.f32 %v2670_v41  ;;  %2960 = vmatprep.mubr.bf16.mxu1 %v2869_v46  ;;  %v4015_v39 = vpop.f32.mrb[3].mxu1  ;;  %v7363_v31 = vld [vmem:[#allocation76_spill] sm:$0xff]  ;;  %v3481_v15 = vld [vmem:[#allocation5 + $0x28] sm:$0xff] }
 0x3b6   : > { %v6661_v7 = vpop.eup %4752  ;;  %4768 = vrcp.f32 %v2701_v55  ;;  %2961 = vmatmul.mubr.bf16.gmra.mrb[72].mxu1 %v2868_v43  ;;  %v6663_v38 = vadd.f32 %v4015_v39, %v4014_v56  ;;  %v2704_v50 = vpop.xlane.xlu0 %2703  ;;  %v2813_v18 = vmul.f32 %v4751_v19, %v7360_v9  ;;  %v2812_v53 = vmul.f32 %v4751_v19, %v7362_v8  ;;  %v3490_v55 = vld [vmem:[#allocation5 + $0x70] sm:$0xff]  ;;  %v3491_v9 = vld [vmem:[#allocation5 + $0x78] sm:$0xff] }
 0x3b7   : > { %2757 = vadd.xlane.f32.xlu0 %v2756_v30  ;;  %v6665_v49 = vpop.eup %4754  ;;  %4250 = vmatpush3.bf16.msra.mxu1 %v3480_v14  ;;  %4770 = vrcp.f32 %v2704_v50 }
 0x3b8   : > { %v4757_v51 = vpop.eup %4756  ;;  %4251 = vmatprep.subr.bf16.mxu1 %v3489_v6  ;;  %v2759_v61 = vadd.f32 %v6665_v49, %v6661_v7  ;;  %v3482_v6 = vld [vmem:[#allocation5 + $0x30] sm:$0xff] }
 0x3b9   : > { %v2815_v48 = vmul.f32 %v4757_v51, %v7361_v40  ;;  %v2814_v41 = vmul.f32 %v4757_v51, %v7363_v31 }
 0x3ba   : > { %2760 = vadd.xlane.f32.xlu1 %v2759_v61  ;;  %v2707_v47 = vpop.xlane.xlu1 %2706 }
 0x3bb   : > { %v6673_v26 = vpop.eup %4758  ;;  %4252 = vmatpush3.bf16.msra.mxu1 %v3481_v15  ;;  %v2871_v43 = vpack.c.bf16 %v2815_v48, %v2813_v18  ;;  %4772 = vrcp.f32 %v2707_v47  ;;  %v2870_v20 = vpack.c.bf16 %v2814_v41, %v2812_v53  ;;  %v3389_v48 = vsel %vm3388_vm3, %v6519_v10, -inf  ;;  %v7366_v41 = vld [vmem:[#allocation30_spill] sm:$0xff] }
 0x3bc   : > { %v6675_v46 = vpop.eup %4760  ;;  %4253 = vmatprep.subr.bf16.mxu1 %v3490_v55  ;;  %v4017_v56 = vpop.f32.mrb[4].mxu1  ;;  %v7367_v55 = vld [vmem:[#allocation29_spill] sm:$0xff] }
 0x3bd   : > { %v2762_v30 = vadd.f32 %v6675_v46, %v6673_v26  ;;  %v4763_v19 = vpop.eup %4762  ;;  %2968 = vmatprep.mubr.bf16.mxu1 %v2871_v43  ;;  %v4018_v39 = vpop.f32.mrb[5].mxu1 }
 0x3be   : > { %v6679_v14 = vpop.eup %4764  ;;  %2969 = vmatmul.mubr.bf16.gmra.mrb[76].mxu1 %v2870_v20  ;;  %v6681_v50 = vadd.f32 %v4018_v39, %v4017_v56  ;;  %v4020_v51 = vpop.f32.mrb[6].mxu1  ;;  %v2817_v15 = vmul.f32 %v4763_v19, %v7366_v41  ;;  %v2816_v43 = vmul.f32 %v4763_v19, %v7367_v55  ;;  %v7368_v20 = vld [vmem:[#allocation68_spill] sm:$0xff]  ;;  %v7369_v19 = vld [vmem:[#allocation67_spill] sm:$0xff] }
 0x3bf   : > { %2763 = vadd.xlane.f32.xlu0 %v2762_v30  ;;  %v6683_v61 = vpop.eup %4766  ;;  %4254 = vmatpush3.bf16.msra.mxu1 %v3482_v6  ;;  %v4021_v18 = vpop.f32.mrb[7].mxu1  ;;  %v3483_v30 = vld [vmem:[#allocation5 + $0x38] sm:$0xff] }
 0x3c0   : > { %7364 = vst [vmem:[#allocation32_spill] sm:$0xff] %v6681_v50  ;;  %v2710_v40 = vpop.xlane.xlu0 %2709  ;;  %v4769_v8 = vpop.eup %4768  ;;  %4255 = vmatprep.subr.bf16.mxu1 %v3491_v9  ;;  %v6687_v53 = vadd.f32 %v4021_v18, %v4020_v51  ;;  %v2765_v31 = vadd.f32 %v6683_v61, %v6679_v14 }
 0x3c1   : > { %4774 = vrcp.f32 %v2710_v40  ;;  %v2819_v47 = vmul.f32 %v4769_v8, %v6458_v21  ;;  %v2818_v56 = vmul.f32 %v4769_v8, %v7368_v20  ;;  %v4771_v6 = vpop.eup %4770 }
 0x3c2   : > { %7365 = vst [vmem:[#allocation33_spill] sm:$0xff] %v6687_v53  ;;  %2766 = vadd.xlane.f32.xlu1 %v2765_v31  ;;  %v2713_v39 = vpop.xlane.xlu1 %2712  ;;  %v2821_v55 = vmul.f32 %v4771_v6, %v7369_v19  ;;  %v7370_v31 = vld [vmem:[#allocation69_spill] sm:$0xff] }
 0x3c3   : > { %3390 = vmax.xlane.f32.xlu0 %v3389_v48  ;;  %4256 = vmatpush3.bf16.msra.mxu1 %v3483_v30  ;;  %v2873_v51 = vpack.c.bf16 %v2819_v47, %v2817_v15  ;;  %4776 = vrcp.f32 %v2713_v39  ;;  %v2872_v9 = vpack.c.bf16 %v2818_v56, %v2816_v43  ;;  %v7371_v47 = vld [vmem:[#allocation70_spill] sm:$0xff] }
 0x3c4   : > { %v4023_v18 = vpop.f32.mrb[8].mxu1  ;;  %v2820_v43 = vmul.f32 %v4771_v6, %v7371_v47 }
 0x3c5   : > { %v4773_v53 = vpop.eup %4772  ;;  %2976 = vmatprep.mubr.bf16.mxu1 %v2873_v51  ;;  %v4024_v41 = vpop.f32.mrb[9].mxu1 }
 0x3c6   : > { %2977 = vmatmul.mubr.bf16.gmra.mrb[80].mxu1 %v2872_v9  ;;  %v6695_v40 = vadd.f32 %v4024_v41, %v4023_v18  ;;  %v4026_v21 = vpop.f32.mrb[10].mxu1  ;;  %v2823_v8 = vmul.f32 %v4773_v53, %v6481_v59  ;;  %v2822_v48 = vmul.f32 %v4773_v53, %v7370_v31  ;;  %v2716_v50 = vpop.xlane.xlu0 %2715 }
 0x3c7   : > { %v4027_v20 = vpop.f32.mrb[11].mxu1  ;;  %4778 = vrcp.f32 %v2716_v50 }
 0x3c8   : > { %v6700_v30 = vadd.f32 %v4027_v20, %v4026_v21  ;;  %v2875_v15 = vpack.c.bf16 %v2823_v8, %v2821_v55  ;;  %v2874_v39 = vpack.c.bf16 %v2822_v48, %v2820_v43 }
 0x3ca   : > { %2984 = vmatprep.mubr.bf16.mxu1 %v2875_v15  ;;  %v2719_v56 = vpop.xlane.xlu1 %2718 }
 0x3cb   : > { %v4775_v51 = vpop.eup %4774  ;;  %4780 = vrcp.f32 %v2719_v56 }
 0x3cc   : > { %v4029_v9 = vpop.f32.mrb[12].mxu1  ;;  %v2825_v19 = vmul.f32 %v4775_v51, %v6493_v45  ;;  %v2824_v31 = vmul.f32 %v4775_v51, %v6491_v63  ;;  %v7372_v51 = vld [vmem:[#allocation31_spill] sm:$0xff] }
 0x3cd   : > { %v4777_v18 = vpop.eup %4776  ;;  %v4030_v41 = vpop.f32.mrb[13].mxu1 }
 0x3ce   : > { %2985 = vmatmul.mubr.bf16.gmra.mrb[84].mxu1 %v2874_v39  ;;  %v6703_v59 = vadd.f32 %v4030_v41, %v4029_v9  ;;  %v4032_v53 = vpop.f32.mrb[14].mxu1  ;;  %v2827_v21 = vmul.f32 %v4777_v18, %v6499_v34  ;;  %v2826_v55 = vmul.f32 %v4777_v18, %v6497_v62 }
 0x3cf   : > { %v4033_v6 = vpop.f32.mrb[15].mxu1 }
 0x3d0   : > { %v6708_v50 = vadd.f32 %v4033_v6, %v4032_v53  ;;  %v2877_v8 = vpack.c.bf16 %v2827_v21, %v2825_v19  ;;  %v2876_v48 = vpack.c.bf16 %v2826_v55, %v2824_v31 }
 0x3d1   : > { %v4779_v20 = vpop.eup %4778 }
 0x3d2   : > { %2992 = vmatprep.mubr.bf16.mxu1 %v2877_v8  ;;  %v2829_v34 = vmul.f32 %v4779_v20, %v6509_v54  ;;  %v2828_v41 = vmul.f32 %v4779_v20, %v7372_v51 }
 0x3d4   : > { %v4035_v15 = vpop.f32.mrb[16].mxu1 }
 0x3d5   : > { %v4781_v47 = vpop.eup %4780  ;;  %v4036_v43 = vpop.f32.mrb[17].mxu1 }
 0x3d6   : > { %2993 = vmatmul.mubr.bf16.gmra.mrb[88].mxu1 %v2876_v48  ;;  %v6711_v56 = vadd.f32 %v4036_v43, %v4035_v15  ;;  %v4038_v45 = vpop.f32.mrb[18].mxu1  ;;  %v2831_v62 = vmul.f32 %v4781_v47, %v6515_v52  ;;  %v2830_v39 = vmul.f32 %v4781_v47, %v6513_v11 }
 0x3d7   : > { %v4039_v9 = vpop.f32.mrb[19].mxu1 }
 0x3d8   : > { %v6716_v18 = vadd.f32 %v4039_v9, %v4038_v45  ;;  %v2879_v63 = vpack.c.bf16 %v2831_v62, %v2829_v34  ;;  %v2878_v53 = vpack.c.bf16 %v2830_v39, %v2828_v41 }
 0x3da   : > { %3000 = vmatprep.mubr.bf16.mxu1 %v2879_v63 }
 0x3dc   : > { %v4041_v19 = vpop.f32.mrb[20].mxu1 }
 0x3dd   : > { %v4042_v21 = vpop.f32.mrb[21].mxu1 }
 0x3de   : > { %3001 = vmatmul.mubr.bf16.gmra.mrb[92].mxu1 %v2878_v53  ;;  %v6719_v55 = vadd.f32 %v4042_v21, %v4041_v19  ;;  %v4044_v6 = vpop.f32.mrb[22].mxu1  ;;  %v4829_v21 = vld [vmem:[#allocation3 + $0x40] sm:$0xff] }
 0x3df   : > { %v4045_v8 = vpop.f32.mrb[23].mxu1 }
 0x3e0   : > { %v6721_v54 = vadd.f32 %v4045_v8, %v4044_v6  ;;  %v2061_v6 = vunpack.c.l.bf16 %v4829_v21 }
 0x3e4   : > { %v4047_v52 = vpop.f32.mrb[24].mxu1 }
 0x3e5   : > { %v4048_v31 = vpop.f32.mrb[25].mxu1 }
 0x3e6   : > { %v6723_v11 = vadd.f32 %v4048_v31, %v4047_v52  ;;  %v4050_v48 = vpop.f32.mrb[26].mxu1 }
 0x3e7   : > { %v4051_v15 = vpop.f32.mrb[27].mxu1 }
 0x3e8   : > { %v6725_v47 = vadd.f32 %v4051_v15, %v4050_v48  ;;  %v2062_v48 = vunpack.c.h.bf16 %v4829_v21 }
 0x3ea   : > { %7373 = vst [vmem:[#allocation34_spill] sm:$0xff] %v6725_v47 }
 0x3ec   : > { %v4053_v20 = vpop.f32.mrb[28].mxu1 }
 0x3ed   : > { %v4054_v43 = vpop.f32.mrb[29].mxu1 }
 0x3ee   : > { %v6727_v45 = vadd.f32 %v4054_v43, %v4053_v20  ;;  %v4056_v34 = vpop.f32.mrb[30].mxu1 }
 0x3ef   : > { %v4057_v62 = vpop.f32.mrb[31].mxu1 }
 0x3f0   : > { %7374 = vst [vmem:[#allocation72_spill] sm:$0xff] %v6727_v45  ;;  %v6729_v39 = vadd.f32 %v4057_v62, %v4056_v34 }
 0x3f2   : > { %7375 = vst [vmem:[#allocation74_spill] sm:$0xff] %v6729_v39 }
 0x3f4   : > { %v4059_v9 = vpop.f32.mrb[32].mxu1 }
 0x3f5   : > { %v4060_v63 = vpop.f32.mrb[33].mxu1 }
 0x3f6   : > { %v4061_v51 = vadd.f32 %v4060_v63, %v4059_v9  ;;  %v4062_v41 = vpop.f32.mrb[34].mxu1 }
 0x3f7   : > { %v4063_v53 = vpop.f32.mrb[35].mxu1 }
 0x3f8   : > { %v2029_v19 = vmul.f32 0.1, %v4061_v51  ;;  %v4064_v8 = vadd.f32 %v4063_v53, %v4062_v41 }
 0x3fa   : > { %v6731_v52 = vadd.f32 %v2061_v6, %v2029_v19  ;;  %v2030_v31 = vmul.f32 0.1, %v4064_v8 }
 0x3fc   : > { %v6733_v15 = vadd.f32 %v2062_v48, %v2030_v31  ;;  %v4065_v20 = vpop.f32.mrb[36].mxu1 }
 0x3fd   : > { %v4066_v43 = vpop.f32.mrb[37].mxu1 }
 0x3fe   : > { %v6735_v45 = vadd.f32 %v4066_v43, %v4065_v20  ;;  %v4068_v34 = vpop.f32.mrb[38].mxu1 }
 0x3ff   : > { %v4069_v62 = vpop.f32.mrb[39].mxu1 }
 0x400   : > { %v6737_v39 = vadd.f32 %v4069_v62, %v4068_v34 }
 0x404   : > { %v4071_v9 = vpop.f32.mrb[40].mxu1 }
 0x405   : > { %v4072_v63 = vpop.f32.mrb[41].mxu1 }
 0x406   : > { %v6739_v51 = vadd.f32 %v4072_v63, %v4071_v9  ;;  %v4074_v47 = vpop.f32.mrb[42].mxu1 }
 0x407   : > { %v4075_v41 = vpop.f32.mrb[43].mxu1 }
 0x408   : > { %v6741_v53 = vadd.f32 %v4075_v41, %v4074_v47 }
 0x40c   : > { %v4077_v19 = vpop.f32.mrb[44].mxu1 }
 0x40d   : > { %v4078_v21 = vpop.f32.mrb[45].mxu1 }
 0x40e   : > { %v6743_v6 = vadd.f32 %v4078_v21, %v4077_v19  ;;  %v4080_v8 = vpop.f32.mrb[46].mxu1 }
 0x40f   : > { %v4081_v31 = vpop.f32.mrb[47].mxu1 }
 0x410   : > { %7376 = vst [vmem:[#allocation71_spill] sm:$0xff] %v6743_v6  ;;  %v6745_v48 = vadd.f32 %v4081_v31, %v4080_v8 }
 0x411   : > { %v2722_v20 = vpop.xlane.xlu0 %2721 }
 0x412   : > { %7377 = vst [vmem:[#allocation73_spill] sm:$0xff] %v6745_v48  ;;  %4782 = vrcp.f32 %v2722_v20 }
 0x416   : > { %v2725_v43 = vpop.xlane.xlu1 %2724 }
 0x417   : > { %4784 = vrcp.f32 %v2725_v43 }
 0x41b   : > { %v2728_v34 = vpop.xlane.xlu0 %2727 }
 0x41c   : > { %4786 = vrcp.f32 %v2728_v34  ;;  %v4783_v9 = vpop.eup %4782 }
 0x41d   : > { %v2833_v41 = vmul.f32 %v4783_v9, %v6535_v44  ;;  %v2832_v21 = vmul.f32 %v4783_v9, %v6533_v23 }
 0x41f   : > { %v2731_v62 = vpop.xlane.xlu1 %2730 }
 0x420   : > { %4788 = vrcp.f32 %v2731_v62 }
 0x421   : > { %v4785_v63 = vpop.eup %4784 }
 0x422   : > { %v2835_v19 = vmul.f32 %v4785_v63, %v6543_v27  ;;  %v2834_v8 = vmul.f32 %v4785_v63, %v6541_v1 }
 0x423   : > { %v2734_v47 = vpop.xlane.xlu0 %2733 }
 0x424   : > { %v2881_v31 = vpack.c.bf16 %v2835_v19, %v2833_v41  ;;  %v2880_v48 = vpack.c.bf16 %v2834_v8, %v2832_v21  ;;  %4790 = vrcp.f32 %v2734_v47 }
 0x426   : > { %3008 = vmatprep.mubr.bf16.mxu1 %v2881_v31  ;;  %v4787_v43 = vpop.eup %4786 }
 0x427   : > { %v2737_v20 = vpop.xlane.xlu1 %2736  ;;  %3009 = vmatmul.mubr.bf16.gmra.mrb[96].mxu1 %v2880_v48  ;;  %v2837_v6 = vmul.f32 %v4787_v43, %v6555_v36  ;;  %v2836_v27 = vmul.f32 %v4787_v43, %v6553_v12 }
 0x428   : > { %4792 = vrcp.f32 %v2737_v20 }
 0x42a   : > { %v4789_v34 = vpop.eup %4788 }
 0x42b   : > { %v2839_v44 = vmul.f32 %v4789_v34, %v6563_v58  ;;  %v2838_v23 = vmul.f32 %v4789_v34, %v6561_v5 }
 0x42c   : > { %v2740_v62 = vpop.xlane.xlu0 %2739 }
 0x42d   : > { %v2883_v9 = vpack.c.bf16 %v2839_v44, %v2837_v6  ;;  %v2882_v1 = vpack.c.bf16 %v2838_v23, %v2836_v27  ;;  %4794 = vrcp.f32 %v2740_v62 }
 0x42e   : > { %v4791_v47 = vpop.eup %4790 }
 0x42f   : > { %3016 = vmatprep.mubr.bf16.mxu1 %v2883_v9  ;;  %v2743_v63 = vpop.xlane.xlu1 %2742  ;;  %v2841_v19 = vmul.f32 %v4791_v47, %v6575_v3  ;;  %v2840_v58 = vmul.f32 %v4791_v47, %v6573_v57 }
 0x430   : > { %4796 = vrcp.f32 %v2743_v63  ;;  %3017 = vmatmul.mubr.bf16.gmra.mrb[100].mxu1 %v2882_v1 }
 0x432   : > { %v4793_v41 = vpop.eup %4792 }
 0x433   : > { %v2843_v36 = vmul.f32 %v4793_v41, %v6583_v17  ;;  %v2842_v12 = vmul.f32 %v4793_v41, %v6581_v42 }
 0x434   : > { %v2746_v48 = vpop.xlane.xlu0 %2745 }
 0x435   : > { %v2885_v21 = vpack.c.bf16 %v2843_v36, %v2841_v19  ;;  %v2884_v5 = vpack.c.bf16 %v2842_v12, %v2840_v58  ;;  %4798 = vrcp.f32 %v2746_v48 }
 0x437   : > { %3024 = vmatprep.mubr.bf16.mxu1 %v2885_v21  ;;  %v2749_v6 = vpop.xlane.xlu1 %2748  ;;  %v4795_v8 = vpop.eup %4794 }
 0x438   : > { %4800 = vrcp.f32 %v2749_v6  ;;  %3025 = vmatmul.mubr.bf16.gmra.mrb[104].mxu1 %v2884_v5  ;;  %v2845_v43 = vmul.f32 %v4795_v8, %v6595_v60  ;;  %v2844_v17 = vmul.f32 %v4795_v8, %v6593_v33 }
 0x43a   : > { %v4797_v31 = vpop.eup %4796 }
 0x43b   : > { %v2847_v3 = vmul.f32 %v4797_v31, %v6603_v28  ;;  %v2846_v57 = vmul.f32 %v4797_v31, %v6601_v24 }
 0x43c   : > { %v2752_v20 = vpop.xlane.xlu0 %2751 }
 0x43d   : > { %v2887_v34 = vpack.c.bf16 %v2847_v3, %v2845_v43  ;;  %v2886_v42 = vpack.c.bf16 %v2846_v57, %v2844_v17  ;;  %4802 = vrcp.f32 %v2752_v20  ;;  %v4864_v3 = vld.sshfl [vmem:[#allocation4] sm:$0x33 pattern:$0x76325410] }
 0x43f   : > { %3032 = vmatprep.mubr.bf16.mxu1 %v2887_v34  ;;  %v2755_v62 = vpop.xlane.xlu1 %2754  ;;  %v4799_v44 = vpop.eup %4798 }
 0x440   : > { %4804 = vrcp.f32 %v2755_v62  ;;  %3033 = vmatmul.mubr.bf16.gmra.mrb[108].mxu1 %v2886_v42  ;;  %v2849_v9 = vmul.f32 %v4799_v44, %v6615_v16  ;;  %v2848_v28 = vmul.f32 %v4799_v44, %v6613_v0 }
 0x442   : > { %v4801_v27 = vpop.eup %4800 }
 0x443   : > { %v2851_v60 = vmul.f32 %v4801_v27, %v6623_v32  ;;  %v2850_v33 = vmul.f32 %v4801_v27, %v6621_v25 }
 0x444   : > { %v2758_v23 = vpop.xlane.xlu0 %2757 }
 0x445   : > { %v2889_v1 = vpack.c.bf16 %v2851_v60, %v2849_v9  ;;  %v2888_v24 = vpack.c.bf16 %v2850_v33, %v2848_v28  ;;  %4806 = vrcp.f32 %v2758_v23  ;;  %v3500_v9 = vcombine.high %v4864_v3, %v4864_v3 }
 0x447   : > { %3040 = vmatprep.mubr.bf16.mxu1 %v2889_v1  ;;  %v2761_v63 = vpop.xlane.xlu1 %2760  ;;  %v4803_v47 = vpop.eup %4802 }
 0x448   : > { %4808 = vrcp.f32 %v2761_v63  ;;  %3041 = vmatmul.mubr.bf16.gmra.mrb[112].mxu1 %v2888_v24  ;;  %v2853_v19 = vmul.f32 %v4803_v47, %v6635_v13  ;;  %v2852_v32 = vmul.f32 %v4803_v47, %v6633_v37 }
 0x44a   : > { %v4805_v41 = vpop.eup %4804 }
 0x44b   : > { %v2855_v16 = vmul.f32 %v4805_v41, %v6643_v35  ;;  %v2854_v0 = vmul.f32 %v4805_v41, %v6641_v2 }
 0x44c   : > { %v2764_v48 = vpop.xlane.xlu0 %2763 }
 0x44d   : > { %v2891_v36 = vpack.c.bf16 %v2855_v16, %v2853_v19  ;;  %v2890_v25 = vpack.c.bf16 %v2854_v0, %v2852_v32  ;;  %4810 = vrcp.f32 %v2764_v48 }
 0x44f   : > { %3048 = vmatprep.mubr.bf16.mxu1 %v2891_v36  ;;  %v2767_v58 = vpop.xlane.xlu1 %2766  ;;  %v4807_v21 = vpop.eup %4806 }
 0x450   : > { %v3391_v12 = vpop.xlane.xlu0 %3390  ;;  %4812 = vrcp.f32 %v2767_v58  ;;  %3049 = vmatmul.mubr.bf16.gmra.mrb[116].mxu1 %v2890_v25  ;;  %v2857_v37 = vmul.f32 %v4807_v21, %v6655_v22  ;;  %v2856_v35 = vmul.f32 %v4807_v21, %v6653_v29 }
 0x451   : > { %v6772_v5 = vsub.f32 %v3391_v12, %v6519_v10  ;;  %v2013_v12 = vmul.f32 0.1, %v6657_v4 }
 0x452   : > { %v4809_v6 = vpop.eup %4808 }
 0x453   : > { %v3393_v13 = vsel %vm3388_vm3, %v6772_v5, -inf  ;;  %v2859_v2 = vmul.f32 %v4809_v6, %v6665_v49  ;;  %v2858_v8 = vmul.f32 %v4809_v6, %v6661_v7 }
 0x454   : > { %3394 = vmax.xlane.f32.xlu0 %v3393_v13  ;;  %v4830_v13 = vld [vmem:[#allocation3] sm:$0xff] }
 0x455   : > { %v2893_v31 = vpack.c.bf16 %v2859_v2, %v2857_v37  ;;  %v2892_v20 = vpack.c.bf16 %v2858_v8, %v2856_v35  ;;  %v2045_v37 = vunpack.c.l.bf16 %v4830_v13  ;;  %v2014_v35 = vmul.f32 0.1, %v6663_v38 }
 0x456   : > { %v4083_v43 = vpop.f32.mrb[48].mxu1 }
 0x457   : > { %3056 = vmatprep.mubr.bf16.mxu1 %v2893_v31  ;;  %v4084_v10 = vpop.f32.mrb[49].mxu1  ;;  %v4811_v17 = vpop.eup %4810  ;;  %v4831_v31 = vld [vmem:[#allocation5] sm:$0xff] }
 0x458   : > { %3057 = vmatmul.mubr.bf16.gmra.mrb[120].mxu1 %v2892_v20  ;;  %v6780_v57 = vadd.f32 %v4084_v10, %v4083_v43  ;;  %v4086_v34 = vpop.f32.mrb[50].mxu1  ;;  %v2861_v49 = vmul.f32 %v4811_v17, %v6675_v46  ;;  %v2860_v7 = vmul.f32 %v4811_v17, %v6673_v26  ;;  %v3105_v20 = vunpack.c.l.bf16 %v4831_v31 }
 0x459   : > { %v4087_v42 = vpop.f32.mrb[51].mxu1  ;;  %v2077_v10 = vadd.f32 %v2045_v37, %v2013_v12 }
 0x45a   : > { %v4813_v62 = vpop.eup %4812  ;;  %v6782_v22 = vadd.f32 %v4087_v42, %v4086_v34  ;;  %v3106_v42 = vunpack.c.h.bf16 %v4831_v31 }
 0x45b   : > { %v2863_v29 = vmul.f32 %v4813_v62, %v6683_v61  ;;  %v2862_v44 = vmul.f32 %v4813_v62, %v6679_v14 }
 0x45d   : > { %v2895_v27 = vpack.c.bf16 %v2863_v29, %v2861_v49  ;;  %v2894_v23 = vpack.c.bf16 %v2862_v44, %v2860_v7  ;;  %v7378_v7 = vld [vmem:[#allocation32_spill] sm:$0xff] }
 0x45e   : > { %v2015_v44 = vmul.f32 0.1, %v7378_v7 }
 0x45f   : > { %3064 = vmatprep.mubr.bf16.mxu1 %v2895_v27 }
 0x460   : > { %3065 = vmatmul.mubr.bf16.gmra.mrb[124].mxu1 %v2894_v23 }
 0x461   : > { %v4089_v60 = vpop.f32.mrb[52].mxu1  ;;  %3535 = vmatprep.mubr.bf16.mxu1 %v3500_v9 }
 0x462   : > { %v4090_v28 = vpop.f32.mrb[53].mxu1 }
 0x463   : > { %v6788_v33 = vadd.f32 %v4090_v28, %v4089_v60  ;;  %v4092_v1 = vpop.f32.mrb[54].mxu1  ;;  %v4832_v28 = vld [vmem:[#allocation3 + $0x8] sm:$0xff] }
 0x464   : > { %v4093_v24 = vpop.f32.mrb[55].mxu1 }
 0x465   : > { %v6790_v63 = vadd.f32 %v4093_v24, %v4092_v1  ;;  %v2047_v1 = vunpack.c.l.bf16 %v4832_v28  ;;  %v4833_v24 = vld [vmem:[#allocation5 + $0x8] sm:$0xff] }
 0x468   : > { %3536 = vmatmul.mubr.bf16.vlgmr.msra.gmra.mrb[128].mxu1 %v4864_v3  ;;  %v2046_v3 = vunpack.c.h.bf16 %v4830_v13 }
 0x469   : > { %v4095_v46 = vpop.f32.mrb[56].mxu1 }
 0x46a   : > { %v4096_v61 = vpop.f32.mrb[57].mxu1  ;;  %v2078_v62 = vadd.f32 %v2046_v3, %v2014_v35 }
 0x46b   : > { %v6792_v26 = vadd.f32 %v4096_v61, %v4095_v46  ;;  %v4098_v14 = vpop.f32.mrb[58].mxu1  ;;  %v3107_v46 = vunpack.c.l.bf16 %v4833_v24 }
 0x46c   : > { %v4099_v47 = vpop.f32.mrb[59].mxu1 }
 0x46d   : > { %v6794_v41 = vadd.f32 %v4099_v47, %v4098_v14  ;;  %v7379_v14 = vld [vmem:[#allocation33_spill] sm:$0xff] }
 0x46e   : > { %v2016_v47 = vmul.f32 0.1, %v7379_v14 }
 0x471   : > { %v4101_v48 = vpop.f32.mrb[60].mxu1 }
 0x472   : > { %v4102_v19 = vpop.f32.mrb[61].mxu1 }
 0x473   : > { %v6796_v16 = vadd.f32 %v4102_v19, %v4101_v48  ;;  %v4104_v32 = vpop.f32.mrb[62].mxu1 }
 0x474   : > { %v4105_v0 = vpop.f32.mrb[63].mxu1 }
 0x475   : > { %v6798_v36 = vadd.f32 %v4105_v0, %v4104_v32  ;;  %v2079_v0 = vadd.f32 %v2047_v1, %v2015_v44 }
 0x479   : > { %v4123_v25 = vpop.f32.mrb[64].mxu1 }
 0x47a   : > { %v4124_v58 = vpop.f32.mrb[65].mxu1 }
 0x47b   : > { %v4125_v21 = vadd.f32 %v4124_v58, %v4123_v25  ;;  %v4126_v6 = vpop.f32.mrb[66].mxu1  ;;  %v2048_v25 = vunpack.c.h.bf16 %v4832_v28  ;;  %v3108_v58 = vunpack.c.h.bf16 %v4833_v24 }
 0x47c   : > { %v4127_v2 = vpop.f32.mrb[67].mxu1 }
 0x47d   : > { %v3073_v8 = vmul.f32 0.1, %v4125_v21  ;;  %v4128_v43 = vadd.f32 %v4127_v2, %v4126_v6  ;;  %v2080_v2 = vadd.f32 %v2048_v25, %v2016_v47 }
 0x47f   : > { %v3137_v17 = vadd.f32 %v3105_v20, %v3073_v8  ;;  %v3074_v34 = vmul.f32 0.1, %v4128_v43  ;;  %v2017_v43 = vmul.f32 0.1, %v6695_v40 }
 0x481   : > { %v3169_v49 = vsub.f32 %v2077_v10, %v3137_v17  ;;  %v3138_v29 = vadd.f32 %v3106_v42, %v3074_v34  ;;  %v4129_v4 = vpop.f32.mrb[68].mxu1  ;;  %v4834_v42 = vld [vmem:[#allocation3 + $0x10] sm:$0xff] }
 0x482   : > { %v4130_v27 = vpop.f32.mrb[69].mxu1 }
 0x483   : > { %v3201_v23 = vand.u32 2147483647, %v3169_v49  ;;  %v3170_v9 = vsub.f32 %v2078_v62, %v3138_v29  ;;  %v4131_v60 = vadd.f32 %v4130_v27, %v4129_v4  ;;  %v4132_v38 = vpop.f32.mrb[70].mxu1  ;;  %v2049_v62 = vunpack.c.l.bf16 %v4834_v42  ;;  %v4835_v29 = vld [vmem:[#allocation5 + $0x10] sm:$0xff] }
 0x484   : > { %v4133_v61 = vpop.f32.mrb[71].mxu1  ;;  %v2018_v49 = vmul.f32 0.1, %v6700_v30  ;;  %v3109_v4 = vunpack.c.l.bf16 %v4835_v29  ;;  %v3110_v28 = vunpack.c.h.bf16 %v4835_v29 }
 0x485   : > { %v3202_v48 = vand.u32 2147483647, %v3170_v9  ;;  %v3075_v19 = vmul.f32 0.1, %v4131_v60  ;;  %v4134_v32 = vadd.f32 %v4133_v61, %v4132_v38  ;;  %v3234_v12 = vsel %vm496_vm0, %v3201_v23, 0.0 }
 0x486   : > { %v2050_v60 = vunpack.c.h.bf16 %v4834_v42  ;;  %v2081_v40 = vadd.f32 %v2049_v62, %v2017_v43 }
 0x487   : > { %v3235_v21 = vsel %vm496_vm0, %v3202_v48, 0.0  ;;  %v3139_v6 = vadd.f32 %v3107_v46, %v3075_v19  ;;  %v3076_v13 = vmul.f32 0.1, %v4134_v32  ;;  %v2019_v32 = vmul.f32 0.1, %v6703_v59 }
 0x488   : > { %v3236_v37 = vadd.f32 %v3235_v21, %v3234_v12  ;;  %v2082_v14 = vadd.f32 %v2050_v60, %v2018_v49  ;;  %v4836_v21 = vld [vmem:[#allocation3 + $0x18] sm:$0xff] }
 0x489   : > { %v3171_v35 = vsub.f32 %v2079_v0, %v3139_v6  ;;  %v3140_v8 = vadd.f32 %v3108_v58, %v3076_v13  ;;  %v4135_v31 = vpop.f32.mrb[72].mxu1  ;;  %v2051_v6 = vunpack.c.l.bf16 %v4836_v21  ;;  %v2020_v13 = vmul.f32 0.1, %v6708_v50 }
 0x48a   : > { %v4136_v20 = vpop.f32.mrb[73].mxu1 }
 0x48b   : > { %v3203_v3 = vand.u32 2147483647, %v3171_v35  ;;  %v3172_v10 = vsub.f32 %v2080_v2, %v3140_v8  ;;  %v4137_v17 = vadd.f32 %v4136_v20, %v4135_v31  ;;  %v4138_v34 = vpop.f32.mrb[74].mxu1  ;;  %v2083_v59 = vadd.f32 %v2051_v6, %v2019_v32 }
 0x48c   : > { %v4139_v7 = vpop.f32.mrb[75].mxu1 }
 0x48d   : > { %v3237_v44 = vsel %vm496_vm0, %v3203_v3, 0.0  ;;  %v3204_v27 = vand.u32 2147483647, %v3172_v10  ;;  %v3077_v23 = vmul.f32 0.1, %v4137_v17  ;;  %v4140_v9 = vadd.f32 %v4139_v7, %v4138_v34 }
 0x48e   : > { %v3238_v38 = vadd.f32 %v3237_v44, %v3236_v37  ;;  %v4837_v37 = vld [vmem:[#allocation5 + $0x18] sm:$0xff]  ;;  %v2052_v3 = vunpack.c.h.bf16 %v4836_v21 }
 0x48f   : > { %v3239_v1 = vsel %vm496_vm0, %v3204_v27, 0.0  ;;  %v3141_v24 = vadd.f32 %v3109_v4, %v3077_v23  ;;  %v3078_v46 = vmul.f32 0.1, %v4140_v9  ;;  %v3111_v2 = vunpack.c.l.bf16 %v4837_v37 }
 0x490   : > { %v3240_v61 = vadd.f32 %v3239_v1, %v3238_v38  ;;  %v3112_v17 = vunpack.c.h.bf16 %v4837_v37  ;;  %v2084_v29 = vadd.f32 %v2052_v3, %v2020_v13  ;;  %v2021_v27 = vmul.f32 0.1, %v6711_v56  ;;  %v4840_v3 = vld [vmem:[#allocation3 + $0x28] sm:$0xff] }
 0x491   : > { %v3173_v47 = vsub.f32 %v2081_v40, %v3141_v24  ;;  %v3142_v30 = vadd.f32 %v3110_v28, %v3078_v46  ;;  %v4141_v48 = vpop.f32.mrb[76].mxu1  ;;  %v4838_v28 = vld [vmem:[#allocation3 + $0x20] sm:$0xff]  ;;  %v2022_v1 = vmul.f32 0.1, %v6716_v18 }
 0x492   : > { %v4142_v19 = vpop.f32.mrb[77].mxu1  ;;  %v2053_v40 = vunpack.c.l.bf16 %v4838_v28  ;;  %v4839_v24 = vld [vmem:[#allocation5 + $0x20] sm:$0xff] }
 0x493   : > { %v3205_v0 = vand.u32 2147483647, %v3173_v47  ;;  %v3174_v25 = vsub.f32 %v2082_v14, %v3142_v30  ;;  %v4143_v58 = vadd.f32 %v4142_v19, %v4141_v48  ;;  %v4144_v12 = vpop.f32.mrb[78].mxu1  ;;  %v3113_v46 = vunpack.c.l.bf16 %v4839_v24 }
 0x494   : > { %v4145_v35 = vpop.f32.mrb[79].mxu1  ;;  %v2054_v19 = vunpack.c.h.bf16 %v4838_v28  ;;  %v2085_v56 = vadd.f32 %v2053_v40, %v2021_v27 }
 0x495   : > { %v3241_v8 = vsel %vm496_vm0, %v3205_v0, 0.0  ;;  %v3206_v31 = vand.u32 2147483647, %v3174_v25  ;;  %v3079_v20 = vmul.f32 0.1, %v4143_v58  ;;  %v4146_v43 = vadd.f32 %v4145_v35, %v4144_v12 }
 0x496   : > { %v3242_v10 = vadd.f32 %v3241_v8, %v3240_v61  ;;  %v3114_v0 = vunpack.c.h.bf16 %v4839_v24  ;;  %v2086_v6 = vadd.f32 %v2054_v19, %v2022_v1  ;;  %v2023_v35 = vmul.f32 0.1, %v6719_v55  ;;  %v7380_v19 = vld [vmem:[#allocation34_spill] sm:$0xff] }
 0x497   : > { %v3243_v34 = vsel %vm496_vm0, %v3206_v31, 0.0  ;;  %v3143_v42 = vadd.f32 %v3111_v2, %v3079_v20  ;;  %v3080_v62 = vmul.f32 0.1, %v4146_v43  ;;  %v2025_v24 = vmul.f32 0.1, %v6723_v11 }
 0x498   : > { %v3244_v49 = vadd.f32 %v3243_v34, %v3242_v10  ;;  %v2055_v10 = vunpack.c.l.bf16 %v4840_v3 }
 0x499   : > { %v3175_v4 = vsub.f32 %v2083_v59, %v3143_v42  ;;  %v3144_v50 = vadd.f32 %v3112_v17, %v3080_v62  ;;  %v4147_v7 = vpop.f32.mrb[80].mxu1  ;;  %v2024_v17 = vmul.f32 0.1, %v6721_v54  ;;  %v4841_v59 = vld [vmem:[#allocation5 + $0x28] sm:$0xff] }
 0x49a   : > { %v4148_v44 = vpop.f32.mrb[81].mxu1  ;;  %v3115_v34 = vunpack.c.l.bf16 %v4841_v59  ;;  %v2087_v55 = vadd.f32 %v2055_v10, %v2023_v35 }
 0x49b   : > { %v3207_v23 = vand.u32 2147483647, %v3175_v4  ;;  %v3176_v9 = vsub.f32 %v2084_v29, %v3144_v50  ;;  %v4149_v60 = vadd.f32 %v4148_v44, %v4147_v7  ;;  %v4150_v38 = vpop.f32.mrb[82].mxu1  ;;  %v2056_v50 = vunpack.c.h.bf16 %v4840_v3 }
 0x49c   : > { %v4151_v61 = vpop.f32.mrb[83].mxu1  ;;  %v3116_v44 = vunpack.c.h.bf16 %v4841_v59  ;;  %v7381_v59 = vld [vmem:[#allocation72_spill] sm:$0xff] }
 0x49d   : > { %v3245_v14 = vsel %vm496_vm0, %v3207_v23, 0.0  ;;  %v3208_v47 = vand.u32 2147483647, %v3176_v9  ;;  %v3081_v30 = vmul.f32 0.1, %v4149_v60  ;;  %v4152_v48 = vadd.f32 %v4151_v61, %v4150_v38 }
 0x49e   : > { %v3246_v32 = vadd.f32 %v3245_v14, %v3244_v49  ;;  %v2088_v38 = vadd.f32 %v2056_v50, %v2024_v17 }
 0x49f   : > { %v3247_v25 = vsel %vm496_vm0, %v3208_v47, 0.0  ;;  %v3145_v58 = vadd.f32 %v3113_v46, %v3081_v30  ;;  %v3082_v12 = vmul.f32 0.1, %v4152_v48  ;;  %v4842_v30 = vld [vmem:[#allocation3 + $0x30] sm:$0xff] }
 0x4a0   : > { %v3248_v21 = vadd.f32 %v3247_v25, %v3246_v32  ;;  %v2057_v48 = vunpack.c.l.bf16 %v4842_v30  ;;  %v2026_v32 = vmul.f32 0.1, %v7380_v19 }
 0x4a1   : > { %v3177_v13 = vsub.f32 %v2085_v56, %v3145_v58  ;;  %v3146_v18 = vadd.f32 %v3114_v0, %v3082_v12  ;;  %v4153_v37 = vpop.f32.mrb[84].mxu1  ;;  %v4843_v0 = vld [vmem:[#allocation5 + $0x30] sm:$0xff] }
 0x4a2   : > { %v4154_v2 = vpop.f32.mrb[85].mxu1  ;;  %v3117_v56 = vunpack.c.l.bf16 %v4843_v0  ;;  %v2089_v11 = vadd.f32 %v2057_v48, %v2025_v24 }
 0x4a3   : > { %v3209_v8 = vand.u32 2147483647, %v3177_v13  ;;  %v3178_v31 = vsub.f32 %v2086_v6, %v3146_v18  ;;  %v4155_v20 = vadd.f32 %v4154_v2, %v4153_v37  ;;  %v4156_v43 = vpop.f32.mrb[86].mxu1  ;;  %v2058_v13 = vunpack.c.h.bf16 %v4842_v30 }
 0x4a4   : > { %v4157_v42 = vpop.f32.mrb[87].mxu1  ;;  %v3118_v37 = vunpack.c.h.bf16 %v4843_v0 }
 0x4a5   : > { %v3249_v62 = vsel %vm496_vm0, %v3209_v8, 0.0  ;;  %v3210_v49 = vand.u32 2147483647, %v3178_v31  ;;  %v3083_v29 = vmul.f32 0.1, %v4155_v20  ;;  %v4158_v4 = vadd.f32 %v4157_v42, %v4156_v43 }
 0x4a6   : > { %v3250_v7 = vadd.f32 %v3249_v62, %v3248_v21  ;;  %v2090_v20 = vadd.f32 %v2058_v13, %v2026_v32 }
 0x4a7   : > { %v3251_v27 = vsel %vm496_vm0, %v3210_v49, 0.0  ;;  %v3147_v23 = vadd.f32 %v3115_v34, %v3083_v29  ;;  %v3084_v9 = vmul.f32 0.1, %v4158_v4  ;;  %v2027_v34 = vmul.f32 0.1, %v7381_v59  ;;  %v4844_v4 = vld [vmem:[#allocation3 + $0x38] sm:$0xff] }
 0x4a8   : > { %v3252_v60 = vadd.f32 %v3251_v27, %v3250_v7  ;;  %v2059_v50 = vunpack.c.l.bf16 %v4844_v4  ;;  %v7382_v7 = vld [vmem:[#allocation74_spill] sm:$0xff] }
 0x4a9   : > { %v3179_v28 = vsub.f32 %v2087_v55, %v3147_v23  ;;  %v3148_v54 = vadd.f32 %v3116_v44, %v3084_v9  ;;  %v4159_v40 = vpop.f32.mrb[88].mxu1  ;;  %v2028_v44 = vmul.f32 0.1, %v7382_v7  ;;  %v4845_v55 = vld [vmem:[#allocation5 + $0x38] sm:$0xff] }
 0x4aa   : > { %v4160_v1 = vpop.f32.mrb[89].mxu1  ;;  %v3119_v27 = vunpack.c.l.bf16 %v4845_v55  ;;  %v2091_v24 = vadd.f32 %v2059_v50, %v2027_v34 }
 0x4ab   : > { %v3211_v46 = vand.u32 2147483647, %v3179_v28  ;;  %v3180_v61 = vsub.f32 %v2088_v38, %v3148_v54  ;;  %v4161_v14 = vadd.f32 %v4160_v1, %v4159_v40  ;;  %v4162_v47 = vpop.f32.mrb[90].mxu1  ;;  %v2060_v54 = vunpack.c.h.bf16 %v4844_v4 }
 0x4ac   : > { %v4163_v25 = vpop.f32.mrb[91].mxu1  ;;  %v3120_v1 = vunpack.c.h.bf16 %v4845_v55  ;;  %v2031_v4 = vmul.f32 0.1, %v6735_v45 }
 0x4ad   : > { %v3253_v58 = vsel %vm496_vm0, %v3211_v46, 0.0  ;;  %v3212_v12 = vand.u32 2147483647, %v3180_v61  ;;  %v3085_v21 = vmul.f32 0.1, %v4161_v14  ;;  %v4164_v6 = vadd.f32 %v4163_v25, %v4162_v47 }
 0x4ae   : > { %v3254_v18 = vadd.f32 %v3253_v58, %v3252_v60  ;;  %v2092_v30 = vadd.f32 %v2060_v54, %v2028_v44 }
 0x4af   : > { %v3255_v2 = vsel %vm496_vm0, %v3212_v12, 0.0  ;;  %v3149_v35 = vadd.f32 %v3117_v56, %v3085_v21  ;;  %v3086_v8 = vmul.f32 0.1, %v4164_v6 }
 0x4b0   : > { %v3256_v31 = vadd.f32 %v3255_v2, %v3254_v18 }
 0x4b1   : > { %v3181_v43 = vsub.f32 %v2089_v11, %v3149_v35  ;;  %v3150_v3 = vadd.f32 %v3118_v37, %v3086_v8  ;;  %v4165_v10 = vpop.f32.mrb[92].mxu1 }
 0x4b2   : > { %v4166_v17 = vpop.f32.mrb[93].mxu1 }
 0x4b3   : > { %v3213_v42 = vand.u32 2147483647, %v3181_v43  ;;  %v3182_v62 = vsub.f32 %v2090_v20, %v3150_v3  ;;  %v4167_v49 = vadd.f32 %v4166_v17, %v4165_v10  ;;  %v4168_v29 = vpop.f32.mrb[94].mxu1  ;;  %v4846_v3 = vld [vmem:[#allocation5 + $0x40] sm:$0xff] }
 0x4b4   : > { %v4169_v23 = vpop.f32.mrb[95].mxu1  ;;  %v3121_v10 = vunpack.c.l.bf16 %v4846_v3 }
 0x4b5   : > { %v3257_v9 = vsel %vm496_vm0, %v3213_v42, 0.0  ;;  %v3214_v60 = vand.u32 2147483647, %v3182_v62  ;;  %v3087_v38 = vmul.f32 0.1, %v4167_v49  ;;  %v4170_v28 = vadd.f32 %v4169_v23, %v4168_v29 }
 0x4b6   : > { %v3258_v40 = vadd.f32 %v3257_v9, %v3256_v31  ;;  %v2032_v9 = vmul.f32 0.1, %v6737_v39 }
 0x4b7   : > { %v3259_v46 = vsel %vm496_vm0, %v3214_v60, 0.0  ;;  %v3151_v61 = vadd.f32 %v3119_v27, %v3087_v38  ;;  %v3088_v14 = vmul.f32 0.1, %v4170_v28  ;;  %v4847_v27 = vld [vmem:[#allocation3 + $0x48] sm:$0xff] }
 0x4b8   : > { %v3260_v47 = vadd.f32 %v3259_v46, %v3258_v40  ;;  %v2063_v23 = vunpack.c.l.bf16 %v4847_v27  ;;  %v4848_v60 = vld [vmem:[#allocation5 + $0x48] sm:$0xff] }
 0x4b9   : > { %v3183_v48 = vsub.f32 %v2091_v24, %v3151_v61  ;;  %v3152_v19 = vadd.f32 %v3120_v1, %v3088_v14  ;;  %v3123_v38 = vunpack.c.l.bf16 %v4848_v60  ;;  %v2064_v24 = vunpack.c.h.bf16 %v4847_v27 }
 0x4ba   : > { %v3124_v45 = vunpack.c.h.bf16 %v4848_v60  ;;  %v2095_v61 = vadd.f32 %v2063_v23, %v2031_v4 }
 0x4bb   : > { %v3215_v32 = vand.u32 2147483647, %v3183_v48  ;;  %v3184_v0 = vsub.f32 %v2092_v30, %v3152_v19  ;;  %v2096_v30 = vadd.f32 %v2064_v24, %v2032_v9  ;;  %v3825_v19 = vld.sshfl [vmem:[#allocation2] sm:$0x33 pattern:$0x76325410] }
 0x4bd   : > { %v3261_v56 = vsel %vm496_vm0, %v3215_v32, 0.0  ;;  %v3216_v25 = vand.u32 2147483647, %v3184_v0 }
 0x4be   : > { %v3262_v58 = vadd.f32 %v3261_v56, %v3260_v47  ;;  %v3414_v56 = vcombine.high %v3825_v19, %v3825_v19 }
 0x4bf   : > { %v3263_v12 = vsel %vm496_vm0, %v3216_v25, 0.0  ;;  %v3419_v25 = vsel %vm1124_vm2, %v3825_v19, 0 }
 0x4c0   : > { %v3264_v21 = vadd.f32 %v3263_v12, %v3262_v58  ;;  %v2033_v12 = vmul.f32 0.1, %v6739_v51  ;;  %3826 = vmatprep.subr.msk.bf16.mxu0 %vm1124_vm2, %v3414_v56 }
 0x4c1   : > { %3425 = vmatpush1.bf16.msra.mxu0 %v3419_v25 }
 0x4e1   : > { %v3395_v6 = vpop.xlane.xlu0 %3394 }
 0x4e2   : > { %v3396_v13 = vsub.f32 %v6772_v5, %v3395_v6  ;;  %v3122_v5 = vunpack.c.h.bf16 %v4846_v3 }
 0x4e4   : > { %v3397_v18 = vmul.f32 1.442695, %v3396_v13 }
 0x4e6   : > { %4814 = vpow2.f32 %v3397_v18 }
 0x4f0   : > { %v6833_v37 = vpop.eup %4814 }
 0x4f1   : > { %v3399_v11 = vsel %vm3388_vm3, %v6833_v37, 0.0 }
 0x4f2   : > { %3400 = vadd.xlane.f32.xlu0 %v3399_v11  ;;  %v4849_v11 = vld [vmem:[#allocation3 + $0x50] sm:$0xff] }
 0x4f3   : > { %v2066_v51 = vunpack.c.h.bf16 %v4849_v11 }
 0x4fa   : > { %v4171_v2 = vpop.f32.mrb[96].mxu1 }
 0x4fb   : > { %v4172_v35 = vpop.f32.mrb[97].mxu1 }
 0x4fc   : > { %v4173_v8 = vadd.f32 %v4172_v35, %v4171_v2  ;;  %v4174_v31 = vpop.f32.mrb[98].mxu1  ;;  %v2065_v2 = vunpack.c.l.bf16 %v4849_v11  ;;  %v2034_v35 = vmul.f32 0.1, %v6741_v53 }
 0x4fd   : > { %v4175_v20 = vpop.f32.mrb[99].mxu1 }
 0x4fe   : > { %v3089_v43 = vmul.f32 0.1, %v4173_v8  ;;  %v4176_v17 = vadd.f32 %v4175_v20, %v4174_v31  ;;  %v4850_v8 = vld [vmem:[#allocation5 + $0x50] sm:$0xff]  ;;  %v2098_v4 = vadd.f32 %v2066_v51, %v2034_v35 }
 0x4ff   : > { %v3125_v31 = vunpack.c.l.bf16 %v4850_v8 }
 0x500   : > { %v3153_v59 = vadd.f32 %v3121_v10, %v3089_v43  ;;  %v3090_v34 = vmul.f32 0.1, %v4176_v17 }
 0x502   : > { %v3185_v42 = vsub.f32 %v6731_v52, %v3153_v59  ;;  %v3154_v62 = vadd.f32 %v3122_v5, %v3090_v34  ;;  %v3126_v34 = vunpack.c.h.bf16 %v4850_v8  ;;  %v2097_v5 = vadd.f32 %v2065_v2, %v2033_v12  ;;  %v4853_v8 = vld [vmem:[#allocation3 + $0x60] sm:$0xff] }
 0x503   : > { %v4177_v49 = vpop.f32.mrb[100].mxu1 }
 0x504   : > { %v4178_v29 = vpop.f32.mrb[101].mxu1  ;;  %v3217_v50 = vand.u32 2147483647, %v3185_v42  ;;  %v3186_v7 = vsub.f32 %v6733_v15, %v3154_v62 }
 0x505   : > { %v4179_v44 = vadd.f32 %v4178_v29, %v4177_v49  ;;  %v4180_v55 = vpop.f32.mrb[102].mxu1 }
 0x506   : > { %v4181_v28 = vpop.f32.mrb[103].mxu1  ;;  %v3265_v54 = vsel %vm496_vm0, %v3217_v50, 0.0  ;;  %v3218_v52 = vand.u32 2147483647, %v3186_v7 }
 0x507   : > { %v3091_v40 = vmul.f32 0.1, %v4179_v44  ;;  %v4182_v1 = vadd.f32 %v4181_v28, %v4180_v55  ;;  %v3266_v46 = vadd.f32 %v3265_v54, %v3264_v21  ;;  %v7383_v55 = vld [vmem:[#allocation71_spill] sm:$0xff]  ;;  %v4851_v28 = vld [vmem:[#allocation3 + $0x58] sm:$0xff] }
 0x508   : > { %v3267_v15 = vsel %vm496_vm0, %v3218_v52, 0.0  ;;  %v2035_v27 = vmul.f32 0.1, %v7383_v55  ;;  %v2067_v54 = vunpack.c.l.bf16 %v4851_v28  ;;  %v7384_v52 = vld [vmem:[#allocation73_spill] sm:$0xff] }
 0x509   : > { %v3155_v14 = vadd.f32 %v3123_v38, %v3091_v40  ;;  %v3092_v47 = vmul.f32 0.1, %v4182_v1  ;;  %v3268_v48 = vadd.f32 %v3267_v15, %v3266_v46  ;;  %v2036_v40 = vmul.f32 0.1, %v7384_v52  ;;  %v4852_v1 = vld [vmem:[#allocation5 + $0x58] sm:$0xff] }
 0x50a   : > { %v3127_v24 = vunpack.c.l.bf16 %v4852_v1  ;;  %v2099_v19 = vadd.f32 %v2067_v54, %v2035_v27  ;;  %v2039_v27 = vmul.f32 0.1, %v6788_v33  ;;  %v2040_v52 = vmul.f32 0.1, %v6790_v63 }
 0x50b   : > { %v3187_v39 = vsub.f32 %v2095_v61, %v3155_v14  ;;  %v3156_v32 = vadd.f32 %v3124_v45, %v3092_v47  ;;  %v4183_v0 = vpop.f32.mrb[104].mxu1  ;;  %v2068_v47 = vunpack.c.h.bf16 %v4851_v28  ;;  %v4855_v28 = vld [vmem:[#allocation3 + $0x68] sm:$0xff] }
 0x50c   : > { %v4184_v58 = vpop.f32.mrb[105].mxu1  ;;  %v2071_v54 = vunpack.c.l.bf16 %v4855_v28 }
 0x50d   : > { %v3219_v6 = vand.u32 2147483647, %v3187_v39  ;;  %v3188_v21 = vsub.f32 %v2096_v30, %v3156_v32  ;;  %v4185_v13 = vadd.f32 %v4184_v58, %v4183_v0  ;;  %v4186_v18 = vpop.f32.mrb[106].mxu1  ;;  %v2100_v25 = vadd.f32 %v2068_v47, %v2036_v40  ;;  %v4856_v40 = vld [vmem:[#allocation5 + $0x68] sm:$0xff] }
 0x50e   : > { %v4187_v20 = vpop.f32.mrb[107].mxu1  ;;  %v2103_v33 = vadd.f32 %v2071_v54, %v2039_v27  ;;  %v4859_v27 = vld [vmem:[#allocation3 + $0x78] sm:$0xff] }
 0x50f   : > { %v3269_v43 = vsel %vm496_vm0, %v3219_v6, 0.0  ;;  %v3220_v3 = vand.u32 2147483647, %v3188_v21  ;;  %v3093_v10 = vmul.f32 0.1, %v4185_v13  ;;  %v4188_v17 = vadd.f32 %v4187_v20, %v4186_v18 }
 0x510   : > { %v3270_v59 = vadd.f32 %v3269_v43, %v3268_v48  ;;  %v3128_v48 = vunpack.c.h.bf16 %v4852_v1  ;;  %v2037_v13 = vmul.f32 0.1, %v6780_v57  ;;  %v2038_v20 = vmul.f32 0.1, %v6782_v22  ;;  %v4854_v43 = vld [vmem:[#allocation5 + $0x60] sm:$0xff] }
 0x511   : > { %v3271_v42 = vsel %vm496_vm0, %v3220_v3, 0.0  ;;  %v3157_v62 = vadd.f32 %v3125_v31, %v3093_v10  ;;  %v3094_v49 = vmul.f32 0.1, %v4188_v17  ;;  %v2069_v31 = vunpack.c.l.bf16 %v4853_v8 }
 0x512   : > { %v3272_v29 = vadd.f32 %v3271_v42, %v3270_v59  ;;  %v3129_v3 = vunpack.c.l.bf16 %v4854_v43  ;;  %v3131_v1 = vunpack.c.l.bf16 %v4856_v40 }
 0x513   : > { %v3189_v53 = vsub.f32 %v2097_v5, %v3157_v62  ;;  %v3158_v50 = vadd.f32 %v3126_v34, %v3094_v49  ;;  %v4189_v7 = vpop.f32.mrb[108].mxu1  ;;  %v2070_v5 = vunpack.c.h.bf16 %v4853_v8  ;;  %v3130_v62 = vunpack.c.h.bf16 %v4854_v43  ;;  %v4858_v8 = vld [vmem:[#allocation5 + $0x70] sm:$0xff] }
 0x514   : > { %v4190_v44 = vpop.f32.mrb[109].mxu1  ;;  %v2101_v57 = vadd.f32 %v2069_v31, %v2037_v13  ;;  %v3133_v31 = vunpack.c.l.bf16 %v4858_v8 }
 0x515   : > { %v3221_v23 = vand.u32 2147483647, %v3189_v53  ;;  %v3190_v9 = vsub.f32 %v2098_v4, %v3158_v50  ;;  %v4191_v60 = vadd.f32 %v4190_v44, %v4189_v7  ;;  %v4192_v38 = vpop.f32.mrb[110].mxu1  ;;  %v2102_v50 = vadd.f32 %v2070_v5, %v2038_v20 }
 0x516   : > { %v4193_v46 = vpop.f32.mrb[111].mxu1 }
 0x517   : > { %v3273_v45 = vsel %vm496_vm0, %v3221_v23, 0.0  ;;  %v3222_v61 = vand.u32 2147483647, %v3190_v9  ;;  %v3095_v15 = vmul.f32 0.1, %v4191_v60  ;;  %v4194_v14 = vadd.f32 %v4193_v46, %v4192_v38 }
 0x518   : > { %v3274_v30 = vadd.f32 %v3273_v45, %v3272_v29 }
 0x519   : > { %v3275_v39 = vsel %vm496_vm0, %v3222_v61, 0.0  ;;  %v3159_v32 = vadd.f32 %v3127_v24, %v3095_v15  ;;  %v3096_v0 = vmul.f32 0.1, %v4194_v14  ;;  %v2072_v14 = vunpack.c.h.bf16 %v4855_v28 }
 0x51a   : > { %v3276_v56 = vadd.f32 %v3275_v39, %v3274_v30  ;;  %v3132_v30 = vunpack.c.h.bf16 %v4856_v40 }
 0x51b   : > { %v3191_v58 = vsub.f32 %v2099_v19, %v3159_v32  ;;  %v3160_v12 = vadd.f32 %v3128_v48, %v3096_v0  ;;  %v4195_v6 = vpop.f32.mrb[112].mxu1  ;;  %v2104_v0 = vadd.f32 %v2072_v14, %v2040_v52 }
 0x51c   : > { %v4196_v21 = vpop.f32.mrb[113].mxu1 }
 0x51d   : > { %v3223_v18 = vand.u32 2147483647, %v3191_v58  ;;  %v3192_v11 = vsub.f32 %v2100_v25, %v3160_v12  ;;  %v4197_v2 = vadd.f32 %v4196_v21, %v4195_v6  ;;  %v4198_v35 = vpop.f32.mrb[114].mxu1  ;;  %v2041_v12 = vmul.f32 0.1, %v6792_v26 }
 0x51e   : > { %v4199_v10 = vpop.f32.mrb[115].mxu1 }
 0x51f   : > { %v3277_v17 = vsel %vm496_vm0, %v3223_v18, 0.0  ;;  %v3224_v51 = vand.u32 2147483647, %v3192_v11  ;;  %v3097_v59 = vmul.f32 0.1, %v4197_v2  ;;  %v4200_v34 = vadd.f32 %v4199_v10, %v4198_v35  ;;  %v4857_v11 = vld [vmem:[#allocation3 + $0x70] sm:$0xff] }
 0x520   : > { %v3278_v42 = vadd.f32 %v3277_v17, %v3276_v56  ;;  %v2073_v2 = vunpack.c.l.bf16 %v4857_v11  ;;  %v2042_v35 = vmul.f32 0.1, %v6794_v41 }
 0x521   : > { %v3279_v49 = vsel %vm496_vm0, %v3224_v51, 0.0  ;;  %v3161_v29 = vadd.f32 %v3129_v3, %v3097_v59  ;;  %v3098_v4 = vmul.f32 0.1, %v4200_v34  ;;  %v2074_v51 = vunpack.c.h.bf16 %v4857_v11 }
 0x522   : > { %v3280_v53 = vadd.f32 %v3279_v49, %v3278_v42  ;;  %v3134_v34 = vunpack.c.h.bf16 %v4858_v8  ;;  %v2105_v26 = vadd.f32 %v2073_v2, %v2041_v12 }
 0x523   : > { %v3193_v7 = vsub.f32 %v2101_v57, %v3161_v29  ;;  %v3162_v22 = vadd.f32 %v3130_v62, %v3098_v4  ;;  %v4201_v44 = vpop.f32.mrb[116].mxu1  ;;  %v2106_v49 = vadd.f32 %v2074_v51, %v2042_v35 }
 0x524   : > { %v4202_v55 = vpop.f32.mrb[117].mxu1 }
 0x525   : > { %v3225_v23 = vand.u32 2147483647, %v3193_v7  ;;  %v3194_v9 = vsub.f32 %v2102_v50, %v3162_v22  ;;  %v4203_v60 = vadd.f32 %v4202_v55, %v4201_v44  ;;  %v4204_v38 = vpop.f32.mrb[118].mxu1  ;;  %v2043_v50 = vmul.f32 0.1, %v6796_v16 }
 0x526   : > { %v4205_v24 = vpop.f32.mrb[119].mxu1 }
 0x527   : > { %v3281_v46 = vsel %vm496_vm0, %v3225_v23, 0.0  ;;  %v3226_v45 = vand.u32 2147483647, %v3194_v9  ;;  %v3099_v61 = vmul.f32 0.1, %v4203_v60  ;;  %v4206_v15 = vadd.f32 %v4205_v24, %v4204_v38  ;;  %v4860_v60 = vld [vmem:[#allocation5 + $0x78] sm:$0xff] }
 0x528   : > { %v3282_v47 = vadd.f32 %v3281_v46, %v3280_v53  ;;  %v2075_v23 = vunpack.c.l.bf16 %v4859_v27  ;;  %v2044_v9 = vmul.f32 0.1, %v6798_v36  ;;  %v3135_v38 = vunpack.c.l.bf16 %v4860_v60 }
 0x529   : > { %v3283_v48 = vsel %vm496_vm0, %v3226_v45, 0.0  ;;  %v3163_v19 = vadd.f32 %v3131_v1, %v3099_v61  ;;  %v3100_v39 = vmul.f32 0.1, %v4206_v15  ;;  %v2076_v24 = vunpack.c.h.bf16 %v4859_v27 }
 0x52a   : > { %v3284_v32 = vadd.f32 %v3283_v48, %v3282_v47  ;;  %v3136_v45 = vunpack.c.h.bf16 %v4860_v60  ;;  %v2107_v16 = vadd.f32 %v2075_v23, %v2043_v50 }
 0x52b   : > { %v3195_v56 = vsub.f32 %v2103_v33, %v3163_v19  ;;  %v3164_v63 = vadd.f32 %v3132_v30, %v3100_v39  ;;  %v4207_v25 = vpop.f32.mrb[120].mxu1  ;;  %v2108_v30 = vadd.f32 %v2076_v24, %v2044_v9 }
 0x52c   : > { %v4208_v58 = vpop.f32.mrb[121].mxu1 }
 0x52d   : > { %v3227_v6 = vand.u32 2147483647, %v3195_v56  ;;  %v3196_v21 = vsub.f32 %v2104_v0, %v3164_v63  ;;  %v4209_v13 = vadd.f32 %v4208_v58, %v4207_v25  ;;  %v4210_v18 = vpop.f32.mrb[122].mxu1 }
 0x52e   : > { %v4211_v20 = vpop.f32.mrb[123].mxu1 }
 0x52f   : > { %v3285_v43 = vsel %vm496_vm0, %v3227_v6, 0.0  ;;  %v3228_v3 = vand.u32 2147483647, %v3196_v21  ;;  %v3101_v10 = vmul.f32 0.1, %v4209_v13  ;;  %v4212_v17 = vadd.f32 %v4211_v20, %v4210_v18 }
 0x530   : > { %v3286_v59 = vadd.f32 %v3285_v43, %v3284_v32  ;;  %v4890_v18 = vmov 0.0  }
 0x531   : > { %v3287_v5 = vsel %vm496_vm0, %v3228_v3, 0.0  ;;  %v3165_v42 = vadd.f32 %v3133_v31, %v3101_v10  ;;  %v3102_v62 = vmul.f32 0.1, %v4212_v17  ;;  %1042 = vst.msk [vmem:[%s298_s13] sm:$0x1] %vm1041_vm4, %v4890_v18  ;;  %v7385_v31 = vmov 0  }
 0x532   : > { %v3288_v57 = vadd.f32 %v3287_v5, %v3286_v59  ;;  %1043 = vst.msk [vmem:[%s301_s17] sm:$0x1] %vm1041_vm4, %v4890_v18 }
 0x533   : > { %v3197_v29 = vsub.f32 %v2105_v26, %v3165_v42  ;;  %v3166_v41 = vadd.f32 %v3134_v34, %v3102_v62  ;;  %v4213_v4 = vpop.f32.mrb[124].mxu1 }
 0x534   : > { %v4214_v53 = vpop.f32.mrb[125].mxu1 }
 0x535   : > { %v3229_v7 = vand.u32 2147483647, %v3197_v29  ;;  %v3198_v22 = vsub.f32 %v2106_v49, %v3166_v41  ;;  %v4215_v44 = vadd.f32 %v4214_v53, %v4213_v4  ;;  %v4216_v55 = vpop.f32.mrb[126].mxu1 }
 0x536   : > { %v4217_v28 = vpop.f32.mrb[127].mxu1 }
 0x537   : > { %v3289_v54 = vsel %vm496_vm0, %v3229_v7, 0.0  ;;  %v3230_v52 = vand.u32 2147483647, %v3198_v22  ;;  %v3103_v40 = vmul.f32 0.1, %v4215_v44  ;;  %v4218_v1 = vadd.f32 %v4217_v28, %v4216_v55 }
 0x538   : > { %v3290_v46 = vadd.f32 %v3289_v54, %v3288_v57  ;;  %v3233_v42 = vld [vmem:[%s298_s13] sm:$0x1]  ;;  %v3828_v44 = vld.sshfl [vmem:[#allocation4] sm:$0x33 pattern:$0x76325410] }
 0x539   : > { %v3291_v61 = vsel %vm496_vm0, %v3230_v52, 0.0  ;;  %v3167_v15 = vadd.f32 %v3135_v38, %v3103_v40  ;;  %v3104_v14 = vmul.f32 0.1, %v4218_v1  ;;  %v3568_v55 = vcombine.high %v3828_v44, %v3828_v44  ;;  %v4861_v28 = vld [vmem:[#allocation2] sm:$0xf] }
 0x53a   : > { %v3292_v47 = vadd.f32 %v3291_v61, %v3290_v46  ;;  %v3573_v27 = vsel %vm1124_vm2, %v3828_v44, 0  ;;  %v3467_v54 = vunpack.c.l.bf16 %v4861_v28  ;;  %v4862_v52 = vld [vmem:[#allocation4] sm:$0xf] }
 0x53b   : > { %v3199_v33 = vsub.f32 %v2107_v16, %v3167_v15  ;;  %v3168_v36 = vadd.f32 %v3136_v45, %v3104_v14  ;;  %v4257_v48 = vpop.f32.mrb[128].mxu1  ;;  %3829 = vmatprep.subr.msk.bf16.mxu0 %vm1124_vm2, %v3568_v55  ;;  %v3621_v40 = vunpack.c.l.bf16 %v4862_v52 }
 0x53c   : > { %v4258_v19 = vpop.f32.mrb[129].mxu1  ;;  %v3469_v46 = vcombine.high %v3467_v54, %v3467_v54 }
 0x53d   : > { %v3231_v39 = vand.u32 2147483647, %v3199_v33  ;;  %v3200_v32 = vsub.f32 %v2108_v30, %v3168_v36  ;;  %v4259_v0 = vadd.f32 %v4258_v19, %v4257_v48  ;;  %v4260_v56 = vpop.f32.mrb[130].mxu1  ;;  %v3623_v16 = vcombine.high %v3621_v40, %v3621_v40 }
 0x53e   : > { %v4261_v63 = vpop.f32.mrb[131].mxu1 }
 0x53f   : > { %v3232_v25 = vand.u32 2147483647, %v3200_v32  ;;  %v3543_v58 = vsel %vm3388_vm3, %v4259_v0, -inf  ;;  %v3293_v12 = vsel %vm496_vm0, %v3231_v39, 0.0 }
 0x540   : > { %3544 = vmax.xlane.f32.xlu1 %v3543_v58  ;;  %v3294_v6 = vadd.f32 %v3293_v12, %v3292_v47 }
 0x541   : > { %v3295_v21 = vsel %vm496_vm0, %v3232_v25, 0.0 }
 0x542   : > { %v3296_v13 = vadd.f32 %v3295_v21, %v3294_v6 }
 0x544   : > { %3297 = vadd.xlane.f32.xlu0 %v3296_v13 }
 0x57f   : > { %v3401_v11 = vpop.xlane.xlu0 %3400 }
 0x580   : > { %4816 = vrcp.f32 %v3401_v11 }
 0x58a   : > { %v4817_v2 = vpop.eup %4816 }
 0x58b   : > { %v3403_v35 = vmul.f32 %v4817_v2, %v6833_v37 }
 0x58d   : > { %v3404_v8 = vpack.c.bf16 %v3403_v35, %v3403_v35 }
 0x58f   : > { %3827 = vmatmul.mubr.msk.bf16.vlgmr.msra.gmra.mrb[132].mxu0 %vm496_vm0, %v3404_v8  ;;  %v3627_v8 = vld [vmem:[%s301_s17] sm:$0x1] }
 0x590   : > { %3610 = vmatprep.mubr.bf16.mxu0 %v7385_v31  ;;  %3579 = vmatpush1.bf16.msra.mxu0 %v3573_v27 }
 0x5cd   : > { %v3545_v20 = vpop.xlane.xlu1 %3544 }
 0x5ce   : > { %v3546_v43 = vsub.f32 %v3545_v20, %v4259_v0 }
 0x5d0   : > { %v3547_v3 = vsel %vm3388_vm3, %v3546_v43, -inf }
 0x5d1   : > { %3548 = vmax.xlane.f32.xlu1 %v3547_v3  ;;  %v3298_v10 = vpop.xlane.xlu0 %3297 }
 0x5d2   : > { %v3299_v17 = vrot.slane %v3298_v10, 4 }
 0x5d4   : > { %v3300_v51 = vadd.f32 %v3299_v17, %v3298_v10 }
 0x5d6   : > { %v3301_v59 = vrot.slane %v3300_v51, 2 }
 0x5d8   : > { %v3302_v34 = vadd.f32 %v3301_v59, %v3300_v51 }
 0x5da   : > { %v3303_v26 = vrot.slane %v3302_v34, 1 }
 0x5dc   : > { %v3304_v5 = vadd.f32 %v3303_v26, %v3302_v34 }
 0x5de   : > { %4263 = vpush %v3304_v5 }
 0x60f   : > { %s4264_s14 = spop %4263 }
 0x610   : > { %v3306_v37 = vstv %s4264_s14 }
 0x611   : > { %v3307_v62 = vadd.f32 %v3306_v37, %v3233_v42 }
 0x613   : > { %3309 = vst.msk [vmem:[%s298_s13] sm:$0x1] %vm1041_vm4, %v3307_v62 }
 0x65e   : > { %v3549_v57 = vpop.xlane.xlu1 %3548 }
 0x65f   : > { %v3550_v49 = vsub.f32 %v3546_v43, %v3549_v57 }
 0x661   : > { %v3551_v29 = vmul.f32 1.442695, %v3550_v49 }
 0x662   : > { %v3458_v41 = vpop.f32.mrb[132].mxu0 }
 0x663   : > { %v3460_v4 = vpop.f32.mrb[133].mxu0  ;;  %4818 = vpow2.f32 %v3551_v29  ;;  %v3465_v1 = vmul.f32 0.1, %v3458_v41 }
 0x664   : > { %v3462_v53 = vpop.f32.mrb[134].mxu0  ;;  %v3466_v24 = vmul.f32 0.1, %v3460_v4 }
 0x665   : > { %v3463_v50 = vpop.f32.mrb[135].mxu0  ;;  %v3471_v30 = vadd.f32 %v3467_v54, %v3465_v1 }
 0x666   : > { %v3472_v48 = vadd.f32 %v3469_v46, %v3466_v24 }
 0x66d   : > { %v4819_v7 = vpop.eup %4818 }
 0x66e   : > { %v3553_v22 = vsel %vm3388_vm3, %v4819_v7, 0.0 }
 0x66f   : > { %3554 = vadd.xlane.f32.xlu1 %v3553_v22 }
 0x6fc   : > { %v3555_v23 = vpop.xlane.xlu1 %3554 }
 0x6fd   : > { %4820 = vrcp.f32 %v3555_v23 }
 0x707   : > { %v4821_v9 = vpop.eup %4820 }
 0x708   : > { %v3557_v60 = vmul.f32 %v4821_v9, %v4819_v7 }
 0x70a   : > { %v3558_v38 = vpack.c.bf16 %v3557_v60, %v3557_v60 }
 0x70c   : > { %3830 = vmatmul.mubr.msk.bf16.vlgmr.msra.gmra.mrb[136].mxu0 %vm496_vm0, %v3558_v38 }
 0x7df   : > { %v3612_v45 = vpop.f32.mrb[136].mxu0 }
 0x7e0   : > { %v3619_v61 = vmul.f32 0.1, %v3612_v45  ;;  %v3614_v15 = vpop.f32.mrb[137].mxu0 }
 0x7e1   : > { %v3620_v14 = vmul.f32 0.1, %v3614_v15  ;;  %v3616_v47 = vpop.f32.mrb[138].mxu0 }
 0x7e2   : > { %v3625_v33 = vadd.f32 %v3621_v40, %v3619_v61  ;;  %v3617_v36 = vpop.f32.mrb[139].mxu0 }
 0x7e3   : > { %v3626_v19 = vadd.f32 %v3623_v16, %v3620_v14 }
 0x7e4   : > { %v3628_v39 = vsub.f32 %v3471_v30, %v3625_v33 }
 0x7e5   : > { %v3629_v32 = vsub.f32 %v3472_v48, %v3626_v19 }
 0x7e6   : > { %v3630_v0 = vand.u32 2147483647, %v3628_v39 }
 0x7e7   : > { %v3631_v56 = vand.u32 2147483647, %v3629_v32 }
 0x7e8   : > { %v3633_v63 = vsel %vm313_vm1, %v3630_v0, 0.0 }
 0x7e9   : > { %v3634_v25 = vsel %vm313_vm1, %v3631_v56, 0.0 }
 0x7ea   : > { %v3635_v58 = vadd.f32 %v3634_v25, %v3633_v63 }
 0x7ec   : > { %3636 = vadd.xlane.f32.xlu1 %v3635_v58 }
 0x879   : > { %v3637_v12 = vpop.xlane.xlu1 %3636 }
 0x87a   : > { %v3638_v6 = vrot.slane %v3637_v12, 4 }
 0x87c   : > { %v3639_v21 = vadd.f32 %v3638_v6, %v3637_v12 }
 0x87e   : > { %v3640_v13 = vrot.slane %v3639_v21, 2 }
 0x880   : > { %v3641_v11 = vadd.f32 %v3640_v13, %v3639_v21 }
 0x882   : > { %v3642_v2 = vrot.slane %v3641_v11, 1 }
 0x884   : > { %v3643_v35 = vadd.f32 %v3642_v2, %v3641_v11 }
 0x886   : > { %4265 = vpush %v3643_v35 }
 0x8b7   : > { %s4266_s22 = spop %4265 }
 0x8b8   : > { %v3645_v31 = vstv %s4266_s22 }
 0x8b9   : > { %v3646_v20 = vadd.f32 %v3645_v31, %v3627_v8 }
 0x8bb   : > { %3647 = vst.msk [vmem:[%s301_s17] sm:$0x1] %vm1041_vm4, %v3646_v20 }
 0x8bc PF: > { %s16_s20 = sadd.s32 1, %s4887_s20   ;;  %s7386_s18 = smov %s4883_s19 }
 0x8bd   : > { %p13_p5 = scmp.ge.s32.totalorder %s16_s20, 4   ;;  %s7387_s19 = smov %s7389_s21 }
 0x8bf   :  { %15 = sbr.rel (!%p13_p5) target bundleno = 2 (0x2), region = 99 }

</bundles_post_ra>
